<compile_context>
chip_gen: v6e
topology: v6e:2x2x1
jax: 0.10.0
libtpu: 0.0.40
codegen_flags: <defaults>
</compile_context>

<pallas_src>
import functools

import jax
import jax.numpy as jnp
from jax import lax
from jax.experimental import pallas as pl
from jax.experimental.pallas import tpu as pltpu

_EPS = 1e-5
_INV_SQRT2 = 0.7071067811865476


# ------------------------------ fused kernel --------------------------------

def _down_fused_kernel(
        xph_ref, t_ref,
        w1a_ref, g1a_ref, b1a_ref, w2a_ref, g2a_ref, b2a_ref,
        w1b_ref, g1b_ref, b1b_ref, w2b_ref, g2b_ref, b2b_ref,
        lw_ref, lb_ref, sel_ref, ml_ref, mr_ref,
        o_ref,
        act_pad, patch,
        *, hp, wp, ci, co, pad0):
    n = hp * wp
    m_left = ml_ref[...]     # [n, 1] : 0 where w == 0       (left  halo column)
    m_right = mr_ref[...]    # [n, 1] : 0 where w == wp - 1  (right halo column)

    # Zero the padded-activation scratch once; only interior rows (and only the
    # lanes of the current conv) are rewritten, so the halo rows stay zero.
    act_pad[...] = jnp.zeros_like(act_pad)

    def gelu(v):  # exact (erf) GELU, as in torch.nn.GELU()
        return 0.5 * v * (1.0 + lax.erf(v * _INV_SQRT2))

    def conv3x3(act2d, w_ref, cin):
        # act2d: [n, cin] activation with row index n = h*wp + w.
        # 3x3 'same' convolution, no bias: build the im2col matrix [n, 9*cin]
        # by 9 shifted copies of the zero-padded activation rows, then one
        # bf16 MXU dot with f32 accumulation.
        act_pad[pad0:pad0 + n, 0:cin] = act2d
        for kh in range(3):
            for kw in range(3):
                k = kh * 3 + kw
                shift = (kh - 1) * wp + (kw - 1)
                slab = act_pad[pad0 + shift:pad0 + shift + n, 0:cin]
                if kw == 0:      # row-wrap at the left image border
                    slab = slab * m_left
                elif kw == 2:    # row-wrap at the right image border
                    slab = slab * m_right
                patch[:, k * cin:(k + 1) * cin] = slab
        p = patch[:, 0:9 * cin].astype(jnp.bfloat16)
        return jnp.dot(p, w_ref[...], preferred_element_type=jnp.float32)

    def groupnorm(h, g_ref, b_ref):
        # GroupNorm(num_groups=1): normalize over all (H, W, C) of the sample
        # (B == 1), per-channel affine.  Flat [n, c]: lane reduce then sublane reduce.
        cnt = float(h.shape[0] * h.shape[1])
        mean = jnp.sum(jnp.sum(h, axis=1, keepdims=True), axis=0, keepdims=True) / cnt
        d = h - mean
        var = jnp.sum(jnp.sum(d * d, axis=1, keepdims=True), axis=0, keepdims=True) / cnt
        return d * lax.rsqrt(var + _EPS) * g_ref[...] + b_ref[...]

    # ---- MaxPool2d(2): max over the four 2x2 phases (one DMA'd input) ----
    pooled = jnp.maximum(jnp.maximum(xph_ref[0], xph_ref[1]),
                         jnp.maximum(xph_ref[2], xph_ref[3]))          # [n, ci]

    # ---- DoubleConv(ci, ci, residual=True) ----
    h = gelu(groupnorm(conv3x3(pooled, w1a_ref, ci), g1a_ref, b1a_ref))
    h = groupnorm(conv3x3(h, w2a_ref, ci), g2a_ref, b2a_ref)
    h = gelu(h + pooled)

    # ---- DoubleConv(ci, co) ----
    h = gelu(groupnorm(conv3x3(h, w1b_ref, ci), g1b_ref, b1b_ref))
    h = groupnorm(conv3x3(h, w2b_ref, co), g2b_ref, b2b_ref)          # [n, co]

    # ---- emb = Linear(SiLU(t)); torch right-aligned broadcast add ----
    # With B == 1 and co == hp the torch broadcast adds emb[0, h] at every
    # (c, h, w):  out[h*wp + w, c] += emb[0, h].  `sel` is the [n, co] one-hot
    # of the h index, so the select is a lane-reduce, no transposes needed.
    tv = t_ref[...]
    st = (tv * (1.0 / (1.0 + jnp.exp(-tv)))).astype(jnp.bfloat16)      # SiLU in f32
    emb = jnp.dot(st, lw_ref[...], preferred_element_type=jnp.float32) + lb_ref[...]
    emb_rows = jnp.sum(sel_ref[...] * emb, axis=1, keepdims=True)      # [n, 1]
    o_ref[...] = h + emb_rows


# --------------------------------- wrapper -----------------------------------

def _flat_w(w):
    # [3,3,cin,cout] -> [9*cin, cout]; row order (kh, kw, ci) matches patch columns.
    return w.reshape(-1, w.shape[-1]).astype(jnp.bfloat16)


@jax.jit
def down_forward(x_nchw, t, params):
    x = x_nchw.astype(jnp.float32)
    b, ci, hh, ww = x.shape
    hp, wp = hh // 2, ww // 2
    n = hp * wp
    co = params["dc2"]["w2"].shape[-1]
    cmax = max(ci, co)
    pad0 = ((wp + 1 + 7) // 8) * 8      # zero halo rows before/after the activation

    # torch's `x + emb[:, :, None].repeat(1,1,W)` right-aligned broadcast is only
    # shape-valid when B == 1 and out_channels == pooled H; keep that contract.
    assert hh % 2 == 0 and ww % 2 == 0
    assert b == 1 and co == hp, (b, co, hp)

    # NCHW -> the four 2x2-pool phases, flattened to [4, Hp*Wp, Ci] (layout only,
    # no data expansion; single DMA into the kernel).
    xph = (x[0].reshape(ci, hp, 2, wp, 2)
             .transpose(2, 4, 1, 3, 0)          # [2, 2, hp, wp, ci]
             .reshape(4, n, ci))

    # Structural constants (folded at compile time).
    wcol = jnp.arange(n) % wp
    m_l = (wcol >= 1).astype(jnp.float32).reshape(n, 1)
    m_r = (wcol <= wp - 2).astype(jnp.float32).reshape(n, 1)
    sel = jnp.repeat(jnp.eye(hp, dtype=jnp.float32), wp, axis=0)        # [n, co]

    d1, d2 = params["dc1"], params["dc2"]
    aff = lambda v: v.reshape(1, -1).astype(jnp.float32)
    args = (xph, t.reshape(1, -1).astype(jnp.float32),
            _flat_w(d1["w1"]), aff(d1["g1"]), aff(d1["b1"]),
            _flat_w(d1["w2"]), aff(d1["g2"]), aff(d1["b2"]),
            _flat_w(d2["w1"]), aff(d2["g1"]), aff(d2["b1"]),
            _flat_w(d2["w2"]), aff(d2["g2"]), aff(d2["b2"]),
            params["lin_w"].astype(jnp.bfloat16), aff(params["lin_b"]),
            sel, m_l, m_r)

    kern = functools.partial(_down_fused_kernel, hp=hp, wp=wp, ci=ci, co=co, pad0=pad0)
    out2d = pl.pallas_call(
        kern,
        out_shape=jax.ShapeDtypeStruct((n, co), jnp.float32),
        in_specs=[pl.BlockSpec(memory_space=pltpu.MemorySpace.VMEM)] * len(args),
        out_specs=pl.BlockSpec(memory_space=pltpu.MemorySpace.VMEM),
        scratch_shapes=[
            pltpu.VMEM((2 * pad0 + n, cmax), jnp.float32),   # zero-haloed activation rows
            pltpu.VMEM((n, 9 * cmax), jnp.float32),          # im2col patch matrix
        ],
    )(*args)

    # [n, co] -> NCHW
    return out2d.reshape(hp, wp, co).transpose(2, 0, 1)[None]


# ------------------------ deterministic parameters ---------------------------

def init_params(key, cin, cout, emb_dim):
    ks = jax.random.split(key, 14)

    def conv_w(k, ci, co):
        return 0.2 * jax.random.normal(k, (3, 3, ci, co), jnp.float32)

    def affine(kg, kb, c):
        g = 1.0 + 0.1 * jax.random.normal(kg, (c,), jnp.float32)
        b = 0.1 * jax.random.normal(kb, (c,), jnp.float32)
        return g, b

    g11, b11 = affine(ks[1], ks[2], cin)
    g12, b12 = affine(ks[4], ks[5], cin)
    g21, b21 = affine(ks[7], ks[8], cout)
    g22, b22 = affine(ks[10], ks[11], cout)
    return {
        "dc1": {"w1": conv_w(ks[0], cin, cin), "g1": g11, "b1": b11,
                "w2": conv_w(ks[3], cin, cin), "g2": g12, "b2": b12},
        "dc2": {"w1": conv_w(ks[6], cin, cout), "g1": g21, "b1": b21,
                "w2": conv_w(ks[9], cout, cout), "g2": g22, "b2": b22},
        "lin_w": 0.2 * jax.random.normal(ks[12], (emb_dim, cout), jnp.float32),
        "lin_b": 0.1 * jax.random.normal(ks[13], (cout,), jnp.float32),
    }


# --------------------------- pure-JAX reference ------------------------------
# Mirrors the kernel's numerics: bf16 matmul operands, f32 accumulation,
# f32 element-wise math (GN / erf-GELU / SiLU).

def _ref_conv3x3(x, w):
    return lax.conv_general_dilated(
        x.astype(jnp.bfloat16), w.astype(jnp.bfloat16), (1, 1), "SAME",
        dimension_numbers=("NHWC", "HWIO", "NHWC"),
        preferred_element_type=jnp.float32)


def _ref_gn(x, g, b):
    mean = jnp.mean(x, axis=(1, 2, 3), keepdims=True)
    var = jnp.mean((x - mean) ** 2, axis=(1, 2, 3), keepdims=True)
    y = (x - mean) * lax.rsqrt(var + _EPS)
    return y * g.reshape(1, 1, 1, -1) + b.reshape(1, 1, 1, -1)


def _ref_gelu(v):
    return 0.5 * v * (1.0 + lax.erf(v * _INV_SQRT2))


def down_reference(x_nchw, t, params):
    x = jnp.transpose(x_nchw, (0, 2, 3, 1)).astype(jnp.float32)
    B, H, W, C = x.shape
    x = x.reshape(B, H // 2, 2, W // 2, 2, C).max(axis=(2, 4))

    def dc(x, p, residual):
        h = _ref_gelu(_ref_gn(_ref_conv3x3(x, p["w1"]), p["g1"], p["b1"]))
        h = _ref_gn(_ref_conv3x3(h, p["w2"]), p["g2"], p["b2"])
        return _ref_gelu(h + x) if residual else h

    x = dc(x, params["dc1"], True)
    x = dc(x, params["dc2"], False)
    x = jnp.transpose(x, (0, 3, 1, 2))
    s = t * (1.0 / (1.0 + jnp.exp(-t)))
    emb = jnp.dot(s.astype(jnp.bfloat16), params["lin_w"].astype(jnp.bfloat16),
                  preferred_element_type=jnp.float32) + params["lin_b"]
    emb_rep = jnp.repeat(emb[:, :, None], x.shape[-1], axis=2)
    return x + emb_rep   # torch right-aligned broadcast (valid: B==1, Co==pooled H)


# ---------------------------------- main -------------------------------------

if __name__ == "__main__":
    # NOTE: the PyTorch module adds emb of shape [B, Cout, W] onto x of shape
    # [B, Cout, H, W]; that right-aligned broadcast is only shape-valid when
    # B == 1 and the pooled spatial size equals Cout, so shapes are chosen
    # accordingly (spatial 16 -> pooled 8 == out_channels 8).
    B, Ci, Co, H, W, E = 1, 4, 8, 16, 16, 32
    key = jax.random.PRNGKey(0)
    kx, kt, kp = jax.random.split(key, 3)
    x = jax.random.normal(kx, (B, Ci, H, W), jnp.float32)
    t = jax.random.normal(kt, (B, E), jnp.float32)
    params = init_params(kp, Ci, Co, E)

    out = jax.block_until_ready(down_forward(x, t, params))
    ref = jax.block_until_ready(down_reference(x, t, params))

    assert out.shape == (B, Co, H // 2, W // 2), out.shape
    # Kernel and reference both use bf16 matmul operands with f32 accumulation;
    # residual divergence comes only from accumulation order / rare 1-ulp bf16
    # rounding flips propagated through the conv stack, so 2e-2 is a safe bound.
    err = float(jnp.max(jnp.abs(out - ref)))
    assert err < 2e-2, f"max abs err vs reference: {err}"
    print("KERNEL_OK")
</pallas_src>

<mosaic_0001>
module attributes {stable_mosaic.version = 11 : i64} {
  func.func @_down_fused_kernel(%arg0: memref<4x64x4xf32, #tpu.memory_space<vmem>>, %arg1: memref<1x32xf32, #tpu.memory_space<vmem>>, %arg2: memref<36x4xbf16, #tpu.memory_space<vmem>>, %arg3: memref<1x4xf32, #tpu.memory_space<vmem>>, %arg4: memref<1x4xf32, #tpu.memory_space<vmem>>, %arg5: memref<36x4xbf16, #tpu.memory_space<vmem>>, %arg6: memref<1x4xf32, #tpu.memory_space<vmem>>, %arg7: memref<1x4xf32, #tpu.memory_space<vmem>>, %arg8: memref<36x8xbf16, #tpu.memory_space<vmem>>, %arg9: memref<1x8xf32, #tpu.memory_space<vmem>>, %arg10: memref<1x8xf32, #tpu.memory_space<vmem>>, %arg11: memref<72x8xbf16, #tpu.memory_space<vmem>>, %arg12: memref<1x8xf32, #tpu.memory_space<vmem>>, %arg13: memref<1x8xf32, #tpu.memory_space<vmem>>, %arg14: memref<32x8xbf16, #tpu.memory_space<vmem>>, %arg15: memref<1x8xf32, #tpu.memory_space<vmem>>, %arg16: memref<64x8xf32, #tpu.memory_space<vmem>>, %arg17: memref<64x1xf32, #tpu.memory_space<vmem>>, %arg18: memref<64x1xf32, #tpu.memory_space<vmem>>, %arg19: memref<64x8xf32, #tpu.memory_space<vmem>>, %arg20: memref<96x8xf32, #tpu.memory_space<vmem>>, %arg21: memref<64x72xf32, #tpu.memory_space<vmem>>) attributes {dimension_semantics = [], scalar_prefetch = 0 : i64, scratch_operands = 2 : i64, tpu.core_type = #tpu.core_type<tc>} {
    %c0 = arith.constant 0 : index
    %c0_0 = arith.constant 0 : index
    %0 = vector.load %arg17[%c0, %c0_0] : memref<64x1xf32, #tpu.memory_space<vmem>>, vector<64x1xf32>
    %c0_1 = arith.constant 0 : index
    %c0_2 = arith.constant 0 : index
    %1 = vector.load %arg18[%c0_1, %c0_2] : memref<64x1xf32, #tpu.memory_space<vmem>>, vector<64x1xf32>
    %cst = arith.constant 0.000000e+00 : f32
    %2 = vector.broadcast %cst : f32 to vector<96x8xf32>
    %c0_3 = arith.constant 0 : index
    %c0_4 = arith.constant 0 : index
    %3 = vector.load %arg20[%c0_3, %c0_4] : memref<96x8xf32, #tpu.memory_space<vmem>>, vector<96x8xf32>
    tpu.vector_store %arg20[%c0_3, %c0_4], %2 {strides = array<i32>} : memref<96x8xf32, #tpu.memory_space<vmem>>, vector<96x8xf32>,
    %c0_5 = arith.constant 0 : index
    %c0_6 = arith.constant 0 : index
    %c0_7 = arith.constant 0 : index
    %4 = vector.load %arg0[%c0_5, %c0_6, %c0_7] : memref<4x64x4xf32, #tpu.memory_space<vmem>>, vector<1x64x4xf32>
    %5 = vector.shape_cast %4 : vector<1x64x4xf32> to vector<64x4xf32>
    %c1 = arith.constant 1 : index
    %c0_8 = arith.constant 0 : index
    %c0_9 = arith.constant 0 : index
    %6 = vector.load %arg0[%c1, %c0_8, %c0_9] : memref<4x64x4xf32, #tpu.memory_space<vmem>>, vector<1x64x4xf32>
    %7 = vector.shape_cast %6 : vector<1x64x4xf32> to vector<64x4xf32>
    %8 = arith.maximumf %5, %7 : vector<64x4xf32>
    %c2 = arith.constant 2 : index
    %c0_10 = arith.constant 0 : index
    %c0_11 = arith.constant 0 : index
    %9 = vector.load %arg0[%c2, %c0_10, %c0_11] : memref<4x64x4xf32, #tpu.memory_space<vmem>>, vector<1x64x4xf32>
    %10 = vector.shape_cast %9 : vector<1x64x4xf32> to vector<64x4xf32>
    %c3 = arith.constant 3 : index
    %c0_12 = arith.constant 0 : index
    %c0_13 = arith.constant 0 : index
    %11 = vector.load %arg0[%c3, %c0_12, %c0_13] : memref<4x64x4xf32, #tpu.memory_space<vmem>>, vector<1x64x4xf32>
    %12 = vector.shape_cast %11 : vector<1x64x4xf32> to vector<64x4xf32>
    %13 = arith.maximumf %10, %12 : vector<64x4xf32>
    %14 = arith.maximumf %8, %13 : vector<64x4xf32>
    %c16 = arith.constant 16 : index
    %c0_14 = arith.constant 0 : index
    %15 = vector.load %arg20[%c16, %c0_14] : memref<96x8xf32, #tpu.memory_space<vmem>>, vector<64x4xf32>
    tpu.vector_store %arg20[%c16, %c0_14], %14 {strides = array<i32>} : memref<96x8xf32, #tpu.memory_space<vmem>>, vector<64x4xf32>,
    %c7 = arith.constant 7 : index
    %c0_15 = arith.constant 0 : index
    %16 = vector.load %arg20[%c7, %c0_15] : memref<96x8xf32, #tpu.memory_space<vmem>>, vector<64x4xf32>
    %17 = vector.broadcast %0 : vector<64x1xf32> to vector<64x4xf32>
    %18 = arith.mulf %16, %17 : vector<64x4xf32>
    %c0_16 = arith.constant 0 : index
    %c0_17 = arith.constant 0 : index
    %19 = vector.load %arg21[%c0_16, %c0_17] : memref<64x72xf32, #tpu.memory_space<vmem>>, vector<64x4xf32>
    tpu.vector_store %arg21[%c0_16, %c0_17], %18 {strides = array<i32>} : memref<64x72xf32, #tpu.memory_space<vmem>>, vector<64x4xf32>,
    %c8 = arith.constant 8 : index
    %c0_18 = arith.constant 0 : index
    %20 = vector.load %arg20[%c8, %c0_18] : memref<96x8xf32, #tpu.memory_space<vmem>>, vector<64x4xf32>
    %c0_19 = arith.constant 0 : index
    %c4 = arith.constant 4 : index
    %21 = vector.load %arg21[%c0_19, %c4] : memref<64x72xf32, #tpu.memory_space<vmem>>, vector<64x4xf32>
    tpu.vector_store %arg21[%c0_19, %c4], %20 {strides = array<i32>} : memref<64x72xf32, #tpu.memory_space<vmem>>, vector<64x4xf32>,
    %c9 = arith.constant 9 : index
    %c0_20 = arith.constant 0 : index
    %22 = vector.load %arg20[%c9, %c0_20] : memref<96x8xf32, #tpu.memory_space<vmem>>, vector<64x4xf32>
    %23 = vector.broadcast %1 : vector<64x1xf32> to vector<64x4xf32>
    %24 = arith.mulf %22, %23 : vector<64x4xf32>
    %c0_21 = arith.constant 0 : index
    %c8_22 = arith.constant 8 : index
    %25 = vector.load %arg21[%c0_21, %c8_22] : memref<64x72xf32, #tpu.memory_space<vmem>>, vector<64x4xf32>
    tpu.vector_store %arg21[%c0_21, %c8_22], %24 {strides = array<i32>} : memref<64x72xf32, #tpu.memory_space<vmem>>, vector<64x4xf32>,
    %c15 = arith.constant 15 : index
    %c0_23 = arith.constant 0 : index
    %26 = vector.load %arg20[%c15, %c0_23] : memref<96x8xf32, #tpu.memory_space<vmem>>, vector<64x4xf32>
    %27 = vector.broadcast %0 : vector<64x1xf32> to vector<64x4xf32>
    %28 = arith.mulf %26, %27 : vector<64x4xf32>
    %c0_24 = arith.constant 0 : index
    %c12 = arith.constant 12 : index
    %29 = vector.load %arg21[%c0_24, %c12] : memref<64x72xf32, #tpu.memory_space<vmem>>, vector<64x4xf32>
    tpu.vector_store %arg21[%c0_24, %c12], %28 {strides = array<i32>} : memref<64x72xf32, #tpu.memory_space<vmem>>, vector<64x4xf32>,
    %c16_25 = arith.constant 16 : index
    %c0_26 = arith.constant 0 : index
    %30 = vector.load %arg20[%c16_25, %c0_26] : memref<96x8xf32, #tpu.memory_space<vmem>>, vector<64x4xf32>
    %c0_27 = arith.constant 0 : index
    %c16_28 = arith.constant 16 : index
    %31 = vector.load %arg21[%c0_27, %c16_28] : memref<64x72xf32, #tpu.memory_space<vmem>>, vector<64x4xf32>
    tpu.vector_store %arg21[%c0_27, %c16_28], %30 {strides = array<i32>} : memref<64x72xf32, #tpu.memory_space<vmem>>, vector<64x4xf32>,
    %c17 = arith.constant 17 : index
    %c0_29 = arith.constant 0 : index
    %32 = vector.load %arg20[%c17, %c0_29] : memref<96x8xf32, #tpu.memory_space<vmem>>, vector<64x4xf32>
    %33 = vector.broadcast %1 : vector<64x1xf32> to vector<64x4xf32>
    %34 = arith.mulf %32, %33 : vector<64x4xf32>
    %c0_30 = arith.constant 0 : index
    %c20 = arith.constant 20 : index
    %35 = vector.load %arg21[%c0_30, %c20] : memref<64x72xf32, #tpu.memory_space<vmem>>, vector<64x4xf32>
    tpu.vector_store %arg21[%c0_30, %c20], %34 {strides = array<i32>} : memref<64x72xf32, #tpu.memory_space<vmem>>, vector<64x4xf32>,
    %c23 = arith.constant 23 : index
    %c0_31 = arith.constant 0 : index
    %36 = vector.load %arg20[%c23, %c0_31] : memref<96x8xf32, #tpu.memory_space<vmem>>, vector<64x4xf32>
    %37 = vector.broadcast %0 : vector<64x1xf32> to vector<64x4xf32>
    %38 = arith.mulf %36, %37 : vector<64x4xf32>
    %c0_32 = arith.constant 0 : index
    %c24 = arith.constant 24 : index
    %39 = vector.load %arg21[%c0_32, %c24] : memref<64x72xf32, #tpu.memory_space<vmem>>, vector<64x4xf32>
    tpu.vector_store %arg21[%c0_32, %c24], %38 {strides = array<i32>} : memref<64x72xf32, #tpu.memory_space<vmem>>, vector<64x4xf32>,
    %c24_33 = arith.constant 24 : index
    %c0_34 = arith.constant 0 : index
    %40 = vector.load %arg20[%c24_33, %c0_34] : memref<96x8xf32, #tpu.memory_space<vmem>>, vector<64x4xf32>
    %c0_35 = arith.constant 0 : index
    %c28 = arith.constant 28 : index
    %41 = vector.load %arg21[%c0_35, %c28] : memref<64x72xf32, #tpu.memory_space<vmem>>, vector<64x4xf32>
    tpu.vector_store %arg21[%c0_35, %c28], %40 {strides = array<i32>} : memref<64x72xf32, #tpu.memory_space<vmem>>, vector<64x4xf32>,
    %c25 = arith.constant 25 : index
    %c0_36 = arith.constant 0 : index
    %42 = vector.load %arg20[%c25, %c0_36] : memref<96x8xf32, #tpu.memory_space<vmem>>, vector<64x4xf32>
    %43 = vector.broadcast %1 : vector<64x1xf32> to vector<64x4xf32>
    %44 = arith.mulf %42, %43 : vector<64x4xf32>
    %c0_37 = arith.constant 0 : index
    %c32 = arith.constant 32 : index
    %45 = vector.load %arg21[%c0_37, %c32] : memref<64x72xf32, #tpu.memory_space<vmem>>, vector<64x4xf32>
    tpu.vector_store %arg21[%c0_37, %c32], %44 {strides = array<i32>} : memref<64x72xf32, #tpu.memory_space<vmem>>, vector<64x4xf32>,
    %c0_38 = arith.constant 0 : index
    %c0_39 = arith.constant 0 : index
    %46 = vector.load %arg21[%c0_38, %c0_39] : memref<64x72xf32, #tpu.memory_space<vmem>>, vector<64x36xf32>
    %47 = arith.truncf %46 : vector<64x36xf32> to vector<64x36xbf16>
    %c0_40 = arith.constant 0 : index
    %c0_41 = arith.constant 0 : index
    %48 = vector.load %arg2[%c0_40, %c0_41] : memref<36x4xbf16, #tpu.memory_space<vmem>>, vector<36x4xbf16>
    %cst_42 = arith.constant dense<0.000000e+00> : vector<64x4xf32>
    %49 = tpu.matmul %47, %48, %cst_42 {dimension_numbers = #tpu.dot_dimension_numbers<[1], [0], [0], [1], [0, 0, 1, 1], [], []>} : vector<64x36xbf16>, vector<36x4xbf16>, vector<64x4xf32> -> vector<64x4xf32>
    %cst_43 = arith.constant dense<0.000000e+00> : vector<64xf32>
    %50 = vector.multi_reduction <add>, %49, %cst_43 [1] : vector<64x4xf32> to vector<64xf32>
    %51 = vector.shape_cast %50 : vector<64xf32> to vector<64x1xf32>
    %cst_44 = arith.constant dense<0.000000e+00> : vector<1xf32>
    %52 = vector.multi_reduction <add>, %51, %cst_44 [0] : vector<64x1xf32> to vector<1xf32>
    %53 = vector.shape_cast %52 : vector<1xf32> to vector<1x1xf32>
    %cst_45 = arith.constant 2.560000e+02 : f32
    %54 = vector.broadcast %cst_45 : f32 to vector<1x1xf32>
    %55 = arith.divf %53, %54 : vector<1x1xf32>
    %56 = vector.broadcast %55 : vector<1x1xf32> to vector<64x4xf32>
    %57 = arith.subf %49, %56 : vector<64x4xf32>
    %58 = arith.mulf %57, %57 : vector<64x4xf32>
    %cst_46 = arith.constant dense<0.000000e+00> : vector<64xf32>
    %59 = vector.multi_reduction <add>, %58, %cst_46 [1] : vector<64x4xf32> to vector<64xf32>
    %60 = vector.shape_cast %59 : vector<64xf32> to vector<64x1xf32>
    %cst_47 = arith.constant dense<0.000000e+00> : vector<1xf32>
    %61 = vector.multi_reduction <add>, %60, %cst_47 [0] : vector<64x1xf32> to vector<1xf32>
    %62 = vector.shape_cast %61 : vector<1xf32> to vector<1x1xf32>
    %cst_48 = arith.constant 2.560000e+02 : f32
    %63 = vector.broadcast %cst_48 : f32 to vector<1x1xf32>
    %64 = arith.divf %62, %63 : vector<1x1xf32>
    %cst_49 = arith.constant 9.99999974E-6 : f32
    %65 = vector.broadcast %cst_49 : f32 to vector<1x1xf32>
    %66 = arith.addf %64, %65 : vector<1x1xf32>
    %67 = math.rsqrt %66 : vector<1x1xf32>
    %68 = vector.broadcast %67 : vector<1x1xf32> to vector<64x4xf32>
    %69 = arith.mulf %57, %68 : vector<64x4xf32>
    %c0_50 = arith.constant 0 : index
    %c0_51 = arith.constant 0 : index
    %70 = vector.load %arg3[%c0_50, %c0_51] : memref<1x4xf32, #tpu.memory_space<vmem>>, vector<1x4xf32>
    %71 = vector.broadcast %70 : vector<1x4xf32> to vector<64x4xf32>
    %72 = arith.mulf %69, %71 : vector<64x4xf32>
    %c0_52 = arith.constant 0 : index
    %c0_53 = arith.constant 0 : index
    %73 = vector.load %arg4[%c0_52, %c0_53] : memref<1x4xf32, #tpu.memory_space<vmem>>, vector<1x4xf32>
    %74 = vector.broadcast %73 : vector<1x4xf32> to vector<64x4xf32>
    %75 = arith.addf %72, %74 : vector<64x4xf32>
    %cst_54 = arith.constant 5.000000e-01 : f32
    %76 = vector.broadcast %cst_54 : f32 to vector<64x4xf32>
    %77 = arith.mulf %76, %75 : vector<64x4xf32>
    %cst_55 = arith.constant 0.707106769 : f32
    %78 = vector.broadcast %cst_55 : f32 to vector<64x4xf32>
    %79 = arith.mulf %75, %78 : vector<64x4xf32>
    %80 = math.erf %79 : vector<64x4xf32>
    %cst_56 = arith.constant 1.000000e+00 : f32
    %81 = vector.broadcast %cst_56 : f32 to vector<64x4xf32>
    %82 = arith.addf %81, %80 : vector<64x4xf32>
    %83 = arith.mulf %77, %82 : vector<64x4xf32>
    %c16_57 = arith.constant 16 : index
    %c0_58 = arith.constant 0 : index
    %84 = vector.load %arg20[%c16_57, %c0_58] : memref<96x8xf32, #tpu.memory_space<vmem>>, vector<64x4xf32>
    tpu.vector_store %arg20[%c16_57, %c0_58], %83 {strides = array<i32>} : memref<96x8xf32, #tpu.memory_space<vmem>>, vector<64x4xf32>,
    %c7_59 = arith.constant 7 : index
    %c0_60 = arith.constant 0 : index
    %85 = vector.load %arg20[%c7_59, %c0_60] : memref<96x8xf32, #tpu.memory_space<vmem>>, vector<64x4xf32>
    %86 = vector.broadcast %0 : vector<64x1xf32> to vector<64x4xf32>
    %87 = arith.mulf %85, %86 : vector<64x4xf32>
    %c0_61 = arith.constant 0 : index
    %c0_62 = arith.constant 0 : index
    %88 = vector.load %arg21[%c0_61, %c0_62] : memref<64x72xf32, #tpu.memory_space<vmem>>, vector<64x4xf32>
    tpu.vector_store %arg21[%c0_61, %c0_62], %87 {strides = array<i32>} : memref<64x72xf32, #tpu.memory_space<vmem>>, vector<64x4xf32>,
    %c8_63 = arith.constant 8 : index
    %c0_64 = arith.constant 0 : index
    %89 = vector.load %arg20[%c8_63, %c0_64] : memref<96x8xf32, #tpu.memory_space<vmem>>, vector<64x4xf32>
    %c0_65 = arith.constant 0 : index
    %c4_66 = arith.constant 4 : index
    %90 = vector.load %arg21[%c0_65, %c4_66] : memref<64x72xf32, #tpu.memory_space<vmem>>, vector<64x4xf32>
    tpu.vector_store %arg21[%c0_65, %c4_66], %89 {strides = array<i32>} : memref<64x72xf32, #tpu.memory_space<vmem>>, vector<64x4xf32>,
    %c9_67 = arith.constant 9 : index
    %c0_68 = arith.constant 0 : index
    %91 = vector.load %arg20[%c9_67, %c0_68] : memref<96x8xf32, #tpu.memory_space<vmem>>, vector<64x4xf32>
    %92 = vector.broadcast %1 : vector<64x1xf32> to vector<64x4xf32>
    %93 = arith.mulf %91, %92 : vector<64x4xf32>
    %c0_69 = arith.constant 0 : index
    %c8_70 = arith.constant 8 : index
    %94 = vector.load %arg21[%c0_69, %c8_70] : memref<64x72xf32, #tpu.memory_space<vmem>>, vector<64x4xf32>
    tpu.vector_store %arg21[%c0_69, %c8_70], %93 {strides = array<i32>} : memref<64x72xf32, #tpu.memory_space<vmem>>, vector<64x4xf32>,
    %c15_71 = arith.constant 15 : index
    %c0_72 = arith.constant 0 : index
    %95 = vector.load %arg20[%c15_71, %c0_72] : memref<96x8xf32, #tpu.memory_space<vmem>>, vector<64x4xf32>
    %96 = vector.broadcast %0 : vector<64x1xf32> to vector<64x4xf32>
    %97 = arith.mulf %95, %96 : vector<64x4xf32>
    %c0_73 = arith.constant 0 : index
    %c12_74 = arith.constant 12 : index
    %98 = vector.load %arg21[%c0_73, %c12_74] : memref<64x72xf32, #tpu.memory_space<vmem>>, vector<64x4xf32>
    tpu.vector_store %arg21[%c0_73, %c12_74], %97 {strides = array<i32>} : memref<64x72xf32, #tpu.memory_space<vmem>>, vector<64x4xf32>,
    %c16_75 = arith.constant 16 : index
    %c0_76 = arith.constant 0 : index
    %99 = vector.load %arg20[%c16_75, %c0_76] : memref<96x8xf32, #tpu.memory_space<vmem>>, vector<64x4xf32>
    %c0_77 = arith.constant 0 : index
    %c16_78 = arith.constant 16 : index
    %100 = vector.load %arg21[%c0_77, %c16_78] : memref<64x72xf32, #tpu.memory_space<vmem>>, vector<64x4xf32>
    tpu.vector_store %arg21[%c0_77, %c16_78], %99 {strides = array<i32>} : memref<64x72xf32, #tpu.memory_space<vmem>>, vector<64x4xf32>,
    %c17_79 = arith.constant 17 : index
    %c0_80 = arith.constant 0 : index
    %101 = vector.load %arg20[%c17_79, %c0_80] : memref<96x8xf32, #tpu.memory_space<vmem>>, vector<64x4xf32>
    %102 = vector.broadcast %1 : vector<64x1xf32> to vector<64x4xf32>
    %103 = arith.mulf %101, %102 : vector<64x4xf32>
    %c0_81 = arith.constant 0 : index
    %c20_82 = arith.constant 20 : index
    %104 = vector.load %arg21[%c0_81, %c20_82] : memref<64x72xf32, #tpu.memory_space<vmem>>, vector<64x4xf32>
    tpu.vector_store %arg21[%c0_81, %c20_82], %103 {strides = array<i32>} : memref<64x72xf32, #tpu.memory_space<vmem>>, vector<64x4xf32>,
    %c23_83 = arith.constant 23 : index
    %c0_84 = arith.constant 0 : index
    %105 = vector.load %arg20[%c23_83, %c0_84] : memref<96x8xf32, #tpu.memory_space<vmem>>, vector<64x4xf32>
    %106 = vector.broadcast %0 : vector<64x1xf32> to vector<64x4xf32>
    %107 = arith.mulf %105, %106 : vector<64x4xf32>
    %c0_85 = arith.constant 0 : index
    %c24_86 = arith.constant 24 : index
    %108 = vector.load %arg21[%c0_85, %c24_86] : memref<64x72xf32, #tpu.memory_space<vmem>>, vector<64x4xf32>
    tpu.vector_store %arg21[%c0_85, %c24_86], %107 {strides = array<i32>} : memref<64x72xf32, #tpu.memory_space<vmem>>, vector<64x4xf32>,
    %c24_87 = arith.constant 24 : index
    %c0_88 = arith.constant 0 : index
    %109 = vector.load %arg20[%c24_87, %c0_88] : memref<96x8xf32, #tpu.memory_space<vmem>>, vector<64x4xf32>
    %c0_89 = arith.constant 0 : index
    %c28_90 = arith.constant 28 : index
    %110 = vector.load %arg21[%c0_89, %c28_90] : memref<64x72xf32, #tpu.memory_space<vmem>>, vector<64x4xf32>
    tpu.vector_store %arg21[%c0_89, %c28_90], %109 {strides = array<i32>} : memref<64x72xf32, #tpu.memory_space<vmem>>, vector<64x4xf32>,
    %c25_91 = arith.constant 25 : index
    %c0_92 = arith.constant 0 : index
    %111 = vector.load %arg20[%c25_91, %c0_92] : memref<96x8xf32, #tpu.memory_space<vmem>>, vector<64x4xf32>
    %112 = vector.broadcast %1 : vector<64x1xf32> to vector<64x4xf32>
    %113 = arith.mulf %111, %112 : vector<64x4xf32>
    %c0_93 = arith.constant 0 : index
    %c32_94 = arith.constant 32 : index
    %114 = vector.load %arg21[%c0_93, %c32_94] : memref<64x72xf32, #tpu.memory_space<vmem>>, vector<64x4xf32>
    tpu.vector_store %arg21[%c0_93, %c32_94], %113 {strides = array<i32>} : memref<64x72xf32, #tpu.memory_space<vmem>>, vector<64x4xf32>,
    %c0_95 = arith.constant 0 : index
    %c0_96 = arith.constant 0 : index
    %115 = vector.load %arg21[%c0_95, %c0_96] : memref<64x72xf32, #tpu.memory_space<vmem>>, vector<64x36xf32>
    %116 = arith.truncf %115 : vector<64x36xf32> to vector<64x36xbf16>
    %c0_97 = arith.constant 0 : index
    %c0_98 = arith.constant 0 : index
    %117 = vector.load %arg5[%c0_97, %c0_98] : memref<36x4xbf16, #tpu.memory_space<vmem>>, vector<36x4xbf16>
    %cst_99 = arith.constant dense<0.000000e+00> : vector<64x4xf32>
    %118 = tpu.matmul %116, %117, %cst_99 {dimension_numbers = #tpu.dot_dimension_numbers<[1], [0], [0], [1], [0, 0, 1, 1], [], []>} : vector<64x36xbf16>, vector<36x4xbf16>, vector<64x4xf32> -> vector<64x4xf32>
    %cst_100 = arith.constant dense<0.000000e+00> : vector<64xf32>
    %119 = vector.multi_reduction <add>, %118, %cst_100 [1] : vector<64x4xf32> to vector<64xf32>
    %120 = vector.shape_cast %119 : vector<64xf32> to vector<64x1xf32>
    %cst_101 = arith.constant dense<0.000000e+00> : vector<1xf32>
    %121 = vector.multi_reduction <add>, %120, %cst_101 [0] : vector<64x1xf32> to vector<1xf32>
    %122 = vector.shape_cast %121 : vector<1xf32> to vector<1x1xf32>
    %cst_102 = arith.constant 2.560000e+02 : f32
    %123 = vector.broadcast %cst_102 : f32 to vector<1x1xf32>
    %124 = arith.divf %122, %123 : vector<1x1xf32>
    %125 = vector.broadcast %124 : vector<1x1xf32> to vector<64x4xf32>
    %126 = arith.subf %118, %125 : vector<64x4xf32>
    %127 = arith.mulf %126, %126 : vector<64x4xf32>
    %cst_103 = arith.constant dense<0.000000e+00> : vector<64xf32>
    %128 = vector.multi_reduction <add>, %127, %cst_103 [1] : vector<64x4xf32> to vector<64xf32>
    %129 = vector.shape_cast %128 : vector<64xf32> to vector<64x1xf32>
    %cst_104 = arith.constant dense<0.000000e+00> : vector<1xf32>
    %130 = vector.multi_reduction <add>, %129, %cst_104 [0] : vector<64x1xf32> to vector<1xf32>
    %131 = vector.shape_cast %130 : vector<1xf32> to vector<1x1xf32>
    %cst_105 = arith.constant 2.560000e+02 : f32
    %132 = vector.broadcast %cst_105 : f32 to vector<1x1xf32>
    %133 = arith.divf %131, %132 : vector<1x1xf32>
    %cst_106 = arith.constant 9.99999974E-6 : f32
    %134 = vector.broadcast %cst_106 : f32 to vector<1x1xf32>
    %135 = arith.addf %133, %134 : vector<1x1xf32>
    %136 = math.rsqrt %135 : vector<1x1xf32>
    %137 = vector.broadcast %136 : vector<1x1xf32> to vector<64x4xf32>
    %138 = arith.mulf %126, %137 : vector<64x4xf32>
    %c0_107 = arith.constant 0 : index
    %c0_108 = arith.constant 0 : index
    %139 = vector.load %arg6[%c0_107, %c0_108] : memref<1x4xf32, #tpu.memory_space<vmem>>, vector<1x4xf32>
    %140 = vector.broadcast %139 : vector<1x4xf32> to vector<64x4xf32>
    %141 = arith.mulf %138, %140 : vector<64x4xf32>
    %c0_109 = arith.constant 0 : index
    %c0_110 = arith.constant 0 : index
    %142 = vector.load %arg7[%c0_109, %c0_110] : memref<1x4xf32, #tpu.memory_space<vmem>>, vector<1x4xf32>
    %143 = vector.broadcast %142 : vector<1x4xf32> to vector<64x4xf32>
    %144 = arith.addf %141, %143 : vector<64x4xf32>
    %145 = arith.addf %144, %14 : vector<64x4xf32>
    %cst_111 = arith.constant 5.000000e-01 : f32
    %146 = vector.broadcast %cst_111 : f32 to vector<64x4xf32>
    %147 = arith.mulf %146, %145 : vector<64x4xf32>
    %cst_112 = arith.constant 0.707106769 : f32
    %148 = vector.broadcast %cst_112 : f32 to vector<64x4xf32>
    %149 = arith.mulf %145, %148 : vector<64x4xf32>
    %150 = math.erf %149 : vector<64x4xf32>
    %cst_113 = arith.constant 1.000000e+00 : f32
    %151 = vector.broadcast %cst_113 : f32 to vector<64x4xf32>
    %152 = arith.addf %151, %150 : vector<64x4xf32>
    %153 = arith.mulf %147, %152 : vector<64x4xf32>
    %c16_114 = arith.constant 16 : index
    %c0_115 = arith.constant 0 : index
    %154 = vector.load %arg20[%c16_114, %c0_115] : memref<96x8xf32, #tpu.memory_space<vmem>>, vector<64x4xf32>
    tpu.vector_store %arg20[%c16_114, %c0_115], %153 {strides = array<i32>} : memref<96x8xf32, #tpu.memory_space<vmem>>, vector<64x4xf32>,
    %c7_116 = arith.constant 7 : index
    %c0_117 = arith.constant 0 : index
    %155 = vector.load %arg20[%c7_116, %c0_117] : memref<96x8xf32, #tpu.memory_space<vmem>>, vector<64x4xf32>
    %156 = vector.broadcast %0 : vector<64x1xf32> to vector<64x4xf32>
    %157 = arith.mulf %155, %156 : vector<64x4xf32>
    %c0_118 = arith.constant 0 : index
    %c0_119 = arith.constant 0 : index
    %158 = vector.load %arg21[%c0_118, %c0_119] : memref<64x72xf32, #tpu.memory_space<vmem>>, vector<64x4xf32>
    tpu.vector_store %arg21[%c0_118, %c0_119], %157 {strides = array<i32>} : memref<64x72xf32, #tpu.memory_space<vmem>>, vector<64x4xf32>,
    %c8_120 = arith.constant 8 : index
    %c0_121 = arith.constant 0 : index
    %159 = vector.load %arg20[%c8_120, %c0_121] : memref<96x8xf32, #tpu.memory_space<vmem>>, vector<64x4xf32>
    %c0_122 = arith.constant 0 : index
    %c4_123 = arith.constant 4 : index
    %160 = vector.load %arg21[%c0_122, %c4_123] : memref<64x72xf32, #tpu.memory_space<vmem>>, vector<64x4xf32>
    tpu.vector_store %arg21[%c0_122, %c4_123], %159 {strides = array<i32>} : memref<64x72xf32, #tpu.memory_space<vmem>>, vector<64x4xf32>,
    %c9_124 = arith.constant 9 : index
    %c0_125 = arith.constant 0 : index
    %161 = vector.load %arg20[%c9_124, %c0_125] : memref<96x8xf32, #tpu.memory_space<vmem>>, vector<64x4xf32>
    %162 = vector.broadcast %1 : vector<64x1xf32> to vector<64x4xf32>
    %163 = arith.mulf %161, %162 : vector<64x4xf32>
    %c0_126 = arith.constant 0 : index
    %c8_127 = arith.constant 8 : index
    %164 = vector.load %arg21[%c0_126, %c8_127] : memref<64x72xf32, #tpu.memory_space<vmem>>, vector<64x4xf32>
    tpu.vector_store %arg21[%c0_126, %c8_127], %163 {strides = array<i32>} : memref<64x72xf32, #tpu.memory_space<vmem>>, vector<64x4xf32>,
    %c15_128 = arith.constant 15 : index
    %c0_129 = arith.constant 0 : index
    %165 = vector.load %arg20[%c15_128, %c0_129] : memref<96x8xf32, #tpu.memory_space<vmem>>, vector<64x4xf32>
    %166 = vector.broadcast %0 : vector<64x1xf32> to vector<64x4xf32>
    %167 = arith.mulf %165, %166 : vector<64x4xf32>
    %c0_130 = arith.constant 0 : index
    %c12_131 = arith.constant 12 : index
    %168 = vector.load %arg21[%c0_130, %c12_131] : memref<64x72xf32, #tpu.memory_space<vmem>>, vector<64x4xf32>
    tpu.vector_store %arg21[%c0_130, %c12_131], %167 {strides = array<i32>} : memref<64x72xf32, #tpu.memory_space<vmem>>, vector<64x4xf32>,
    %c16_132 = arith.constant 16 : index
    %c0_133 = arith.constant 0 : index
    %169 = vector.load %arg20[%c16_132, %c0_133] : memref<96x8xf32, #tpu.memory_space<vmem>>, vector<64x4xf32>
    %c0_134 = arith.constant 0 : index
    %c16_135 = arith.constant 16 : index
    %170 = vector.load %arg21[%c0_134, %c16_135] : memref<64x72xf32, #tpu.memory_space<vmem>>, vector<64x4xf32>
    tpu.vector_store %arg21[%c0_134, %c16_135], %169 {strides = array<i32>} : memref<64x72xf32, #tpu.memory_space<vmem>>, vector<64x4xf32>,
    %c17_136 = arith.constant 17 : index
    %c0_137 = arith.constant 0 : index
    %171 = vector.load %arg20[%c17_136, %c0_137] : memref<96x8xf32, #tpu.memory_space<vmem>>, vector<64x4xf32>
    %172 = vector.broadcast %1 : vector<64x1xf32> to vector<64x4xf32>
    %173 = arith.mulf %171, %172 : vector<64x4xf32>
    %c0_138 = arith.constant 0 : index
    %c20_139 = arith.constant 20 : index
    %174 = vector.load %arg21[%c0_138, %c20_139] : memref<64x72xf32, #tpu.memory_space<vmem>>, vector<64x4xf32>
    tpu.vector_store %arg21[%c0_138, %c20_139], %173 {strides = array<i32>} : memref<64x72xf32, #tpu.memory_space<vmem>>, vector<64x4xf32>,
    %c23_140 = arith.constant 23 : index
    %c0_141 = arith.constant 0 : index
    %175 = vector.load %arg20[%c23_140, %c0_141] : memref<96x8xf32, #tpu.memory_space<vmem>>, vector<64x4xf32>
    %176 = vector.broadcast %0 : vector<64x1xf32> to vector<64x4xf32>
    %177 = arith.mulf %175, %176 : vector<64x4xf32>
    %c0_142 = arith.constant 0 : index
    %c24_143 = arith.constant 24 : index
    %178 = vector.load %arg21[%c0_142, %c24_143] : memref<64x72xf32, #tpu.memory_space<vmem>>, vector<64x4xf32>
    tpu.vector_store %arg21[%c0_142, %c24_143], %177 {strides = array<i32>} : memref<64x72xf32, #tpu.memory_space<vmem>>, vector<64x4xf32>,
    %c24_144 = arith.constant 24 : index
    %c0_145 = arith.constant 0 : index
    %179 = vector.load %arg20[%c24_144, %c0_145] : memref<96x8xf32, #tpu.memory_space<vmem>>, vector<64x4xf32>
    %c0_146 = arith.constant 0 : index
    %c28_147 = arith.constant 28 : index
    %180 = vector.load %arg21[%c0_146, %c28_147] : memref<64x72xf32, #tpu.memory_space<vmem>>, vector<64x4xf32>
    tpu.vector_store %arg21[%c0_146, %c28_147], %179 {strides = array<i32>} : memref<64x72xf32, #tpu.memory_space<vmem>>, vector<64x4xf32>,
    %c25_148 = arith.constant 25 : index
    %c0_149 = arith.constant 0 : index
    %181 = vector.load %arg20[%c25_148, %c0_149] : memref<96x8xf32, #tpu.memory_space<vmem>>, vector<64x4xf32>
    %182 = vector.broadcast %1 : vector<64x1xf32> to vector<64x4xf32>
    %183 = arith.mulf %181, %182 : vector<64x4xf32>
    %c0_150 = arith.constant 0 : index
    %c32_151 = arith.constant 32 : index
    %184 = vector.load %arg21[%c0_150, %c32_151] : memref<64x72xf32, #tpu.memory_space<vmem>>, vector<64x4xf32>
    tpu.vector_store %arg21[%c0_150, %c32_151], %183 {strides = array<i32>} : memref<64x72xf32, #tpu.memory_space<vmem>>, vector<64x4xf32>,
    %c0_152 = arith.constant 0 : index
    %c0_153 = arith.constant 0 : index
    %185 = vector.load %arg21[%c0_152, %c0_153] : memref<64x72xf32, #tpu.memory_space<vmem>>, vector<64x36xf32>
    %186 = arith.truncf %185 : vector<64x36xf32> to vector<64x36xbf16>
    %c0_154 = arith.constant 0 : index
    %c0_155 = arith.constant 0 : index
    %187 = vector.load %arg8[%c0_154, %c0_155] : memref<36x8xbf16, #tpu.memory_space<vmem>>, vector<36x8xbf16>
    %cst_156 = arith.constant dense<0.000000e+00> : vector<64x8xf32>
    %188 = tpu.matmul %186, %187, %cst_156 {dimension_numbers = #tpu.dot_dimension_numbers<[1], [0], [0], [1], [0, 0, 1, 1], [], []>} : vector<64x36xbf16>, vector<36x8xbf16>, vector<64x8xf32> -> vector<64x8xf32>
    %cst_157 = arith.constant dense<0.000000e+00> : vector<64xf32>
    %189 = vector.multi_reduction <add>, %188, %cst_157 [1] : vector<64x8xf32> to vector<64xf32>
    %190 = vector.shape_cast %189 : vector<64xf32> to vector<64x1xf32>
    %cst_158 = arith.constant dense<0.000000e+00> : vector<1xf32>
    %191 = vector.multi_reduction <add>, %190, %cst_158 [0] : vector<64x1xf32> to vector<1xf32>
    %192 = vector.shape_cast %191 : vector<1xf32> to vector<1x1xf32>
    %cst_159 = arith.constant 5.120000e+02 : f32
    %193 = vector.broadcast %cst_159 : f32 to vector<1x1xf32>
    %194 = arith.divf %192, %193 : vector<1x1xf32>
    %195 = vector.broadcast %194 : vector<1x1xf32> to vector<64x8xf32>
    %196 = arith.subf %188, %195 : vector<64x8xf32>
    %197 = arith.mulf %196, %196 : vector<64x8xf32>
    %cst_160 = arith.constant dense<0.000000e+00> : vector<64xf32>
    %198 = vector.multi_reduction <add>, %197, %cst_160 [1] : vector<64x8xf32> to vector<64xf32>
    %199 = vector.shape_cast %198 : vector<64xf32> to vector<64x1xf32>
    %cst_161 = arith.constant dense<0.000000e+00> : vector<1xf32>
    %200 = vector.multi_reduction <add>, %199, %cst_161 [0] : vector<64x1xf32> to vector<1xf32>
    %201 = vector.shape_cast %200 : vector<1xf32> to vector<1x1xf32>
    %cst_162 = arith.constant 5.120000e+02 : f32
    %202 = vector.broadcast %cst_162 : f32 to vector<1x1xf32>
    %203 = arith.divf %201, %202 : vector<1x1xf32>
    %cst_163 = arith.constant 9.99999974E-6 : f32
    %204 = vector.broadcast %cst_163 : f32 to vector<1x1xf32>
    %205 = arith.addf %203, %204 : vector<1x1xf32>
    %206 = math.rsqrt %205 : vector<1x1xf32>
    %207 = vector.broadcast %206 : vector<1x1xf32> to vector<64x8xf32>
    %208 = arith.mulf %196, %207 : vector<64x8xf32>
    %c0_164 = arith.constant 0 : index
    %c0_165 = arith.constant 0 : index
    %209 = vector.load %arg9[%c0_164, %c0_165] : memref<1x8xf32, #tpu.memory_space<vmem>>, vector<1x8xf32>
    %210 = vector.broadcast %209 : vector<1x8xf32> to vector<64x8xf32>
    %211 = arith.mulf %208, %210 : vector<64x8xf32>
    %c0_166 = arith.constant 0 : index
    %c0_167 = arith.constant 0 : index
    %212 = vector.load %arg10[%c0_166, %c0_167] : memref<1x8xf32, #tpu.memory_space<vmem>>, vector<1x8xf32>
    %213 = vector.broadcast %212 : vector<1x8xf32> to vector<64x8xf32>
    %214 = arith.addf %211, %213 : vector<64x8xf32>
    %cst_168 = arith.constant 5.000000e-01 : f32
    %215 = vector.broadcast %cst_168 : f32 to vector<64x8xf32>
    %216 = arith.mulf %215, %214 : vector<64x8xf32>
    %cst_169 = arith.constant 0.707106769 : f32
    %217 = vector.broadcast %cst_169 : f32 to vector<64x8xf32>
    %218 = arith.mulf %214, %217 : vector<64x8xf32>
    %219 = math.erf %218 : vector<64x8xf32>
    %cst_170 = arith.constant 1.000000e+00 : f32
    %220 = vector.broadcast %cst_170 : f32 to vector<64x8xf32>
    %221 = arith.addf %220, %219 : vector<64x8xf32>
    %222 = arith.mulf %216, %221 : vector<64x8xf32>
    %c16_171 = arith.constant 16 : index
    %c0_172 = arith.constant 0 : index
    %223 = vector.load %arg20[%c16_171, %c0_172] : memref<96x8xf32, #tpu.memory_space<vmem>>, vector<64x8xf32>
    tpu.vector_store %arg20[%c16_171, %c0_172], %222 {strides = array<i32>} : memref<96x8xf32, #tpu.memory_space<vmem>>, vector<64x8xf32>,
    %c7_173 = arith.constant 7 : index
    %c0_174 = arith.constant 0 : index
    %224 = vector.load %arg20[%c7_173, %c0_174] : memref<96x8xf32, #tpu.memory_space<vmem>>, vector<64x8xf32>
    %225 = vector.broadcast %0 : vector<64x1xf32> to vector<64x8xf32>
    %226 = arith.mulf %224, %225 : vector<64x8xf32>
    %c0_175 = arith.constant 0 : index
    %c0_176 = arith.constant 0 : index
    %227 = vector.load %arg21[%c0_175, %c0_176] : memref<64x72xf32, #tpu.memory_space<vmem>>, vector<64x8xf32>
    tpu.vector_store %arg21[%c0_175, %c0_176], %226 {strides = array<i32>} : memref<64x72xf32, #tpu.memory_space<vmem>>, vector<64x8xf32>,
    %c8_177 = arith.constant 8 : index
    %c0_178 = arith.constant 0 : index
    %228 = vector.load %arg20[%c8_177, %c0_178] : memref<96x8xf32, #tpu.memory_space<vmem>>, vector<64x8xf32>
    %c0_179 = arith.constant 0 : index
    %c8_180 = arith.constant 8 : index
    %229 = vector.load %arg21[%c0_179, %c8_180] : memref<64x72xf32, #tpu.memory_space<vmem>>, vector<64x8xf32>
    tpu.vector_store %arg21[%c0_179, %c8_180], %228 {strides = array<i32>} : memref<64x72xf32, #tpu.memory_space<vmem>>, vector<64x8xf32>,
    %c9_181 = arith.constant 9 : index
    %c0_182 = arith.constant 0 : index
    %230 = vector.load %arg20[%c9_181, %c0_182] : memref<96x8xf32, #tpu.memory_space<vmem>>, vector<64x8xf32>
    %231 = vector.broadcast %1 : vector<64x1xf32> to vector<64x8xf32>
    %232 = arith.mulf %230, %231 : vector<64x8xf32>
    %c0_183 = arith.constant 0 : index
    %c16_184 = arith.constant 16 : index
    %233 = vector.load %arg21[%c0_183, %c16_184] : memref<64x72xf32, #tpu.memory_space<vmem>>, vector<64x8xf32>
    tpu.vector_store %arg21[%c0_183, %c16_184], %232 {strides = array<i32>} : memref<64x72xf32, #tpu.memory_space<vmem>>, vector<64x8xf32>,
    %c15_185 = arith.constant 15 : index
    %c0_186 = arith.constant 0 : index
    %234 = vector.load %arg20[%c15_185, %c0_186] : memref<96x8xf32, #tpu.memory_space<vmem>>, vector<64x8xf32>
    %235 = vector.broadcast %0 : vector<64x1xf32> to vector<64x8xf32>
    %236 = arith.mulf %234, %235 : vector<64x8xf32>
    %c0_187 = arith.constant 0 : index
    %c24_188 = arith.constant 24 : index
    %237 = vector.load %arg21[%c0_187, %c24_188] : memref<64x72xf32, #tpu.memory_space<vmem>>, vector<64x8xf32>
    tpu.vector_store %arg21[%c0_187, %c24_188], %236 {strides = array<i32>} : memref<64x72xf32, #tpu.memory_space<vmem>>, vector<64x8xf32>,
    %c16_189 = arith.constant 16 : index
    %c0_190 = arith.constant 0 : index
    %238 = vector.load %arg20[%c16_189, %c0_190] : memref<96x8xf32, #tpu.memory_space<vmem>>, vector<64x8xf32>
    %c0_191 = arith.constant 0 : index
    %c32_192 = arith.constant 32 : index
    %239 = vector.load %arg21[%c0_191, %c32_192] : memref<64x72xf32, #tpu.memory_space<vmem>>, vector<64x8xf32>
    tpu.vector_store %arg21[%c0_191, %c32_192], %238 {strides = array<i32>} : memref<64x72xf32, #tpu.memory_space<vmem>>, vector<64x8xf32>,
    %c17_193 = arith.constant 17 : index
    %c0_194 = arith.constant 0 : index
    %240 = vector.load %arg20[%c17_193, %c0_194] : memref<96x8xf32, #tpu.memory_space<vmem>>, vector<64x8xf32>
    %241 = vector.broadcast %1 : vector<64x1xf32> to vector<64x8xf32>
    %242 = arith.mulf %240, %241 : vector<64x8xf32>
    %c0_195 = arith.constant 0 : index
    %c40 = arith.constant 40 : index
    %243 = vector.load %arg21[%c0_195, %c40] : memref<64x72xf32, #tpu.memory_space<vmem>>, vector<64x8xf32>
    tpu.vector_store %arg21[%c0_195, %c40], %242 {strides = array<i32>} : memref<64x72xf32, #tpu.memory_space<vmem>>, vector<64x8xf32>,
    %c23_196 = arith.constant 23 : index
    %c0_197 = arith.constant 0 : index
    %244 = vector.load %arg20[%c23_196, %c0_197] : memref<96x8xf32, #tpu.memory_space<vmem>>, vector<64x8xf32>
    %245 = vector.broadcast %0 : vector<64x1xf32> to vector<64x8xf32>
    %246 = arith.mulf %244, %245 : vector<64x8xf32>
    %c0_198 = arith.constant 0 : index
    %c48 = arith.constant 48 : index
    %247 = vector.load %arg21[%c0_198, %c48] : memref<64x72xf32, #tpu.memory_space<vmem>>, vector<64x8xf32>
    tpu.vector_store %arg21[%c0_198, %c48], %246 {strides = array<i32>} : memref<64x72xf32, #tpu.memory_space<vmem>>, vector<64x8xf32>,
    %c24_199 = arith.constant 24 : index
    %c0_200 = arith.constant 0 : index
    %248 = vector.load %arg20[%c24_199, %c0_200] : memref<96x8xf32, #tpu.memory_space<vmem>>, vector<64x8xf32>
    %c0_201 = arith.constant 0 : index
    %c56 = arith.constant 56 : index
    %249 = vector.load %arg21[%c0_201, %c56] : memref<64x72xf32, #tpu.memory_space<vmem>>, vector<64x8xf32>
    tpu.vector_store %arg21[%c0_201, %c56], %248 {strides = array<i32>} : memref<64x72xf32, #tpu.memory_space<vmem>>, vector<64x8xf32>,
    %c25_202 = arith.constant 25 : index
    %c0_203 = arith.constant 0 : index
    %250 = vector.load %arg20[%c25_202, %c0_203] : memref<96x8xf32, #tpu.memory_space<vmem>>, vector<64x8xf32>
    %251 = vector.broadcast %1 : vector<64x1xf32> to vector<64x8xf32>
    %252 = arith.mulf %250, %251 : vector<64x8xf32>
    %c0_204 = arith.constant 0 : index
    %c64 = arith.constant 64 : index
    %253 = vector.load %arg21[%c0_204, %c64] : memref<64x72xf32, #tpu.memory_space<vmem>>, vector<64x8xf32>
    tpu.vector_store %arg21[%c0_204, %c64], %252 {strides = array<i32>} : memref<64x72xf32, #tpu.memory_space<vmem>>, vector<64x8xf32>,
    %c0_205 = arith.constant 0 : index
    %c0_206 = arith.constant 0 : index
    %254 = vector.load %arg21[%c0_205, %c0_206] : memref<64x72xf32, #tpu.memory_space<vmem>>, vector<64x72xf32>
    %255 = arith.truncf %254 : vector<64x72xf32> to vector<64x72xbf16>
    %c0_207 = arith.constant 0 : index
    %c0_208 = arith.constant 0 : index
    %256 = vector.load %arg11[%c0_207, %c0_208] : memref<72x8xbf16, #tpu.memory_space<vmem>>, vector<72x8xbf16>
    %cst_209 = arith.constant dense<0.000000e+00> : vector<64x8xf32>
    %257 = tpu.matmul %255, %256, %cst_209 {dimension_numbers = #tpu.dot_dimension_numbers<[1], [0], [0], [1], [0, 0, 1, 1], [], []>} : vector<64x72xbf16>, vector<72x8xbf16>, vector<64x8xf32> -> vector<64x8xf32>
    %cst_210 = arith.constant dense<0.000000e+00> : vector<64xf32>
    %258 = vector.multi_reduction <add>, %257, %cst_210 [1] : vector<64x8xf32> to vector<64xf32>
    %259 = vector.shape_cast %258 : vector<64xf32> to vector<64x1xf32>
    %cst_211 = arith.constant dense<0.000000e+00> : vector<1xf32>
    %260 = vector.multi_reduction <add>, %259, %cst_211 [0] : vector<64x1xf32> to vector<1xf32>
    %261 = vector.shape_cast %260 : vector<1xf32> to vector<1x1xf32>
    %cst_212 = arith.constant 5.120000e+02 : f32
    %262 = vector.broadcast %cst_212 : f32 to vector<1x1xf32>
    %263 = arith.divf %261, %262 : vector<1x1xf32>
    %264 = vector.broadcast %263 : vector<1x1xf32> to vector<64x8xf32>
    %265 = arith.subf %257, %264 : vector<64x8xf32>
    %266 = arith.mulf %265, %265 : vector<64x8xf32>
    %cst_213 = arith.constant dense<0.000000e+00> : vector<64xf32>
    %267 = vector.multi_reduction <add>, %266, %cst_213 [1] : vector<64x8xf32> to vector<64xf32>
    %268 = vector.shape_cast %267 : vector<64xf32> to vector<64x1xf32>
    %cst_214 = arith.constant dense<0.000000e+00> : vector<1xf32>
    %269 = vector.multi_reduction <add>, %268, %cst_214 [0] : vector<64x1xf32> to vector<1xf32>
    %270 = vector.shape_cast %269 : vector<1xf32> to vector<1x1xf32>
    %cst_215 = arith.constant 5.120000e+02 : f32
    %271 = vector.broadcast %cst_215 : f32 to vector<1x1xf32>
    %272 = arith.divf %270, %271 : vector<1x1xf32>
    %cst_216 = arith.constant 9.99999974E-6 : f32
    %273 = vector.broadcast %cst_216 : f32 to vector<1x1xf32>
    %274 = arith.addf %272, %273 : vector<1x1xf32>
    %275 = math.rsqrt %274 : vector<1x1xf32>
    %276 = vector.broadcast %275 : vector<1x1xf32> to vector<64x8xf32>
    %277 = arith.mulf %265, %276 : vector<64x8xf32>
    %c0_217 = arith.constant 0 : index
    %c0_218 = arith.constant 0 : index
    %278 = vector.load %arg12[%c0_217, %c0_218] : memref<1x8xf32, #tpu.memory_space<vmem>>, vector<1x8xf32>
    %279 = vector.broadcast %278 : vector<1x8xf32> to vector<64x8xf32>
    %280 = arith.mulf %277, %279 : vector<64x8xf32>
    %c0_219 = arith.constant 0 : index
    %c0_220 = arith.constant 0 : index
    %281 = vector.load %arg13[%c0_219, %c0_220] : memref<1x8xf32, #tpu.memory_space<vmem>>, vector<1x8xf32>
    %282 = vector.broadcast %281 : vector<1x8xf32> to vector<64x8xf32>
    %283 = arith.addf %280, %282 : vector<64x8xf32>
    %c0_221 = arith.constant 0 : index
    %c0_222 = arith.constant 0 : index
    %284 = vector.load %arg1[%c0_221, %c0_222] : memref<1x32xf32, #tpu.memory_space<vmem>>, vector<1x32xf32>
    %cst_223 = arith.constant 0.000000e+00 : f32
    %285 = vector.broadcast %cst_223 : f32 to vector<1x32xf32>
    %286 = arith.subf %285, %284 : vector<1x32xf32>
    %287 = math.exp %286 : vector<1x32xf32>
    %cst_224 = arith.constant 1.000000e+00 : f32
    %288 = vector.broadcast %cst_224 : f32 to vector<1x32xf32>
    %289 = arith.addf %288, %287 : vector<1x32xf32>
    %cst_225 = arith.constant 1.000000e+00 : f32
    %290 = vector.broadcast %cst_225 : f32 to vector<1x32xf32>
    %291 = arith.divf %290, %289 : vector<1x32xf32>
    %292 = arith.mulf %284, %291 : vector<1x32xf32>
    %293 = arith.truncf %292 : vector<1x32xf32> to vector<1x32xbf16>
    %c0_226 = arith.constant 0 : index
    %c0_227 = arith.constant 0 : index
    %294 = vector.load %arg14[%c0_226, %c0_227] : memref<32x8xbf16, #tpu.memory_space<vmem>>, vector<32x8xbf16>
    %cst_228 = arith.constant dense<0.000000e+00> : vector<1x8xf32>
    %295 = tpu.matmul %293, %294, %cst_228 {dimension_numbers = #tpu.dot_dimension_numbers<[1], [0], [0], [1], [0, 0, 1, 1], [], []>} : vector<1x32xbf16>, vector<32x8xbf16>, vector<1x8xf32> -> vector<1x8xf32>
    %c0_229 = arith.constant 0 : index
    %c0_230 = arith.constant 0 : index
    %296 = vector.load %arg15[%c0_229, %c0_230] : memref<1x8xf32, #tpu.memory_space<vmem>>, vector<1x8xf32>
    %297 = arith.addf %295, %296 : vector<1x8xf32>
    %c0_231 = arith.constant 0 : index
    %c0_232 = arith.constant 0 : index
    %298 = vector.load %arg16[%c0_231, %c0_232] : memref<64x8xf32, #tpu.memory_space<vmem>>, vector<64x8xf32>
    %299 = vector.broadcast %297 : vector<1x8xf32> to vector<64x8xf32>
    %300 = arith.mulf %298, %299 : vector<64x8xf32>
    %cst_233 = arith.constant dense<0.000000e+00> : vector<64xf32>
    %301 = vector.multi_reduction <add>, %300, %cst_233 [1] : vector<64x8xf32> to vector<64xf32>
    %302 = vector.shape_cast %301 : vector<64xf32> to vector<64x1xf32>
    %303 = vector.broadcast %302 : vector<64x1xf32> to vector<64x8xf32>
    %304 = arith.addf %283, %303 : vector<64x8xf32>
    %c0_234 = arith.constant 0 : index
    %c0_235 = arith.constant 0 : index
    %305 = vector.load %arg19[%c0_234, %c0_235] : memref<64x8xf32, #tpu.memory_space<vmem>>, vector<64x8xf32>
    tpu.vector_store %arg19[%c0_234, %c0_235], %304 {strides = array<i32>} : memref<64x8xf32, #tpu.memory_space<vmem>>, vector<64x8xf32>,
    return
  }
}

</mosaic_0001>

<bundles_post_ra>
// kernel: down_forward.1
= control target key start
LH: loop header
LB: loop body
LE: loop exit
PB: predicated region body
PF: predicated region fallthrough
CT: control target
= control target key end

     0   :  { %vm79_vm0 = vcmask 64512   ;;  %v3595_v0 = vmov 0   ;;  %v3596_v3 = vmov 0.0   ;;  %vm151_vm1 = vcmask 31744   ;;  %s3597_s28 = smov 4   ;;  %s3600_s29 = smov 8   ;;  %s5305_s18 = inlined_call_operand.vmem [shape: f32[64,1], index: 18, kind: input, shape index: {}]   ;;  %s5306_s17 = inlined_call_operand.vmem [shape: f32[64,1], index: 17, kind: input, shape index: {}]   ;;  %s5307_s0 = inlined_call_operand.vmem [shape: f32[4,64,4], index: 0, kind: input, shape index: {}]   ;;  %s5308_s2 = inlined_call_operand.vmem [shape: bf16[36,4], index: 2, kind: input, shape index: {}]   ;;  %s5309_s3 = inlined_call_operand.vmem [shape: f32[1,4], index: 3, kind: input, shape index: {}]   ;;  %s5310_s4 = inlined_call_operand.vmem [shape: f32[1,4], index: 4, kind: input, shape index: {}]   ;;  %s5311_s5 = inlined_call_operand.vmem [shape: bf16[36,4], index: 5, kind: input, shape index: {}]   ;;  %s5312_s6 = inlined_call_operand.vmem [shape: f32[1,4], index: 6, kind: input, shape index: {}]   ;;  %s5313_s7 = inlined_call_operand.vmem [shape: f32[1,4], index: 7, kind: input, shape index: {}]   ;;  %s5314_s8 = inlined_call_operand.vmem [shape: bf16[36,8], index: 8, kind: input, shape index: {}]   ;;  %s5315_s9 = inlined_call_operand.vmem [shape: f32[1,8], index: 9, kind: input, shape index: {}]   ;;  %s5316_s10 = inlined_call_operand.vmem [shape: f32[1,8], index: 10, kind: input, shape index: {}]   ;;  %s5317_s11 = inlined_call_operand.vmem [shape: bf16[72,8], index: 11, kind: input, shape index: {}]   ;;  %s5318_s1 = inlined_call_operand.vmem [shape: f32[1,32], index: 1, kind: input, shape index: {}]   ;;  %s5319_s14 = inlined_call_operand.vmem [shape: bf16[32,8], index: 14, kind: input, shape index: {}]   ;;  %s5320_s15 = inlined_call_operand.vmem [shape: f32[1,8], index: 15, kind: input, shape index: {}]   ;;  %s5321_s16 = inlined_call_operand.vmem [shape: f32[64,8], index: 16, kind: input, shape index: {}]   ;;  %s5322_s12 = inlined_call_operand.vmem [shape: f32[1,8], index: 12, kind: input, shape index: {}]   ;;  %s5323_s13 = inlined_call_operand.vmem [shape: f32[1,8], index: 13, kind: input, shape index: {}]   ;;  %s5324_s19 = inlined_call_operand.vmem [shape: f32[64,8], index: 19, kind: output, shape index: {}]  }
   0x1   :  { %5329 = sst [smem:[#allocation4_spill]] %s5305_s18  ;;  %3518 = vset.pattern.permute.xlu1 %v3595_v0  ;;  %3517 = vset.pattern.permute.xlu0 %v3595_v0  ;;  %81 = vst.msk [vmem:[#allocation2 + $0x8] sm:$0xff] %vm79_vm0, %v3596_v3  ;;  %80 = vst.msk [vmem:[#allocation2] sm:$0xff] %vm79_vm0, %v3596_v3  ;;  %s3601_s18 = smov 12   ;;  %vm741_vm2 = vcmask 1041408   ;;  %vm264_vm3 = vcmask 64544  }
   0x2   :  { %5330 = sst [smem:[#allocation5_spill]] %s5306_s17  ;;  %82 = vst.msk [vmem:[#allocation2 + $0x10] sm:$0xff] %vm79_vm0, %v3596_v3  ;;  %83 = vst.msk [vmem:[#allocation2 + $0x18] sm:$0xff] %vm79_vm0, %v3596_v3  ;;  %s3602_s21 = smov 20   ;;  %vm361_vm4 = vcmask 97344   ;;  %vm418_vm5 = vcmask 130144  }
   0x3   :  { %5331 = sst [smem:[#allocation6_spill]] %s5307_s0  ;;  %84 = vst.msk [vmem:[#allocation2 + $0x20] sm:$0xff] %vm79_vm0, %v3596_v3  ;;  %85 = vst.msk [vmem:[#allocation2 + $0x28] sm:$0xff] %vm79_vm0, %v3596_v3  ;;  %s3603_s25 = smov 24   ;;  %vm467_vm6 = vcmask 162944   ;;  %vm524_vm7 = vcmask 195744  }
   0x4   :  { %5332 = sst [smem:[#allocation7_spill]] %s5308_s2  ;;  %86 = vst.msk [vmem:[#allocation2 + $0x30] sm:$0xff] %vm79_vm0, %v3596_v3  ;;  %87 = vst.msk [vmem:[#allocation2 + $0x38] sm:$0xff] %vm79_vm0, %v3596_v3  ;;  %s3604_s27 = smov 32   ;;  %vm581_vm8 = vcmask 228544   ;;  %vm630_vm9 = vcmask 261344  }
   0x5   :  { %s5333_s20 = sld [smem:[#allocation4_spill]]  ;;  %88 = vst.msk [vmem:[#allocation2 + $0x40] sm:$0xff] %vm79_vm0, %v3596_v3  ;;  %89 = vst.msk [vmem:[#allocation2 + $0x48] sm:$0xff] %vm79_vm0, %v3596_v3  ;;  %vm687_vm10 = vcmask 294144   ;;  %vm728_vm11 = vcmask 293888   ;;  %vm2544_vm12 = vcmask 130112  }
   0x6   :  { %s5334_s22 = sld [smem:[#allocation5_spill]]  ;;  %90 = vst.msk [vmem:[#allocation2 + $0x50] sm:$0xff] %vm79_vm0, %v3596_v3  ;;  %91 = vst.msk [vmem:[#allocation2 + $0x58] sm:$0xff] %vm79_vm0, %v3596_v3  ;;  %vm2997_vm13 = vcmask 1043456   ;;  %vm2601_vm14 = vcmask 195712   ;;  %vm2658_vm15 = vcmask 261312  }
   0x7   :  { %s5335_s30 = sld [smem:[#allocation6_spill]] }
   0x8   :  { %s5336_s0 = sld [smem:[#allocation7_spill]] }
   0xb   :  { %v71_v1 = vld [vmem:[%s5333_s20] sm:$0xff]  ;;  %v72_v4 = vld [vmem:[%s5333_s20 + $0x8] sm:$0xff]  ;;  %v73_v6 = vld [vmem:[%s5333_s20 + $0x10] sm:$0xff] }
   0xc   :  { %v63_v2 = vld [vmem:[%s5334_s22] sm:$0xff]  ;;  %283 = vperm.xlu0 %3517, %v71_v1   ;;  %v64_v5 = vld [vmem:[%s5334_s22 + $0x8] sm:$0xff]  ;;  %v74_v7 = vld [vmem:[%s5333_s20 + $0x18] sm:$0xff] }
   0xd   :  { %170 = vperm.xlu1 %3518, %v63_v2   ;;  %v93_v8 = vld [vmem:[%s5335_s30 + $0x8] sm:$0xff]  ;;  %v92_v13 = vld [vmem:[%s5335_s30] sm:$0xff]  ;;  %v65_v17 = vld [vmem:[%s5334_s22 + $0x10] sm:$0xff] }
   0xe   :  { %v3333_v9 = vld [vmem:[%s5335_s30 + $0x48] sm:$0xff]  ;;  %v3332_v15 = vld [vmem:[%s5335_s30 + $0x40] sm:$0xff]  ;;  %v66_v18 = vld [vmem:[%s5334_s22 + $0x18] sm:$0xff] }
   0xf   :  { %v110_v10 = vmax.f32 %v93_v8, %v3333_v9  ;;  %v3341_v11 = vld [vmem:[%s5335_s30 + $0x88] sm:$0xff]  ;;  %v3340_v16 = vld [vmem:[%s5335_s30 + $0x80] sm:$0xff]  ;;  %v109_v19 = vmax.f32 %v92_v13, %v3332_v15  ;;  %v94_v21 = vld [vmem:[%s5335_s30 + $0x10] sm:$0xff] }
  0x10   :  { %288 = vperm.xlu0 %3517, %v72_v4   ;;  %v3349_v12 = vld [vmem:[%s5335_s30 + $0xc8] sm:$0xff]  ;;  %v3348_v20 = vld [vmem:[%s5335_s30 + $0xc0] sm:$0xff]  ;;  %v3334_v22 = vld [vmem:[%s5335_s30 + $0x50] sm:$0xff] }
  0x11   :  { %175 = vperm.xlu1 %3518, %v64_v5   ;;  %v136_v14 = vmax.f32 %v3341_v11, %v3349_v12  ;;  %v135_v24 = vmax.f32 %v3340_v16, %v3348_v20  ;;  %v111_v25 = vmax.f32 %v94_v21, %v3334_v22  ;;  %v3342_v26 = vld [vmem:[%s5335_s30 + $0x90] sm:$0xff]  ;;  %v95_v28 = vld [vmem:[%s5335_s30 + $0x18] sm:$0xff]  ;;  %v96_v36 = vld [vmem:[%s5335_s30 + $0x20] sm:$0xff] }
  0x12   :  { %v3350_v27 = vld [vmem:[%s5335_s30 + $0xd0] sm:$0xff]  ;;  %v3335_v30 = vld [vmem:[%s5335_s30 + $0x58] sm:$0xff]  ;;  %v3336_v37 = vld [vmem:[%s5335_s30 + $0x60] sm:$0xff] }
  0x13   :  { %v3788_v23 = vmax.f32 %v110_v10, %v136_v14  ;;  %v137_v29 = vmax.f32 %v3342_v26, %v3350_v27  ;;  %v3343_v31 = vld [vmem:[%s5335_s30 + $0x98] sm:$0xff]  ;;  %v3810_v33 = vmax.f32 %v109_v19, %v135_v24  ;;  %v112_v34 = vmax.f32 %v95_v28, %v3335_v30  ;;  %v3344_v38 = vld [vmem:[%s5335_s30 + $0xa0] sm:$0xff]  ;;  %v76_v40 = vld [vmem:[%s5333_s20 + $0x28] sm:$0xff] }
  0x14   :  { %293 = vperm.xlu0 %3517, %v73_v6   ;;  %v3351_v32 = vld [vmem:[%s5335_s30 + $0xd8] sm:$0xff]  ;;  %v75_v39 = vld [vmem:[%s5333_s20 + $0x20] sm:$0xff]  ;;  %v113_v42 = vmax.f32 %v96_v36, %v3336_v37  ;;  %v97_v44 = vld [vmem:[%s5335_s30 + $0x28] sm:$0xff] }
  0x15   :  { %298 = vperm.xlu1 %3518, %v74_v7   ;;  %153 = vst.msk [vmem:[#allocation2 + $0x18] sm:$0xff] %vm151_vm1, %v3788_v23  ;;  %v138_v35 = vmax.f32 %v3343_v31, %v3351_v32  ;;  %v3827_v41 = vmax.f32 %v111_v25, %v137_v29  ;;  %v3352_v43 = vld [vmem:[%s5335_s30 + $0xe0] sm:$0xff]  ;;  %v3337_v45 = vld [vmem:[%s5335_s30 + $0x68] sm:$0xff]  ;;  %152 = vst.msk [vmem:[#allocation2 + $0x10] sm:$0xff] %vm151_vm1, %v3810_v33 }
  0x16   :  { %v139_v47 = vmax.f32 %v3344_v38, %v3352_v43  ;;  %v114_v48 = vmax.f32 %v97_v44, %v3337_v45  ;;  %v3345_v49 = vld [vmem:[%s5335_s30 + $0xa8] sm:$0xff]  ;;  %v98_v51 = vld [vmem:[%s5335_s30 + $0x30] sm:$0xff]  ;;  %v99_v59 = vld [vmem:[%s5335_s30 + $0x38] sm:$0xff] }
  0x17   :  { %v3840_v46 = vmax.f32 %v112_v34, %v138_v35  ;;  %v3353_v50 = vld [vmem:[%s5335_s30 + $0xe8] sm:$0xff]  ;;  %154 = vst.msk [vmem:[#allocation2 + $0x20] sm:$0xff] %vm151_vm1, %v3827_v41  ;;  %v3338_v53 = vld [vmem:[%s5335_s30 + $0x70] sm:$0xff]  ;;  %v3339_v60 = vld [vmem:[%s5335_s30 + $0x78] sm:$0xff] }
  0x18   :  { %180 = vperm.xlu0 %3517, %v65_v17   ;;  %v140_v52 = vmax.f32 %v3345_v49, %v3353_v50  ;;  %v3346_v54 = vld [vmem:[%s5335_s30 + $0xb0] sm:$0xff]  ;;  %v3864_v56 = vmax.f32 %v113_v42, %v139_v47  ;;  %v115_v57 = vmax.f32 %v98_v51, %v3338_v53  ;;  %v3347_v61 = vld [vmem:[%s5335_s30 + $0xb8] sm:$0xff]  ;;  %v116_v63 = vmax.f32 %v99_v59, %v3339_v60  ;;  %v67_v4 = vld [vmem:[%s5334_s22 + $0x20] sm:$0xff] }
  0x19   :  { %185 = vperm.xlu1 %3518, %v66_v18   ;;  %v3354_v55 = vld [vmem:[%s5335_s30 + $0xf0] sm:$0xff]  ;;  %155 = vst.msk [vmem:[#allocation2 + $0x28] sm:$0xff] %vm151_vm1, %v3840_v46  ;;  %v3355_v0 = vld [vmem:[%s5335_s30 + $0xf8] sm:$0xff]  ;;  %v68_v5 = vld [vmem:[%s5334_s22 + $0x28] sm:$0xff]  ;;  %s3607_s30 = smov 48  }
  0x1a   :  { %v141_v58 = vmax.f32 %v3346_v54, %v3354_v55  ;;  %v3875_v62 = vmax.f32 %v114_v48, %v140_v52  ;;  %156 = vst.msk [vmem:[#allocation2 + $0x30] sm:$0xff] %vm151_vm1, %v3864_v56  ;;  %v142_v2 = vmax.f32 %v3347_v61, %v3355_v0  ;;  %v77_v7 = vld [vmem:[%s5333_s20 + $0x30] sm:$0xff]  ;;  %v78_v8 = vld [vmem:[%s5333_s20 + $0x38] sm:$0xff]  ;;  %v224_v11 = vld [vmem:[#allocation2 + $0x8] sm:$0xff]  ;;  %s3598_s20 = smov 16  }
  0x1b   :  { %v69_v9 = vld [vmem:[%s5334_s22 + $0x30] sm:$0xff]  ;;  %v70_v10 = vld [vmem:[%s5334_s22 + $0x38] sm:$0xff]  ;;  %s3599_s22 = smov 28   ;;  %v160_v21 = vld [vmem:[#allocation2 + $0x7] sm:$0xff] }
  0x1c   :  { %303 = vperm.xlu0 %3517, %v75_v39   ;;  %v3882_v1 = vmax.f32 %v115_v57, %v141_v58  ;;  %157 = vst.msk [vmem:[#allocation2 + $0x38] sm:$0xff] %vm151_vm1, %v3875_v62  ;;  %v3894_v6 = vmax.f32 %v116_v63, %v142_v2  ;;  %v225_v12 = vld [vmem:[#allocation2 + $0x10] sm:$0xff]  ;;  %v226_v13 = vld [vmem:[#allocation2 + $0x18] sm:$0xff] }
  0x1d   :  { %308 = vperm.xlu1 %3518, %v76_v40   ;;  %v273_v20 = vld [vmem:[#allocation2 + $0x9] sm:$0xff]  ;;  %v274_v29 = vld [vmem:[#allocation2 + $0x11] sm:$0xff] }
  0x1e   :  { %158 = vst.msk [vmem:[#allocation2 + $0x40] sm:$0xff] %vm151_vm1, %v3882_v1  ;;  %159 = vst.msk [vmem:[#allocation2 + $0x48] sm:$0xff] %vm151_vm1, %v3894_v6  ;;  %v227_v14 = vld [vmem:[#allocation2 + $0x20] sm:$0xff]  ;;  %v370_v31 = vld [vmem:[#allocation2 + $0xf] sm:$0xff] }
  0x1f   :  { %v3960_v36 = vld [vmem:[#allocation2 + $0x19] sm:$0xff] }
  0x20   :  { %190 = vperm.xlu0 %3517, %v67_v4   ;;  %v430_v15 = vld [vmem:[#allocation2 + $0x28] sm:$0xff]  ;;  %v371_v43 = vld [vmem:[#allocation2 + $0x17] sm:$0xff]  ;;  %v372_v47 = vld [vmem:[#allocation2 + $0x1f] sm:$0xff] }
  0x21   :  { %195 = vperm.xlu1 %3518, %v68_v5   ;;  %v593_v16 = vld [vmem:[#allocation2 + $0x30] sm:$0xff]  ;;  %v3962_v37 = vld [vmem:[#allocation2 + $0x21] sm:$0xff] }
  0x22   :  { %v373_v48 = vld [vmem:[#allocation2 + $0x27] sm:$0xff]  ;;  %v3998_v60 = vld [vmem:[#allocation2 + $0x2f] sm:$0xff] }
  0x23   :  { %v3924_v17 = vld [vmem:[#allocation2 + $0x38] sm:$0xff]  ;;  %v4000_v61 = vld [vmem:[#allocation2 + $0x29] sm:$0xff] }
  0x24   :  { %313 = vperm.xlu0 %3517, %v77_v7  }
  0x25   :  { %318 = vperm.xlu1 %3518, %v78_v8   ;;  %v3926_v18 = vld [vmem:[#allocation2 + $0x40] sm:$0xff]  ;;  %v3935_v19 = vld [vmem:[#allocation2 + $0x48] sm:$0xff]  ;;  %v3519_v8 = vld [vmem:[%s5336_s0 + $0x10] ss:$0 sps:$4 sm:$0x33]  }
  0x26   :  { %3498 = vmatprep.subr.msk.bf16.mxu0 %vm741_vm2, %v3519_v8 }
  0x28   :  { %200 = vperm.xlu0 %3517, %v69_v9  }
  0x29   :  { %205 = vperm.xlu1 %3518, %v70_v10  }
  0x2c   :  { %240 = vrot.lane.b32.xlu0 %v224_v11, %s3597_s28 }
  0x2d   :  { %242 = vrot.lane.b32.xlu1 %v225_v12, %s3597_s28 }
  0x30   :  { %244 = vrot.lane.b32.xlu0 %v226_v13, %s3597_s28 }
  0x31   :  { %246 = vrot.lane.b32.xlu1 %v227_v14, %s3597_s28 }
  0x34   :  { %443 = vrot.lane.b32.xlu0 %v225_v12, %s3598_s20 }
  0x35   :  { %445 = vrot.lane.b32.xlu1 %v226_v13, %s3598_s20 }
  0x38   :  { %447 = vrot.lane.b32.xlu0 %v227_v14, %s3598_s20 }
  0x39   :  { %449 = vrot.lane.b32.xlu1 %v430_v15, %s3598_s20 }
  0x3c   :  { %606 = vrot.lane.b32.xlu0 %v226_v13, %s3599_s22  ;;  %v4028_v13 = vld [vmem:[#allocation2 + $0x37] sm:$0xff] }
  0x3d   :  { %608 = vrot.lane.b32.xlu1 %v227_v14, %s3599_s22  ;;  %v4030_v14 = vld [vmem:[#allocation2 + $0x3f] sm:$0xff] }
  0x40   :  { %610 = vrot.lane.b32.xlu0 %v430_v15, %s3599_s22 }
  0x41   :  { %612 = vrot.lane.b32.xlu1 %v593_v16, %s3599_s22 }
  0x44   :  { %248 = vrot.lane.b32.xlu0 %v430_v15, %s3597_s28 }
  0x45   :  { %250 = vrot.lane.b32.xlu1 %v593_v16, %s3597_s28 }
  0x48   :  { %252 = vrot.lane.b32.xlu0 %v3924_v17, %s3597_s28 }
  0x49   :  { %254 = vrot.lane.b32.xlu1 %v3926_v18, %s3597_s28 }
  0x4c   :  { %451 = vrot.lane.b32.xlu0 %v593_v16, %s3598_s20 }
  0x4d   :  { %453 = vrot.lane.b32.xlu1 %v3924_v17, %s3598_s20 }
  0x50   :  { %455 = vrot.lane.b32.xlu0 %v3926_v18, %s3598_s20 }
  0x51   :  { %457 = vrot.lane.b32.xlu1 %v3935_v19, %s3598_s20 }
  0x87   :  { %v3941_v22 = vpop.permute.xlu0 %283 }
  0x88   :  { %v3943_v24 = vpop.permute.xlu1 %170  ;;  %v321_v25 = vmul.f32 %v3941_v22, %v273_v20  ;;  %v484_v58 = vmul.f32 %v3941_v22, %v274_v29  ;;  %v743_v20 = vsel %vm741_vm2, %v3519_v8, 0 }
  0x89   :  { %v208_v26 = vmul.f32 %v3943_v24, %v160_v21  ;;  %v378_v44 = vmul.f32 %v370_v31, %v3943_v24  ;;  %v541_v11 = vmul.f32 %v371_v43, %v3943_v24  ;;  %v3520_v21 = vld [vmem:[%s5336_s0 + $0x8] sm:$0xff]   ;;  %3431 = vmatpush3.bf16.msra.mxu0 %v743_v20 }
  0x8a   :  { %337 = vrot.lane.b32.xlu0 %v321_v25, %s3600_s29  ;;  %3432 = vmatprep.subr.bf16.mxu0 %v3520_v21 }
  0x8b   :  { %v3948_v27 = vpop.permute.xlu0 %288  ;;  %216 = vst.msk [vmem:[#allocation3] sm:$0xff] %vm151_vm1, %v208_v26 }
  0x8c   :  { %v3950_v28 = vpop.permute.xlu1 %175  ;;  %v322_v30 = vmul.f32 %v3948_v27, %v274_v29  ;;  %v485_v59 = vmul.f32 %v3948_v27, %v3960_v36 }
  0x8d   :  { %v209_v32 = vmul.f32 %v370_v31, %v3950_v28  ;;  %v379_v45 = vmul.f32 %v371_v43, %v3950_v28  ;;  %v542_v12 = vmul.f32 %v372_v47, %v3950_v28  ;;  %v3521_v31 = vld [vmem:[%s5336_s0] sm:$0xff]   ;;  %3433 = vmatpush3.bf16.msra.mxu0 %v3520_v21 }
  0x8e   :  { %339 = vrot.lane.b32.xlu1 %v322_v30, %s3600_s29  ;;  %3434 = vmatprep.subr.bf16.mxu0 %v3521_v31 }
  0x8f   :  { %v3956_v34 = vpop.permute.xlu0 %293  ;;  %217 = vst.msk [vmem:[#allocation3 + $0x8] sm:$0xff] %vm151_vm1, %v209_v32 }
  0x90   :  { %v3958_v35 = vpop.permute.xlu1 %298  ;;  %v323_v38 = vmul.f32 %v3956_v34, %v3960_v36  ;;  %v486_v5 = vmul.f32 %v3956_v34, %v3962_v37 }
  0x91   :  { %v324_v39 = vmul.f32 %v3958_v35, %v3962_v37  ;;  %v487_v7 = vmul.f32 %v4000_v61, %v3958_v35  ;;  %3435 = vmatpush3.bf16.msra.mxu0 %v3521_v31 }
  0x92   :  { %341 = vrot.lane.b32.xlu0 %v323_v38, %s3600_s29 }
  0x93   :  { %343 = vrot.lane.b32.xlu1 %v324_v39, %s3600_s29  ;;  %v3971_v40 = vpop.permute.xlu0 %180  ;;  %v647_v39 = vmul.f32 %v3941_v22, %v3960_v36  ;;  %v649_v36 = vmul.f32 %v4000_v61, %v3956_v34 }
  0x94   :  { %v3973_v42 = vpop.permute.xlu1 %185  ;;  %v210_v49 = vmul.f32 %v371_v43, %v3971_v40  ;;  %v380_v53 = vmul.f32 %v372_v47, %v3971_v40  ;;  %v543_v29 = vmul.f32 %v373_v48, %v3971_v40  ;;  %v648_v43 = vmul.f32 %v3948_v27, %v3962_v37 }
  0x95   :  { %v211_v50 = vmul.f32 %v372_v47, %v3973_v42  ;;  %v381_v54 = vmul.f32 %v373_v48, %v3973_v42  ;;  %v544_v30 = vmul.f32 %v3998_v60, %v3973_v42 }
  0x96   :  { %394 = vrot.lane.b32.xlu0 %v378_v44, %s3601_s18  ;;  %218 = vst.msk [vmem:[#allocation3 + $0x10] sm:$0xff] %vm151_vm1, %v210_v49  ;;  %v642_v44 = vld [vmem:[#allocation2 + $0x31] sm:$0xff] }
  0x97   :  { %396 = vrot.lane.b32.xlu1 %v379_v45, %s3601_s18  ;;  %v3981_v51 = vpop.permute.xlu0 %303  ;;  %219 = vst.msk [vmem:[#allocation3 + $0x18] sm:$0xff] %vm151_vm1, %v211_v50  ;;  %v650_v37 = vmul.f32 %v642_v44, %v3958_v35 }
  0x98   :  { %v3983_v52 = vpop.permute.xlu1 %308  ;;  %v325_v50 = vmul.f32 %v4000_v61, %v3981_v51 }
  0x9a   :  { %398 = vrot.lane.b32.xlu0 %v380_v53, %s3601_s18  ;;  %v326_v53 = vmul.f32 %v642_v44, %v3983_v52 }
  0x9b   :  { %400 = vrot.lane.b32.xlu1 %v381_v54, %s3601_s18  ;;  %v3991_v55 = vpop.permute.xlu0 %190  ;;  %v279_v54 = vld [vmem:[#allocation2 + $0x39] sm:$0xff] }
  0x9c   :  { %v3993_v57 = vpop.permute.xlu1 %195  ;;  %v212_v63 = vmul.f32 %v373_v48, %v3991_v55  ;;  %v382_v8 = vmul.f32 %v3998_v60, %v3991_v55 }
  0x9d   :  { %v213_v0 = vmul.f32 %v3998_v60, %v3993_v57 }
  0x9e   :  { %500 = vrot.lane.b32.xlu0 %v484_v58, %s3602_s21  ;;  %220 = vst.msk [vmem:[#allocation3 + $0x20] sm:$0xff] %vm151_vm1, %v212_v63  ;;  %v280_v58 = vld [vmem:[#allocation2 + $0x41] sm:$0xff] }
  0x9f   :  { %502 = vrot.lane.b32.xlu1 %v485_v59, %s3602_s21  ;;  %v4007_v2 = vpop.permute.xlu0 %313  ;;  %221 = vst.msk [vmem:[#allocation3 + $0x28] sm:$0xff] %vm151_vm1, %v213_v0 }
  0xa0   :  { %v4009_v4 = vpop.permute.xlu1 %318  ;;  %v327_v0 = vmul.f32 %v4007_v2, %v279_v54  ;;  %v490_v31 = vmul.f32 %v4007_v2, %v280_v58 }
  0xa2   :  { %504 = vrot.lane.b32.xlu0 %v486_v5, %s3602_s21  ;;  %v328_v5 = vmul.f32 %v4009_v4, %v280_v58 }
  0xa3   :  { %506 = vrot.lane.b32.xlu1 %v487_v7, %s3602_s21  ;;  %v4022_v9 = vpop.permute.xlu0 %200 }
  0xa4   :  { %v4024_v10 = vpop.permute.xlu1 %205  ;;  %v214_v15 = vmul.f32 %v4028_v13, %v4022_v9  ;;  %v384_v20 = vmul.f32 %v4030_v14, %v4022_v9 }
  0xa5   :  { %v215_v16 = vmul.f32 %v4030_v14, %v4024_v10 }
  0xa6   :  { %557 = vrot.lane.b32.xlu0 %v541_v11, %s3603_s25  ;;  %222 = vst.msk [vmem:[#allocation3 + $0x30] sm:$0xff] %vm151_vm1, %v214_v15  ;;  %v383_v11 = vmul.f32 %v4028_v13, %v3993_v57 }
  0xa7   :  { %559 = vrot.lane.b32.xlu1 %v542_v12, %s3603_s25  ;;  %v241_v25 = vpop.permute.xlu0 %240  ;;  %223 = vst.msk [vmem:[#allocation3 + $0x38] sm:$0xff] %vm151_vm1, %v215_v16  ;;  %v377_v12 = vld [vmem:[#allocation2 + $0x47] sm:$0xff] }
  0xa8   :  { %v243_v26 = vpop.permute.xlu1 %242  ;;  %265 = vst.msk [vmem:[#allocation3] sm:$0xff] %vm264_vm3, %v241_v25  ;;  %v385_v21 = vmul.f32 %v377_v12, %v4024_v10 }
  0xa9   :  { %266 = vst.msk [vmem:[#allocation3 + $0x8] sm:$0xff] %vm264_vm3, %v243_v26  ;;  %v488_v26 = vmul.f32 %v642_v44, %v3981_v51  ;;  %v547_v44 = vmul.f32 %v377_v12, %v4022_v9 }
  0xaa   :  { %561 = vrot.lane.b32.xlu0 %v543_v29, %s3603_s25  ;;  %v489_v29 = vmul.f32 %v3983_v52, %v279_v54 }
  0xab   :  { %563 = vrot.lane.b32.xlu1 %v544_v30, %s3603_s25  ;;  %v245_v32 = vpop.permute.xlu0 %244  ;;  %v483_v30 = vld [vmem:[#allocation2 + $0x49] sm:$0xff] }
  0xac   :  { %v247_v38 = vpop.permute.xlu1 %246  ;;  %267 = vst.msk [vmem:[#allocation3 + $0x10] sm:$0xff] %vm264_vm3, %v245_v32  ;;  %v491_v32 = vmul.f32 %v483_v30, %v4009_v4 }
  0xad   :  { %268 = vst.msk [vmem:[#allocation3 + $0x18] sm:$0xff] %vm264_vm3, %v247_v38  ;;  %v545_v38 = vmul.f32 %v4028_v13, %v3991_v55  ;;  %v4130_v13 = vld [vmem:[#allocation2 + $0x50] sm:$0xff] }
  0xae   :  { %663 = vrot.lane.b32.xlu0 %v647_v39, %s3604_s27  ;;  %v546_v39 = vmul.f32 %v4030_v14, %v3993_v57  ;;  %v651_v14 = vmul.f32 %v3981_v51, %v279_v54 }
  0xaf   :  { %665 = vrot.lane.b32.xlu1 %v648_v43, %s3604_s27  ;;  %v4063_v45 = vpop.permute.xlu0 %443  ;;  %v540_v43 = vld [vmem:[#allocation2 + $0x4f] sm:$0xff] }
  0xb0   :  { %v4065_v47 = vpop.permute.xlu1 %445 }
  0xb2   :  { %667 = vrot.lane.b32.xlu0 %v649_v36, %s3604_s27  ;;  %v548_v36 = vmul.f32 %v540_v43, %v4024_v10 }
  0xb3   :  { %669 = vrot.lane.b32.xlu1 %v650_v37, %s3604_s27  ;;  %v4072_v48 = vpop.permute.xlu0 %447  ;;  %v652_v37 = vmul.f32 %v3983_v52, %v280_v58 }
  0xb4   :  { %v4074_v49 = vpop.permute.xlu1 %449 }
  0xb6   :  { %345 = vrot.lane.b32.xlu0 %v325_v50, %s3600_s29  ;;  %v646_v50 = vld [vmem:[#allocation2 + $0x51] sm:$0xff] }
  0xb7   :  { %347 = vrot.lane.b32.xlu1 %v326_v53, %s3600_s29  ;;  %v4081_v59 = vpop.permute.xlu0 %606 }
  0xb8   :  { %v4083_v63 = vpop.permute.xlu1 %608 }
  0xba   :  { %349 = vrot.lane.b32.xlu0 %v327_v0, %s3600_s29 }
  0xbb   :  { %351 = vrot.lane.b32.xlu1 %v328_v5, %s3600_s29  ;;  %v4089_v61 = vpop.permute.xlu0 %610 }
  0xbc   :  { %v4091_v7 = vpop.permute.xlu1 %612 }
  0xbe   :  { %402 = vrot.lane.b32.xlu0 %v382_v8, %s3601_s18 }
  0xbf   :  { %404 = vrot.lane.b32.xlu1 %v383_v11, %s3601_s18  ;;  %v249_v15 = vpop.permute.xlu0 %248 }
  0xc0   :  { %v251_v16 = vpop.permute.xlu1 %250  ;;  %269 = vst.msk [vmem:[#allocation3 + $0x20] sm:$0xff] %vm264_vm3, %v249_v15 }
  0xc1   :  { %270 = vst.msk [vmem:[#allocation3 + $0x28] sm:$0xff] %vm264_vm3, %v251_v16 }
  0xc2   :  { %406 = vrot.lane.b32.xlu0 %v384_v20, %s3601_s18 }
  0xc3   :  { %408 = vrot.lane.b32.xlu1 %v385_v21, %s3601_s18  ;;  %v253_v60 = vpop.permute.xlu0 %252 }
  0xc4   :  { %v255_v25 = vpop.permute.xlu1 %254  ;;  %271 = vst.msk [vmem:[#allocation3 + $0x30] sm:$0xff] %vm264_vm3, %v253_v60 }
  0xc5   :  { %272 = vst.msk [vmem:[#allocation3 + $0x38] sm:$0xff] %vm264_vm3, %v255_v25 }
  0xc6   :  { %508 = vrot.lane.b32.xlu0 %v488_v26, %s3602_s21 }
  0xc7   :  { %510 = vrot.lane.b32.xlu1 %v489_v29, %s3602_s21 }
  0xc8   :  { %v4146_v53 = vpop.permute.xlu1 %453 }
  0xca   :  { %512 = vrot.lane.b32.xlu0 %v490_v31, %s3602_s21  ;;  %v991_v31 = vld [vmem:[#allocation2 + $0x7] sm:$0xff] }
  0xcb   :  { %514 = vrot.lane.b32.xlu1 %v491_v32, %s3602_s21  ;;  %v999_v32 = vmul.f32 %v991_v31, %v3943_v24 }
  0xcc   :  { %v4150_v58 = vpop.permute.xlu1 %457 }
  0xce   :  { %565 = vrot.lane.b32.xlu0 %v545_v38, %s3603_s25 }
  0xcf   :  { %567 = vrot.lane.b32.xlu1 %v546_v39, %s3603_s25 }
  0xd2   :  { %569 = vrot.lane.b32.xlu0 %v547_v44, %s3603_s25 }
  0xd3   :  { %571 = vrot.lane.b32.xlu1 %v548_v36, %s3603_s25 }
  0xd6   :  { %614 = vrot.lane.b32.xlu0 %v3924_v17, %s3599_s22  ;;  %v653_v17 = vmul.f32 %v483_v30, %v4007_v2 }
  0xd7   :  { %616 = vrot.lane.b32.xlu1 %v3926_v18, %s3599_s22  ;;  %v654_v18 = vmul.f32 %v646_v50, %v4009_v4 }
  0xda   :  { %618 = vrot.lane.b32.xlu0 %v3935_v19, %s3599_s22  ;;  %v4144_v19 = vpop.permute.xlu0 %451 }
  0xdb   :  { %620 = vrot.lane.b32.xlu1 %v4130_v13, %s3599_s22 }
  0xde   :  { %671 = vrot.lane.b32.xlu0 %v651_v14, %s3604_s27  ;;  %v4148_v54 = vpop.permute.xlu0 %455 }
  0xdf   :  { %673 = vrot.lane.b32.xlu1 %v652_v37, %s3604_s27 }
  0xe2   :  { %675 = vrot.lane.b32.xlu0 %v653_v17, %s3604_s27 }
  0xe3   :  { %677 = vrot.lane.b32.xlu1 %v654_v18, %s3604_s27 }
  0xfc   :  { %v338_v0 = vpop.permute.xlu0 %337 }
  0xfd   :  { %362 = vst.msk [vmem:[#allocation3] sm:$0xff] %vm361_vm4, %v338_v0 }
 0x100   :  { %v340_v5 = vpop.permute.xlu1 %339 }
 0x101   :  { %363 = vst.msk [vmem:[#allocation3 + $0x8] sm:$0xff] %vm361_vm4, %v340_v5 }
 0x104   :  { %v342_v8 = vpop.permute.xlu0 %341 }
 0x105   :  { %v344_v11 = vpop.permute.xlu1 %343  ;;  %364 = vst.msk [vmem:[#allocation3 + $0x10] sm:$0xff] %vm361_vm4, %v342_v8 }
 0x106   :  { %365 = vst.msk [vmem:[#allocation3 + $0x18] sm:$0xff] %vm361_vm4, %v344_v11 }
 0x108   :  { %v395_v12 = vpop.permute.xlu0 %394 }
 0x109   :  { %v397_v15 = vpop.permute.xlu1 %396  ;;  %419 = vst.msk [vmem:[#allocation3] sm:$0xff] %vm418_vm5, %v395_v12 }
 0x10a   :  { %420 = vst.msk [vmem:[#allocation3 + $0x8] sm:$0xff] %vm418_vm5, %v397_v15 }
 0x10b   :  { %468 = vst.msk [vmem:[#allocation3] sm:$0xff] %vm467_vm6, %v4063_v45  ;;  %469 = vst.msk [vmem:[#allocation3 + $0x8] sm:$0xff] %vm467_vm6, %v4065_v47 }
 0x10c   :  { %v399_v16 = vpop.permute.xlu0 %398 }
 0x10d   :  { %v401_v20 = vpop.permute.xlu1 %400  ;;  %421 = vst.msk [vmem:[#allocation3 + $0x10] sm:$0xff] %vm418_vm5, %v399_v16 }
 0x10e   :  { %422 = vst.msk [vmem:[#allocation3 + $0x18] sm:$0xff] %vm418_vm5, %v401_v20 }
 0x10f   :  { %470 = vst.msk [vmem:[#allocation3 + $0x10] sm:$0xff] %vm467_vm6, %v4072_v48  ;;  %471 = vst.msk [vmem:[#allocation3 + $0x18] sm:$0xff] %vm467_vm6, %v4074_v49 }
 0x110   :  { %v501_v21 = vpop.permute.xlu0 %500 }
 0x111   :  { %v503_v60 = vpop.permute.xlu1 %502  ;;  %525 = vst.msk [vmem:[#allocation3] sm:$0xff] %vm524_vm7, %v501_v21 }
 0x112   :  { %526 = vst.msk [vmem:[#allocation3 + $0x8] sm:$0xff] %vm524_vm7, %v503_v60 }
 0x114   :  { %v505_v45 = vpop.permute.xlu0 %504 }
 0x115   :  { %v507_v47 = vpop.permute.xlu1 %506  ;;  %527 = vst.msk [vmem:[#allocation3 + $0x10] sm:$0xff] %vm524_vm7, %v505_v45 }
 0x116   :  { %528 = vst.msk [vmem:[#allocation3 + $0x18] sm:$0xff] %vm524_vm7, %v507_v47 }
 0x118   :  { %v558_v25 = vpop.permute.xlu0 %557 }
 0x119   :  { %v560_v26 = vpop.permute.xlu1 %559  ;;  %582 = vst.msk [vmem:[#allocation3] sm:$0xff] %vm581_vm8, %v558_v25 }
 0x11a   :  { %583 = vst.msk [vmem:[#allocation3 + $0x8] sm:$0xff] %vm581_vm8, %v560_v26 }
 0x11b   :  { %631 = vst.msk [vmem:[#allocation3] sm:$0xff] %vm630_vm9, %v4081_v59  ;;  %632 = vst.msk [vmem:[#allocation3 + $0x8] sm:$0xff] %vm630_vm9, %v4083_v63 }
 0x11c   :  { %v562_v48 = vpop.permute.xlu0 %561 }
 0x11d   :  { %v564_v49 = vpop.permute.xlu1 %563  ;;  %584 = vst.msk [vmem:[#allocation3 + $0x10] sm:$0xff] %vm581_vm8, %v562_v48 }
 0x11e   :  { %585 = vst.msk [vmem:[#allocation3 + $0x18] sm:$0xff] %vm581_vm8, %v564_v49 }
 0x11f   :  { %633 = vst.msk [vmem:[#allocation3 + $0x10] sm:$0xff] %vm630_vm9, %v4089_v61  ;;  %634 = vst.msk [vmem:[#allocation3 + $0x18] sm:$0xff] %vm630_vm9, %v4091_v7 }
 0x120   :  { %v664_v29 = vpop.permute.xlu0 %663 }
 0x121   :  { %v666_v30 = vpop.permute.xlu1 %665  ;;  %688 = vst.msk [vmem:[#allocation3] sm:$0xff] %vm687_vm10, %v664_v29 }
 0x122   :  { %689 = vst.msk [vmem:[#allocation3 + $0x8] sm:$0xff] %vm687_vm10, %v666_v30 }
 0x124   :  { %v668_v59 = vpop.permute.xlu0 %667 }
 0x125   :  { %v670_v63 = vpop.permute.xlu1 %669  ;;  %690 = vst.msk [vmem:[#allocation3 + $0x10] sm:$0xff] %vm687_vm10, %v668_v59 }
 0x126   :  { %691 = vst.msk [vmem:[#allocation3 + $0x18] sm:$0xff] %vm687_vm10, %v670_v63 }
 0x128   :  { %v346_v38 = vpop.permute.xlu0 %345  ;;  %v696_v39 = vld [vmem:[#allocation3] sm:$0xff] }
 0x129   :  { %v348_v61 = vpop.permute.xlu1 %347  ;;  %v697_v43 = vld [vmem:[#allocation3 + $0x8] sm:$0xff]  ;;  %366 = vst.msk [vmem:[#allocation3 + $0x20] sm:$0xff] %vm361_vm4, %v346_v38 }
 0x12a   :  { %367 = vst.msk [vmem:[#allocation3 + $0x28] sm:$0xff] %vm361_vm4, %v348_v61  ;;  %v704_v7 = vpack.c.bf16 %v697_v43, %v696_v39 }
 0x12b   :  { %1007 = vst.msk [vmem:[#allocation3] sm:$0xff] %vm151_vm1, %v999_v32 }
 0x12c   :  { %3436 = vmatprep.mubr.msk.bf16.mxu0 %vm728_vm11, %v704_v7  ;;  %v350_v44 = vpop.permute.xlu0 %349  ;;  %v698_v14 = vld [vmem:[#allocation3 + $0x10] sm:$0xff] }
 0x12d   :  { %v352_v36 = vpop.permute.xlu1 %351  ;;  %v699_v37 = vld [vmem:[#allocation3 + $0x18] sm:$0xff]  ;;  %368 = vst.msk [vmem:[#allocation3 + $0x30] sm:$0xff] %vm361_vm4, %v350_v44 }
 0x12e   :  { %369 = vst.msk [vmem:[#allocation3 + $0x38] sm:$0xff] %vm361_vm4, %v352_v36  ;;  %v705_v50 = vpack.c.bf16 %v699_v37, %v698_v14 }
 0x130   :  { %3437 = vmatmul.mubr.msk.bf16.vlgmr.msra.gmra.mxu0 %vm728_vm11, %v705_v50  ;;  %v403_v17 = vpop.permute.xlu0 %402 }
 0x131   :  { %v405_v18 = vpop.permute.xlu1 %404  ;;  %423 = vst.msk [vmem:[#allocation3 + $0x20] sm:$0xff] %vm418_vm5, %v403_v17 }
 0x132   :  { %424 = vst.msk [vmem:[#allocation3 + $0x28] sm:$0xff] %vm418_vm5, %v405_v18 }
 0x133   :  { %472 = vst.msk [vmem:[#allocation3 + $0x20] sm:$0xff] %vm467_vm6, %v4144_v19  ;;  %473 = vst.msk [vmem:[#allocation3 + $0x28] sm:$0xff] %vm467_vm6, %v4146_v53 }
 0x134   :  { %v407_v0 = vpop.permute.xlu0 %406 }
 0x135   :  { %v409_v5 = vpop.permute.xlu1 %408  ;;  %425 = vst.msk [vmem:[#allocation3 + $0x30] sm:$0xff] %vm418_vm5, %v407_v0 }
 0x136   :  { %426 = vst.msk [vmem:[#allocation3 + $0x38] sm:$0xff] %vm418_vm5, %v409_v5 }
 0x137   :  { %474 = vst.msk [vmem:[#allocation3 + $0x30] sm:$0xff] %vm467_vm6, %v4148_v54  ;;  %475 = vst.msk [vmem:[#allocation3 + $0x38] sm:$0xff] %vm467_vm6, %v4150_v58 }
 0x138   :  { %v509_v8 = vpop.permute.xlu0 %508 }
 0x139   :  { %v511_v11 = vpop.permute.xlu1 %510  ;;  %529 = vst.msk [vmem:[#allocation3 + $0x20] sm:$0xff] %vm524_vm7, %v509_v8 }
 0x13a   :  { %530 = vst.msk [vmem:[#allocation3 + $0x28] sm:$0xff] %vm524_vm7, %v511_v11 }
 0x13c   :  { %v513_v19 = vpop.permute.xlu0 %512 }
 0x13d   :  { %v515_v53 = vpop.permute.xlu1 %514  ;;  %531 = vst.msk [vmem:[#allocation3 + $0x30] sm:$0xff] %vm524_vm7, %v513_v19 }
 0x13e   :  { %532 = vst.msk [vmem:[#allocation3 + $0x38] sm:$0xff] %vm524_vm7, %v515_v53 }
 0x140   :  { %v566_v12 = vpop.permute.xlu0 %565 }
 0x141   :  { %v568_v15 = vpop.permute.xlu1 %567  ;;  %586 = vst.msk [vmem:[#allocation3 + $0x20] sm:$0xff] %vm581_vm8, %v566_v12 }
 0x142   :  { %587 = vst.msk [vmem:[#allocation3 + $0x28] sm:$0xff] %vm581_vm8, %v568_v15 }
 0x144   :  { %v570_v54 = vpop.permute.xlu0 %569 }
 0x145   :  { %v572_v58 = vpop.permute.xlu1 %571  ;;  %588 = vst.msk [vmem:[#allocation3 + $0x30] sm:$0xff] %vm581_vm8, %v570_v54 }
 0x146   :  { %589 = vst.msk [vmem:[#allocation3 + $0x38] sm:$0xff] %vm581_vm8, %v572_v58 }
 0x148   :  { %v615_v16 = vpop.permute.xlu0 %614 }
 0x149   :  { %v617_v20 = vpop.permute.xlu1 %616  ;;  %635 = vst.msk [vmem:[#allocation3 + $0x20] sm:$0xff] %vm630_vm9, %v615_v16 }
 0x14a   :  { %636 = vst.msk [vmem:[#allocation3 + $0x28] sm:$0xff] %vm630_vm9, %v617_v20 }
 0x14c   :  { %v619_v21 = vpop.permute.xlu0 %618 }
 0x14d   :  { %v621_v60 = vpop.permute.xlu1 %620  ;;  %637 = vst.msk [vmem:[#allocation3 + $0x30] sm:$0xff] %vm630_vm9, %v619_v21 }
 0x14e   :  { %638 = vst.msk [vmem:[#allocation3 + $0x38] sm:$0xff] %vm630_vm9, %v621_v60 }
 0x150   :  { %v672_v45 = vpop.permute.xlu0 %671 }
 0x151   :  { %v674_v47 = vpop.permute.xlu1 %673  ;;  %692 = vst.msk [vmem:[#allocation3 + $0x20] sm:$0xff] %vm687_vm10, %v672_v45 }
 0x152   :  { %693 = vst.msk [vmem:[#allocation3 + $0x28] sm:$0xff] %vm687_vm10, %v674_v47 }
 0x154   :  { %v676_v25 = vpop.permute.xlu0 %675 }
 0x155   :  { %v678_v26 = vpop.permute.xlu1 %677  ;;  %694 = vst.msk [vmem:[#allocation3 + $0x30] sm:$0xff] %vm687_vm10, %v676_v25 }
 0x156   :  { %695 = vst.msk [vmem:[#allocation3 + $0x38] sm:$0xff] %vm687_vm10, %v678_v26 }
 0x158   :  { %v700_v48 = vld [vmem:[#allocation3 + $0x20] sm:$0xff] }
 0x159   :  { %v701_v49 = vld [vmem:[#allocation3 + $0x28] sm:$0xff] }
 0x15a   :  { %v706_v29 = vpack.c.bf16 %v701_v49, %v700_v48 }
 0x15c   :  { %3440 = vmatprep.mubr.msk.bf16.mxu0 %vm728_vm11, %v706_v29  ;;  %v702_v30 = vld [vmem:[#allocation3 + $0x30] sm:$0xff] }
 0x15d   :  { %v703_v59 = vld [vmem:[#allocation3 + $0x38] sm:$0xff] }
 0x15e   :  { %v707_v63 = vpack.c.bf16 %v703_v59, %v702_v30 }
 0x160   :  { %3441 = vmatmul.mubr.msk.bf16.gmra.mxu0 %vm728_vm11, %v707_v63 }
 0x1f0   :  { %v3438_v31 = vpop.f32.mrf.mxu0 }
 0x1f1   :  { %v816_v43 = vsel %vm151_vm1, %v3438_v31, 0.0 }
 0x1f2   :  { %v779_v32 = vpop.f32.mrf.mxu0 }
 0x1f3   :  { %v810_v38 = vsel %vm151_vm1, %v779_v32, 0.0 }
 0x1f4   :  { %811 = vadd.xlane.f32.xlu0 %v810_v38  ;;  %v3439_v61 = vpop.f32.mrf.mxu0 }
 0x1f5   :  { %v819_v44 = vsel %vm151_vm1, %v3439_v61, 0.0 }
 0x1f6   :  { %v782_v39 = vpop.f32.mrf.mxu0 }
 0x1f7   :  { %v813_v7 = vsel %vm151_vm1, %v782_v39, 0.0 }
 0x1f8   :  { %817 = vadd.xlane.f32.xlu0 %v816_v43  ;;  %814 = vadd.xlane.f32.xlu1 %v813_v7 }
 0x1fc   :  { %820 = vadd.xlane.f32.xlu0 %v819_v44 }
 0x220   :  { %v3442_v36 = vpop.f32.mrf.mxu0 }
 0x221   :  { %v828_v18 = vsel %vm151_vm1, %v3442_v36, 0.0 }
 0x222   :  { %v795_v14 = vpop.f32.mrf.mxu0 }
 0x223   :  { %v822_v37 = vsel %vm151_vm1, %v795_v14, 0.0 }
 0x224   :  { %823 = vadd.xlane.f32.xlu1 %v822_v37  ;;  %v3443_v50 = vpop.f32.mrf.mxu0 }
 0x225   :  { %v831_v5 = vsel %vm151_vm1, %v3443_v50, 0.0 }
 0x226   :  { %v798_v17 = vpop.f32.mrf.mxu0 }
 0x227   :  { %v825_v0 = vsel %vm151_vm1, %v798_v17, 0.0 }
 0x228   :  { %829 = vadd.xlane.f32.xlu1 %v828_v18  ;;  %826 = vadd.xlane.f32.xlu0 %v825_v0 }
 0x22c   :  { %832 = vadd.xlane.f32.xlu0 %v831_v5 }
 0x27d   :  { %v812_v8 = vpop.xlane.xlu0 %811 }
 0x281   :  { %v815_v11 = vpop.xlane.xlu1 %814  ;;  %v818_v19 = vpop.xlane.xlu0 %817 }
 0x282   :  { %v834_v53 = vadd.f32 %v815_v11, %v812_v8 }
 0x284   :  { %v835_v12 = vadd.f32 %v834_v53, %v818_v19 }
 0x285   :  { %v821_v15 = vpop.xlane.xlu0 %820 }
 0x286   :  { %v836_v58 = vadd.f32 %v835_v12, %v821_v15 }
 0x2ad   :  { %v824_v54 = vpop.xlane.xlu1 %823 }
 0x2ae   :  { %v837_v16 = vadd.f32 %v836_v58, %v824_v54 }
 0x2b1   :  { %v827_v20 = vpop.xlane.xlu0 %826  ;;  %v830_v60 = vpop.xlane.xlu1 %829 }
 0x2b2   :  { %v838_v21 = vadd.f32 %v837_v16, %v827_v20  ;;  %v1015_v16 = vld [vmem:[#allocation2 + $0x8] sm:$0xff] }
 0x2b4   :  { %v839_v45 = vadd.f32 %v838_v21, %v830_v60 }
 0x2b5   :  { %v833_v47 = vpop.xlane.xlu0 %832 }
 0x2b6   :  { %v840_v25 = vadd.f32 %v839_v45, %v833_v47 }
 0x2b8   :  { %v841_v26 = vrot.slane %v840_v25, 4 }
 0x2ba   :  { %v842_v48 = vadd.f32 %v841_v26, %v840_v25 }
 0x2bc   :  { %v843_v49 = vrot.slane %v842_v48, 2 }
 0x2be   :  { %v844_v29 = vadd.f32 %v843_v49, %v842_v48 }
 0x2c0   :  { %v845_v30 = vrot.slane %v844_v29, 1 }
 0x2c2   :  { %v846_v59 = vadd.f32 %v845_v30, %v844_v29 }
 0x2c4   :  { %v848_v63 = vmul.f32 0.00390625, %v846_v59 }
 0x2c6   :  { %v4234_v38 = vsub.f32 %v782_v39, %v848_v63  ;;  %v4236_v43 = vsub.f32 %v779_v32, %v848_v63  ;;  %v4238_v7 = vsub.f32 %v3439_v61, %v848_v63  ;;  %v851_v44 = vsub.f32 %v3438_v31, %v848_v63 }
 0x2c7   :  { %v4244_v0 = vsub.f32 %v798_v17, %v848_v63  ;;  %v853_v5 = vsub.f32 %v795_v14, %v848_v63  ;;  %v856_v31 = vsub.f32 %v3443_v50, %v848_v63  ;;  %v855_v61 = vsub.f32 %v3442_v36, %v848_v63 }
 0x2c8   :  { %v858_v37 = vmul.f32 %v4234_v38, %v4234_v38  ;;  %v857_v18 = vmul.f32 %v4236_v43, %v4236_v43  ;;  %v860_v32 = vmul.f32 %v4238_v7, %v4238_v7  ;;  %v859_v39 = vmul.f32 %v851_v44, %v851_v44 }
 0x2c9   :  { %v862_v17 = vmul.f32 %v4244_v0, %v4244_v0  ;;  %v861_v14 = vmul.f32 %v853_v5, %v853_v5  ;;  %v864_v54 = vmul.f32 %v856_v31, %v856_v31  ;;  %v863_v58 = vmul.f32 %v855_v61, %v855_v61 }
 0x2ca   :  { %v868_v8 = vsel %vm151_vm1, %v858_v37, 0.0  ;;  %v865_v11 = vsel %vm151_vm1, %v857_v18, 0.0  ;;  %v874_v19 = vsel %vm151_vm1, %v860_v32, 0.0  ;;  %v871_v53 = vsel %vm151_vm1, %v859_v39, 0.0 }
 0x2cb   :  { %869 = vadd.xlane.f32.xlu0 %v868_v8  ;;  %866 = vadd.xlane.f32.xlu1 %v865_v11  ;;  %v880_v12 = vsel %vm151_vm1, %v862_v17, 0.0  ;;  %v877_v15 = vsel %vm151_vm1, %v861_v14, 0.0  ;;  %v886_v36 = vsel %vm151_vm1, %v864_v54, 0.0  ;;  %v883_v50 = vsel %vm151_vm1, %v863_v58, 0.0 }
 0x2cf   :  { %875 = vadd.xlane.f32.xlu0 %v874_v19  ;;  %872 = vadd.xlane.f32.xlu1 %v871_v53 }
 0x2d3   :  { %881 = vadd.xlane.f32.xlu0 %v880_v12  ;;  %878 = vadd.xlane.f32.xlu1 %v877_v15  ;;  %v3363_v12 = vld [vmem:[%s5309_s3] ss:$0 sm:$0xff] }
 0x2d7   :  { %887 = vadd.xlane.f32.xlu0 %v886_v36  ;;  %884 = vadd.xlane.f32.xlu1 %v883_v50  ;;  %v3364_v50 = vld [vmem:[%s5310_s4] ss:$0 sm:$0xff] }
 0x2e8   :  { %1031 = vrot.lane.b32.xlu1 %v1015_v16, %s3597_s28 }
 0x2ec   :  { %1365 = vrot.lane.b32.xlu1 %v4130_v13, %s3599_s22 }
 0x354   :  { %v870_v20 = vpop.xlane.xlu0 %869  ;;  %v867_v21 = vpop.xlane.xlu1 %866 }
 0x355   :  { %v889_v60 = vadd.f32 %v870_v20, %v867_v21 }
 0x358   :  { %v876_v45 = vpop.xlane.xlu0 %875  ;;  %v873_v47 = vpop.xlane.xlu1 %872 }
 0x359   :  { %v890_v25 = vadd.f32 %v889_v60, %v873_v47 }
 0x35b   :  { %v891_v26 = vadd.f32 %v890_v25, %v876_v45 }
 0x35c   :  { %v882_v48 = vpop.xlane.xlu0 %881  ;;  %v879_v49 = vpop.xlane.xlu1 %878 }
 0x35d   :  { %v892_v29 = vadd.f32 %v891_v26, %v879_v49 }
 0x35f   :  { %v893_v30 = vadd.f32 %v892_v29, %v882_v48 }
 0x360   :  { %v885_v59 = vpop.xlane.xlu1 %884  ;;  %v888_v37 = vpop.xlane.xlu0 %887 }
 0x361   :  { %v894_v63 = vadd.f32 %v893_v30, %v885_v59 }
 0x363   :  { %v895_v18 = vadd.f32 %v894_v63, %v888_v37 }
 0x365   :  { %v896_v8 = vrot.slane %v895_v18, 4 }
 0x367   :  { %v897_v11 = vadd.f32 %v896_v8, %v895_v18 }
 0x369   :  { %v898_v32 = vrot.slane %v897_v11, 2 }
 0x36b   :  { %v899_v39 = vadd.f32 %v898_v32, %v897_v11 }
 0x36d   :  { %v900_v13 = vrot.slane %v899_v39, 1 }
 0x36f   :  { %v901_v19 = vadd.f32 %v900_v13, %v899_v39  ;;  %v1032_v13 = vpop.permute.xlu1 %1031 }
 0x370   :  { %1055 = vst.msk [vmem:[#allocation3] sm:$0xff] %vm264_vm3, %v1032_v13 }
 0x371   :  { %v902_v53 = vmul.f32 0.00390625, %v901_v19 }
 0x373   :  { %v903_v17 = vadd.f32 1e-05, %v902_v53 }
 0x375   :  { %3535 = vrsqrt.f32 %v903_v17 }
 0x382   :  { %v3536_v14 = vpop.eup %3535 }
 0x383   :  { %v906_v15 = vmul.f32 %v3536_v14, %v4234_v38  ;;  %v905_v54 = vmul.f32 %v3536_v14, %v4236_v43  ;;  %v907_v58 = vmul.f32 %v3536_v14, %v851_v44  ;;  %v908_v36 = vmul.f32 %v3536_v14, %v4238_v7 }
 0x384   :  { %v909_v16 = vmul.f32 %v3536_v14, %v853_v5  ;;  %v910_v20 = vmul.f32 %v3536_v14, %v4244_v0  ;;  %v911_v21 = vmul.f32 %v3536_v14, %v855_v61  ;;  %v912_v60 = vmul.f32 %v3536_v14, %v856_v31 }
 0x385   :  { %v921_v45 = vmul.f32 %v3363_v12, %v906_v15  ;;  %v920_v47 = vmul.f32 %v3363_v12, %v905_v54  ;;  %v922_v25 = vmul.f32 %v3363_v12, %v907_v58  ;;  %v923_v26 = vmul.f32 %v3363_v12, %v908_v36 }
 0x386   :  { %v924_v48 = vmul.f32 %v3363_v12, %v909_v16  ;;  %v925_v38 = vmul.f32 %v3363_v12, %v910_v20  ;;  %v926_v49 = vmul.f32 %v3363_v12, %v911_v21  ;;  %v927_v43 = vmul.f32 %v3363_v12, %v912_v60 }
 0x387   :  { %v936_v44 = vadd.f32 %v3364_v50, %v921_v45  ;;  %v935_v29 = vadd.f32 %v3364_v50, %v920_v47  ;;  %v937_v7 = vadd.f32 %v3364_v50, %v922_v25  ;;  %v938_v30 = vadd.f32 %v3364_v50, %v923_v26 }
 0x388   :  { %v939_v59 = vadd.f32 %v3364_v50, %v924_v48  ;;  %v940_v63 = vadd.f32 %v3364_v50, %v925_v38  ;;  %v941_v18 = vadd.f32 %v3364_v50, %v926_v49  ;;  %v942_v31 = vadd.f32 %v3364_v50, %v927_v43 }
 0x389   :  { %v952_v37 = vmul.f32 0.70710677, %v936_v44  ;;  %v951_v5 = vmul.f32 0.70710677, %v935_v29  ;;  %v953_v0 = vmul.f32 0.70710677, %v937_v7 }
 0x38a   :  { %v954_v61 = vmul.f32 0.70710677, %v938_v30  ;;  %v955_v8 = vmul.f32 0.70710677, %v939_v59  ;;  %v956_v11 = vmul.f32 0.70710677, %v940_v63 }
 0x38b   :  { %3537 = verf.f32 %v952_v37  ;;  %v957_v32 = vmul.f32 0.70710677, %v941_v18  ;;  %v958_v39 = vmul.f32 0.70710677, %v942_v31  ;;  %v944_v17 = vmul.f32 0.5, %v936_v44 }
 0x38c   :  { %3539 = verf.f32 %v951_v5  ;;  %v943_v15 = vmul.f32 0.5, %v935_v29  ;;  %v945_v50 = vmul.f32 0.5, %v937_v7  ;;  %v946_v60 = vmul.f32 0.5, %v938_v30 }
 0x38d   :  { %3541 = verf.f32 %v953_v0  ;;  %v947_v26 = vmul.f32 0.5, %v939_v59  ;;  %v948_v43 = vmul.f32 0.5, %v940_v63  ;;  %v949_v37 = vmul.f32 0.5, %v941_v18 }
 0x38e   :  { %3543 = verf.f32 %v954_v61  ;;  %v950_v0 = vmul.f32 0.5, %v942_v31 }
 0x38f   :  { %3545 = verf.f32 %v955_v8 }
 0x390   :  { %3547 = verf.f32 %v956_v11 }
 0x391   :  { %3549 = verf.f32 %v957_v32 }
 0x392   :  { %3551 = verf.f32 %v958_v39 }
 0x398   :  { %v3538_v19 = vpop.eup %3537 }
 0x399   :  { %v3540_v53 = vpop.eup %3539  ;;  %v968_v14 = vadd.f32 1.0, %v3538_v19 }
 0x39a   :  { %v3542_v12 = vpop.eup %3541  ;;  %v967_v54 = vadd.f32 1.0, %v3540_v53 }
 0x39b   :  { %v3544_v58 = vpop.eup %3543  ;;  %v976_v36 = vmul.f32 %v968_v14, %v944_v17  ;;  %v969_v16 = vadd.f32 1.0, %v3542_v12 }
 0x39c   :  { %v3546_v20 = vpop.eup %3545  ;;  %v975_v21 = vmul.f32 %v967_v54, %v943_v15  ;;  %v970_v45 = vadd.f32 1.0, %v3544_v58 }
 0x39d   :  { %v3548_v47 = vpop.eup %3547  ;;  %984 = vst.msk [vmem:[#allocation2 + $0x18] sm:$0xff] %vm151_vm1, %v976_v36  ;;  %v977_v25 = vmul.f32 %v969_v16, %v945_v50  ;;  %v971_v48 = vadd.f32 1.0, %v3546_v20 }
 0x39e   :  { %v3550_v38 = vpop.eup %3549  ;;  %983 = vst.msk [vmem:[#allocation2 + $0x10] sm:$0xff] %vm151_vm1, %v975_v21  ;;  %v978_v49 = vmul.f32 %v970_v45, %v946_v60  ;;  %v972_v44 = vadd.f32 1.0, %v3548_v47 }
 0x39f   :  { %v3552_v29 = vpop.eup %3551  ;;  %985 = vst.msk [vmem:[#allocation2 + $0x20] sm:$0xff] %vm151_vm1, %v977_v25  ;;  %v979_v7 = vmul.f32 %v971_v48, %v947_v26  ;;  %v973_v5 = vadd.f32 1.0, %v3550_v38 }
 0x3a0   :  { %986 = vst.msk [vmem:[#allocation2 + $0x28] sm:$0xff] %vm151_vm1, %v978_v49  ;;  %v980_v30 = vmul.f32 %v972_v44, %v948_v43  ;;  %v974_v61 = vadd.f32 1.0, %v3552_v29 }
 0x3a1   :  { %987 = vst.msk [vmem:[#allocation2 + $0x30] sm:$0xff] %vm151_vm1, %v979_v7  ;;  %v981_v59 = vmul.f32 %v973_v5, %v949_v37 }
 0x3a2   :  { %988 = vst.msk [vmem:[#allocation2 + $0x38] sm:$0xff] %vm151_vm1, %v980_v30  ;;  %v982_v8 = vmul.f32 %v974_v61, %v950_v0 }
 0x3a3   :  { %989 = vst.msk [vmem:[#allocation2 + $0x40] sm:$0xff] %vm151_vm1, %v981_v59 }
 0x3a4   :  { %v1017_v63 = vld [vmem:[#allocation2 + $0x18] sm:$0xff]  ;;  %990 = vst.msk [vmem:[#allocation2 + $0x48] sm:$0xff] %vm151_vm1, %v982_v8 }
 0x3a5   :  { %1035 = vrot.lane.b32.xlu1 %v1017_v63, %s3597_s28  ;;  %v1016_v18 = vld [vmem:[#allocation2 + $0x10] sm:$0xff] }
 0x3a6   :  { %1033 = vrot.lane.b32.xlu0 %v1016_v18, %s3597_s28  ;;  %v1018_v11 = vld [vmem:[#allocation2 + $0x20] sm:$0xff]  ;;  %v4284_v31 = vld [vmem:[#allocation2 + $0x17] sm:$0xff]  ;;  %v1119_v32 = vld [vmem:[#allocation2 + $0xf] sm:$0xff] }
 0x3a7   :  { %v4287_v39 = vld [vmem:[#allocation2 + $0x27] sm:$0xff]  ;;  %v4289_v13 = vld [vmem:[#allocation2 + $0x1f] sm:$0xff]  ;;  %v1000_v14 = vmul.f32 %v1119_v32, %v3950_v28  ;;  %v1001_v12 = vmul.f32 %v4284_v31, %v3971_v40  ;;  %v1064_v47 = vld [vmem:[#allocation2 + $0x11] sm:$0xff]  ;;  %v1128_v29 = vmul.f32 %v4284_v31, %v3950_v28  ;;  %v1127_v7 = vmul.f32 %v1119_v32, %v3943_v24 }
 0x3a8   :  { %v4292_v19 = vld [vmem:[#allocation2 + $0x2f] sm:$0xff]  ;;  %v1002_v54 = vmul.f32 %v4289_v13, %v3973_v42  ;;  %v1003_v58 = vmul.f32 %v4287_v39, %v3991_v55  ;;  %v1072_v26 = vmul.f32 %v1064_v47, %v3948_v27  ;;  %v1066_v38 = vld [vmem:[#allocation2 + $0x21] sm:$0xff]  ;;  %v1065_v49 = vld [vmem:[#allocation2 + $0x19] sm:$0xff]  ;;  %v1130_v37 = vmul.f32 %v4287_v39, %v3973_v42 }
 0x3a9   :  { %1037 = vrot.lane.b32.xlu1 %v1018_v11, %s3597_s28  ;;  %v4294_v53 = vld [vmem:[#allocation2 + $0x37] sm:$0xff]  ;;  %v1178_v15 = vld [vmem:[#allocation2 + $0x28] sm:$0xff]  ;;  %1008 = vst.msk [vmem:[#allocation3 + $0x8] sm:$0xff] %vm151_vm1, %v1000_v14  ;;  %1009 = vst.msk [vmem:[#allocation3 + $0x10] sm:$0xff] %vm151_vm1, %v1001_v12  ;;  %v1004_v50 = vmul.f32 %v4292_v19, %v3993_v57  ;;  %v1074_v43 = vmul.f32 %v1066_v38, %v3958_v35  ;;  %v1073_v44 = vmul.f32 %v1065_v49, %v3956_v34 }
 0x3aa   :  { %1191 = vrot.lane.b32.xlu0 %v1016_v18, %s3598_s20  ;;  %v4296_v17 = vld [vmem:[#allocation2 + $0x3f] sm:$0xff]  ;;  %v1005_v36 = vmul.f32 %v4294_v53, %v4022_v9  ;;  %1010 = vst.msk [vmem:[#allocation3 + $0x18] sm:$0xff] %vm151_vm1, %v1002_v54  ;;  %1011 = vst.msk [vmem:[#allocation3 + $0x20] sm:$0xff] %vm151_vm1, %v1003_v58  ;;  %v1338_v20 = vld [vmem:[#allocation2 + $0x30] sm:$0xff]  ;;  %v1129_v5 = vmul.f32 %v4289_v13, %v3971_v40  ;;  %v1232_v30 = vmul.f32 %v1065_v49, %v3948_v27 }
 0x3ab   :  { %v1006_v16 = vmul.f32 %v4296_v17, %v4024_v10  ;;  %1012 = vst.msk [vmem:[#allocation3 + $0x28] sm:$0xff] %vm151_vm1, %v1004_v50  ;;  %v1021_v21 = vld [vmem:[#allocation2 + $0x38] sm:$0xff]  ;;  %v1022_v60 = vld [vmem:[#allocation2 + $0x40] sm:$0xff]  ;;  %v1182_v45 = vld [vmem:[#allocation2 + $0x48] sm:$0xff]  ;;  %v1231_v0 = vmul.f32 %v1064_v47, %v3941_v22  ;;  %v1233_v8 = vmul.f32 %v1066_v38, %v3956_v34  ;;  %v1288_v18 = vmul.f32 %v4289_v13, %v3950_v28 }
 0x3ac   :  { %1013 = vst.msk [vmem:[#allocation3 + $0x30] sm:$0xff] %vm151_vm1, %v1005_v36  ;;  %v1063_v25 = vld [vmem:[#allocation2 + $0x9] sm:$0xff]  ;;  %v1290_v12 = vmul.f32 %v4292_v19, %v3973_v42  ;;  %v3524_v13 = vld [vmem:[%s5311_s5] sm:$0xff]   ;;  %v1391_v54 = vmul.f32 %v1065_v49, %v3941_v22  ;;  %v1386_v58 = vld [vmem:[#allocation2 + $0x31] sm:$0xff]  ;;  %v1132_v47 = vmul.f32 %v4294_v53, %v3993_v57 }
 0x3ad   :  { %1193 = vrot.lane.b32.xlu1 %v1017_v63, %s3598_s20  ;;  %1014 = vst.msk [vmem:[#allocation3 + $0x38] sm:$0xff] %vm151_vm1, %v1006_v16  ;;  %v1071_v48 = vmul.f32 %v1063_v25, %v3941_v22  ;;  %v1226_v61 = vld [vmem:[#allocation2 + $0x29] sm:$0xff]  ;;  %v1076_v50 = vmul.f32 %v1386_v58, %v3983_v52  ;;  %v1131_v25 = vmul.f32 %v4292_v19, %v3991_v55 }
 0x3ae   :  { %1195 = vrot.lane.b32.xlu0 %v1018_v11, %s3598_s20  ;;  %v1234_v59 = vmul.f32 %v1226_v61, %v3958_v35  ;;  %v3523_v14 = vld [vmem:[%s5311_s5 + $0x8] sm:$0xff]   ;;  %v1393_v36 = vmul.f32 %v1226_v61, %v3956_v34  ;;  %v1075_v16 = vmul.f32 %v1226_v61, %v3981_v51 }
 0x3b1   :  { %1197 = vrot.lane.b32.xlu1 %v1178_v15, %s3598_s20 }
 0x3b2   :  { %1351 = vrot.lane.b32.xlu0 %v1017_v63, %s3599_s22  ;;  %v3522_v63 = vld [vmem:[%s5311_s5 + $0x10] ss:$0 sps:$4 sm:$0x33]  }
 0x3b3   :  { %3499 = vmatprep.subr.msk.bf16.mxu1 %vm741_vm2, %v3522_v63  ;;  %v1484_v32 = vsel %vm741_vm2, %v3522_v63, 0  ;;  %v1390_v63 = vld [vmem:[#allocation2 + $0x51] sm:$0xff] }
 0x3b4   :  { %3445 = vmatpush3.bf16.msra.mxu1 %v1484_v32 }
 0x3b5   :  { %1353 = vrot.lane.b32.xlu1 %v1018_v11, %s3599_s22  ;;  %v1287_v11 = vmul.f32 %v4284_v31, %v3943_v24  ;;  %3446 = vmatprep.subr.bf16.mxu1 %v3523_v14  ;;  %v1289_v31 = vmul.f32 %v4287_v39, %v3971_v40  ;;  %v1394_v39 = vmul.f32 %v1386_v58, %v3958_v35 }
 0x3b6   :  { %1355 = vrot.lane.b32.xlu0 %v1178_v15, %s3599_s22 }
 0x3b8   :  { %3447 = vmatpush3.bf16.msra.mxu1 %v3523_v14 }
 0x3b9   :  { %1357 = vrot.lane.b32.xlu1 %v1338_v20, %s3599_s22  ;;  %3448 = vmatprep.subr.bf16.mxu1 %v3524_v13 }
 0x3ba   :  { %1039 = vrot.lane.b32.xlu0 %v1178_v15, %s3597_s28  ;;  %v1392_v15 = vmul.f32 %v1066_v38, %v3948_v27  ;;  %v1133_v38 = vmul.f32 %v4296_v17, %v4022_v9 }
 0x3bc   :  { %3449 = vmatpush3.bf16.msra.mxu1 %v3524_v13 }
 0x3bd   :  { %1041 = vrot.lane.b32.xlu1 %v1338_v20, %s3597_s28 }
 0x3be   :  { %1043 = vrot.lane.b32.xlu0 %v1021_v21, %s3597_s28 }
 0x3c1   :  { %1045 = vrot.lane.b32.xlu1 %v1022_v60, %s3597_s28 }
 0x3c2   :  { %1199 = vrot.lane.b32.xlu0 %v1338_v20, %s3598_s20  ;;  %v1070_v20 = vld [vmem:[#allocation2 + $0x41] sm:$0xff] }
 0x3c5   :  { %1201 = vrot.lane.b32.xlu1 %v1021_v21, %s3598_s20 }
 0x3c6   :  { %1203 = vrot.lane.b32.xlu0 %v1022_v60, %s3598_s20 }
 0x3c9   :  { %1205 = vrot.lane.b32.xlu1 %v1182_v45, %s3598_s20 }
 0x3ca   :  { %1359 = vrot.lane.b32.xlu0 %v1021_v21, %s3599_s22  ;;  %v1069_v21 = vld [vmem:[#allocation2 + $0x39] sm:$0xff] }
 0x3cb   :  { %v1236_v49 = vmul.f32 %v1069_v21, %v3983_v52 }
 0x3cd   :  { %1361 = vrot.lane.b32.xlu1 %v1022_v60, %s3599_s22  ;;  %v1078_v60 = vmul.f32 %v1070_v20, %v4009_v4 }
 0x3ce   :  { %1363 = vrot.lane.b32.xlu0 %v1182_v45, %s3599_s22  ;;  %v1077_v45 = vmul.f32 %v1069_v21, %v4007_v2 }
 0x3d1   :  { %1089 = vrot.lane.b32.xlu1 %v1072_v26, %s3600_s29  ;;  %v1126_v26 = vld [vmem:[#allocation2 + $0x47] sm:$0xff] }
 0x3d2   :  { %1087 = vrot.lane.b32.xlu0 %v1071_v48, %s3600_s29  ;;  %v1134_v48 = vmul.f32 %v1126_v26, %v4024_v10  ;;  %v1293_v61 = vmul.f32 %v1126_v26, %v4022_v9 }
 0x3d5   :  { %1093 = vrot.lane.b32.xlu1 %v1074_v43, %s3600_s29  ;;  %v1235_v43 = vmul.f32 %v1386_v58, %v3981_v51 }
 0x3d6   :  { %1091 = vrot.lane.b32.xlu0 %v1073_v44, %s3600_s29  ;;  %v1230_v44 = vld [vmem:[#allocation2 + $0x49] sm:$0xff] }
 0x3d7   :  { %v1238_v19 = vmul.f32 %v1230_v44, %v4009_v4  ;;  %v1397_v14 = vmul.f32 %v1230_v44, %v4007_v2 }
 0x3d9   :  { %1145 = vrot.lane.b32.xlu1 %v1128_v29, %s3601_s18  ;;  %v1237_v29 = vmul.f32 %v1070_v20, %v4007_v2 }
 0x3da   :  { %1143 = vrot.lane.b32.xlu0 %v1127_v7, %s3601_s18  ;;  %v1292_v7 = vmul.f32 %v4296_v17, %v3993_v57  ;;  %v1396_v17 = vmul.f32 %v1070_v20, %v3983_v52 }
 0x3dd   :  { %1149 = vrot.lane.b32.xlu1 %v1130_v37, %s3601_s18  ;;  %v1291_v37 = vmul.f32 %v4294_v53, %v3991_v55  ;;  %v1395_v53 = vmul.f32 %v1069_v21, %v3981_v51 }
 0x3de   :  { %1147 = vrot.lane.b32.xlu0 %v1129_v5, %s3601_s18  ;;  %v1286_v5 = vld [vmem:[#allocation2 + $0x4f] sm:$0xff] }
 0x3e1   :  { %1249 = vrot.lane.b32.xlu1 %v1232_v30, %s3602_s21  ;;  %v4424_v30 = vpop.permute.xlu1 %1365 }
 0x3e2   :  { %1247 = vrot.lane.b32.xlu0 %v1231_v0, %s3602_s21  ;;  %v1294_v0 = vmul.f32 %v1286_v5, %v4024_v10 }
 0x3e5   :  { %1253 = vrot.lane.b32.xlu1 %v1234_v59, %s3602_s21 }
 0x3e6   :  { %1251 = vrot.lane.b32.xlu0 %v1233_v8, %s3602_s21 }
 0x3e9   :  { %1305 = vrot.lane.b32.xlu1 %v1288_v18, %s3603_s25 }
 0x3ea   :  { %1303 = vrot.lane.b32.xlu0 %v1287_v11, %s3603_s25  ;;  %v1398_v11 = vmul.f32 %v1390_v63, %v4009_v4 }
 0x3ed   :  { %1309 = vrot.lane.b32.xlu1 %v1290_v12, %s3603_s25 }
 0x3ee   :  { %1307 = vrot.lane.b32.xlu0 %v1289_v31, %s3603_s25 }
 0x3f1   :  { %1409 = vrot.lane.b32.xlu1 %v1392_v15, %s3604_s27 }
 0x3f2   :  { %1407 = vrot.lane.b32.xlu0 %v1391_v54, %s3604_s27 }
 0x3f5   :  { %1413 = vrot.lane.b32.xlu1 %v1394_v39, %s3604_s27 }
 0x3f6   :  { %1411 = vrot.lane.b32.xlu0 %v1393_v36, %s3604_s27 }
 0x3f9   :  { %1097 = vrot.lane.b32.xlu1 %v1076_v50, %s3600_s29 }
 0x3fa   :  { %1095 = vrot.lane.b32.xlu0 %v1075_v16, %s3600_s29 }
 0x3fd   :  { %1101 = vrot.lane.b32.xlu1 %v1078_v60, %s3600_s29 }
 0x3fe   :  { %1099 = vrot.lane.b32.xlu0 %v1077_v45, %s3600_s29 }
 0x401   :  { %1153 = vrot.lane.b32.xlu1 %v1132_v47, %s3601_s18 }
 0x402   :  { %1151 = vrot.lane.b32.xlu0 %v1131_v25, %s3601_s18 }
 0x405   :  { %1157 = vrot.lane.b32.xlu1 %v1134_v48, %s3601_s18 }
 0x406   :  { %1155 = vrot.lane.b32.xlu0 %v1133_v38, %s3601_s18 }
 0x409   :  { %1257 = vrot.lane.b32.xlu1 %v1236_v49, %s3602_s21 }
 0x40a   :  { %1255 = vrot.lane.b32.xlu0 %v1235_v43, %s3602_s21 }
 0x40d   :  { %1261 = vrot.lane.b32.xlu1 %v1238_v19, %s3602_s21 }
 0x40e   :  { %1259 = vrot.lane.b32.xlu0 %v1237_v29, %s3602_s21 }
 0x411   :  { %1313 = vrot.lane.b32.xlu1 %v1292_v7, %s3603_s25 }
 0x412   :  { %1311 = vrot.lane.b32.xlu0 %v1291_v37, %s3603_s25 }
 0x415   :  { %1317 = vrot.lane.b32.xlu1 %v1294_v0, %s3603_s25 }
 0x416   :  { %1315 = vrot.lane.b32.xlu0 %v1293_v61, %s3603_s25 }
 0x417   :  { %v1036_v59 = vpop.permute.xlu1 %1035 }
 0x418   :  { %v1034_v8 = vpop.permute.xlu0 %1033  ;;  %1057 = vst.msk [vmem:[#allocation3 + $0x10] sm:$0xff] %vm264_vm3, %v1036_v59 }
 0x419   :  { %1056 = vst.msk [vmem:[#allocation3 + $0x8] sm:$0xff] %vm264_vm3, %v1034_v8  ;;  %1417 = vrot.lane.b32.xlu1 %v1396_v17, %s3604_s27 }
 0x41a   :  { %1415 = vrot.lane.b32.xlu0 %v1395_v53, %s3604_s27 }
 0x41b   :  { %v1038_v18 = vpop.permute.xlu1 %1037 }
 0x41c   :  { %v1192_v32 = vpop.permute.xlu0 %1191  ;;  %1058 = vst.msk [vmem:[#allocation3 + $0x18] sm:$0xff] %vm264_vm3, %v1038_v18 }
 0x41d   :  { %1421 = vrot.lane.b32.xlu1 %v1398_v11, %s3604_s27 }
 0x41e   :  { %1419 = vrot.lane.b32.xlu0 %v1397_v14, %s3604_s27 }
 0x41f   :  { %v1194_v12 = vpop.permute.xlu1 %1193 }
 0x420   :  { %v1196_v31 = vpop.permute.xlu0 %1195 }
 0x423   :  { %v1198_v13 = vpop.permute.xlu1 %1197 }
 0x424   :  { %v1352_v15 = vpop.permute.xlu0 %1351 }
 0x427   :  { %v1354_v54 = vpop.permute.xlu1 %1353 }
 0x428   :  { %v1356_v58 = vpop.permute.xlu0 %1355 }
 0x42b   :  { %v1358_v39 = vpop.permute.xlu1 %1357 }
 0x42c   :  { %v1040_v36 = vpop.permute.xlu0 %1039 }
 0x42d   :  { %1059 = vst.msk [vmem:[#allocation3 + $0x20] sm:$0xff] %vm264_vm3, %v1040_v36 }
 0x42f   :  { %v1042_v50 = vpop.permute.xlu1 %1041 }
 0x430   :  { %v1044_v16 = vpop.permute.xlu0 %1043  ;;  %1060 = vst.msk [vmem:[#allocation3 + $0x28] sm:$0xff] %vm264_vm3, %v1042_v50 }
 0x431   :  { %1061 = vst.msk [vmem:[#allocation3 + $0x30] sm:$0xff] %vm264_vm3, %v1044_v16 }
 0x433   :  { %v1046_v20 = vpop.permute.xlu1 %1045 }
 0x434   :  { %v4445_v21 = vpop.permute.xlu0 %1199  ;;  %1062 = vst.msk [vmem:[#allocation3 + $0x38] sm:$0xff] %vm264_vm3, %v1046_v20 }
 0x437   :  { %v4448_v60 = vpop.permute.xlu1 %1201 }
 0x438   :  { %v4450_v45 = vpop.permute.xlu0 %1203 }
 0x43b   :  { %v4452_v47 = vpop.permute.xlu1 %1205 }
 0x43c   :  { %v4454_v25 = vpop.permute.xlu0 %1359 }
 0x43f   :  { %v4456_v26 = vpop.permute.xlu1 %1361 }
 0x440   :  { %v4458_v48 = vpop.permute.xlu0 %1363 }
 0x443   :  { %v1090_v38 = vpop.permute.xlu1 %1089 }
 0x444   :  { %v1088_v49 = vpop.permute.xlu0 %1087  ;;  %1112 = vst.msk [vmem:[#allocation3 + $0x8] sm:$0xff] %vm361_vm4, %v1090_v38 }
 0x445   :  { %1111 = vst.msk [vmem:[#allocation3] sm:$0xff] %vm361_vm4, %v1088_v49 }
 0x447   :  { %v1094_v43 = vpop.permute.xlu1 %1093 }
 0x448   :  { %v1092_v44 = vpop.permute.xlu0 %1091  ;;  %1114 = vst.msk [vmem:[#allocation3 + $0x18] sm:$0xff] %vm361_vm4, %v1094_v43 }
 0x449   :  { %1113 = vst.msk [vmem:[#allocation3 + $0x10] sm:$0xff] %vm361_vm4, %v1092_v44 }
 0x44b   :  { %v1146_v19 = vpop.permute.xlu1 %1145 }
 0x44c   :  { %v1144_v29 = vpop.permute.xlu0 %1143  ;;  %1168 = vst.msk [vmem:[#allocation3 + $0x8] sm:$0xff] %vm418_vm5, %v1146_v19 }
 0x44d   :  { %1167 = vst.msk [vmem:[#allocation3] sm:$0xff] %vm418_vm5, %v1144_v29 }
 0x44e   :  { %1216 = vst.msk [vmem:[#allocation3 + $0x8] sm:$0xff] %vm467_vm6, %v1194_v12  ;;  %1215 = vst.msk [vmem:[#allocation3] sm:$0xff] %vm467_vm6, %v1192_v32  ;;  %v1739_v12 = vld [vmem:[#allocation2 + $0x7] sm:$0xff] }
 0x44f   :  { %v1150_v7 = vpop.permute.xlu1 %1149 }
 0x450   :  { %v1148_v37 = vpop.permute.xlu0 %1147  ;;  %1170 = vst.msk [vmem:[#allocation3 + $0x18] sm:$0xff] %vm418_vm5, %v1150_v7 }
 0x451   :  { %1169 = vst.msk [vmem:[#allocation3 + $0x10] sm:$0xff] %vm418_vm5, %v1148_v37 }
 0x452   :  { %1218 = vst.msk [vmem:[#allocation3 + $0x18] sm:$0xff] %vm467_vm6, %v1198_v13  ;;  %1217 = vst.msk [vmem:[#allocation3 + $0x10] sm:$0xff] %vm467_vm6, %v1196_v31 }
 0x453   :  { %v1250_v5 = vpop.permute.xlu1 %1249 }
 0x454   :  { %v1248_v0 = vpop.permute.xlu0 %1247  ;;  %1272 = vst.msk [vmem:[#allocation3 + $0x8] sm:$0xff] %vm524_vm7, %v1250_v5 }
 0x455   :  { %1271 = vst.msk [vmem:[#allocation3] sm:$0xff] %vm524_vm7, %v1248_v0 }
 0x457   :  { %v1254_v61 = vpop.permute.xlu1 %1253 }
 0x458   :  { %v1252_v59 = vpop.permute.xlu0 %1251  ;;  %1274 = vst.msk [vmem:[#allocation3 + $0x18] sm:$0xff] %vm524_vm7, %v1254_v61 }
 0x459   :  { %1273 = vst.msk [vmem:[#allocation3 + $0x10] sm:$0xff] %vm524_vm7, %v1252_v59 }
 0x45b   :  { %v1306_v17 = vpop.permute.xlu1 %1305 }
 0x45c   :  { %v1304_v8 = vpop.permute.xlu0 %1303  ;;  %1328 = vst.msk [vmem:[#allocation3 + $0x8] sm:$0xff] %vm581_vm8, %v1306_v17 }
 0x45d   :  { %1327 = vst.msk [vmem:[#allocation3] sm:$0xff] %vm581_vm8, %v1304_v8 }
 0x45e   :  { %1376 = vst.msk [vmem:[#allocation3 + $0x8] sm:$0xff] %vm630_vm9, %v1354_v54  ;;  %1375 = vst.msk [vmem:[#allocation3] sm:$0xff] %vm630_vm9, %v1352_v15  ;;  %v1747_v15 = vmul.f32 %v1739_v12, %v3943_v24 }
 0x45f   :  { %v1310_v53 = vpop.permute.xlu1 %1309 }
 0x460   :  { %v1308_v63 = vpop.permute.xlu0 %1307  ;;  %1330 = vst.msk [vmem:[#allocation3 + $0x18] sm:$0xff] %vm581_vm8, %v1310_v53 }
 0x461   :  { %1329 = vst.msk [vmem:[#allocation3 + $0x10] sm:$0xff] %vm581_vm8, %v1308_v63 }
 0x462   :  { %1378 = vst.msk [vmem:[#allocation3 + $0x18] sm:$0xff] %vm630_vm9, %v1358_v39  ;;  %1377 = vst.msk [vmem:[#allocation3 + $0x10] sm:$0xff] %vm630_vm9, %v1356_v58 }
 0x463   :  { %v1410_v18 = vpop.permute.xlu1 %1409 }
 0x464   :  { %v1408_v11 = vpop.permute.xlu0 %1407  ;;  %1432 = vst.msk [vmem:[#allocation3 + $0x8] sm:$0xff] %vm687_vm10, %v1410_v18 }
 0x465   :  { %1431 = vst.msk [vmem:[#allocation3] sm:$0xff] %vm687_vm10, %v1408_v11 }
 0x467   :  { %v1414_v32 = vpop.permute.xlu1 %1413 }
 0x468   :  { %v1412_v14 = vpop.permute.xlu0 %1411  ;;  %1434 = vst.msk [vmem:[#allocation3 + $0x18] sm:$0xff] %vm687_vm10, %v1414_v32 }
 0x469   :  { %1433 = vst.msk [vmem:[#allocation3 + $0x10] sm:$0xff] %vm687_vm10, %v1412_v14 }
 0x46b   :  { %v1098_v31 = vpop.permute.xlu1 %1097  ;;  %v1440_v13 = vld [vmem:[#allocation3 + $0x8] sm:$0xff] }
 0x46c   :  { %v1096_v54 = vpop.permute.xlu0 %1095  ;;  %1116 = vst.msk [vmem:[#allocation3 + $0x28] sm:$0xff] %vm361_vm4, %v1098_v31  ;;  %v1439_v58 = vld [vmem:[#allocation3] sm:$0xff] }
 0x46d   :  { %1115 = vst.msk [vmem:[#allocation3 + $0x20] sm:$0xff] %vm361_vm4, %v1096_v54  ;;  %v1447_v39 = vpack.c.bf16 %v1440_v13, %v1439_v58 }
 0x46e   :  { %1755 = vst.msk [vmem:[#allocation3] sm:$0xff] %vm151_vm1, %v1747_v15 }
 0x46f   :  { %3450 = vmatprep.mubr.msk.bf16.mxu1 %vm728_vm11, %v1447_v39  ;;  %v1102_v36 = vpop.permute.xlu1 %1101  ;;  %v1442_v50 = vld [vmem:[#allocation3 + $0x18] sm:$0xff] }
 0x470   :  { %v1100_v16 = vpop.permute.xlu0 %1099  ;;  %1118 = vst.msk [vmem:[#allocation3 + $0x38] sm:$0xff] %vm361_vm4, %v1102_v36  ;;  %v1441_v20 = vld [vmem:[#allocation3 + $0x10] sm:$0xff] }
 0x471   :  { %1117 = vst.msk [vmem:[#allocation3 + $0x30] sm:$0xff] %vm361_vm4, %v1100_v16  ;;  %v1448_v38 = vpack.c.bf16 %v1442_v50, %v1441_v20 }
 0x473   :  { %3451 = vmatmul.mubr.msk.bf16.vlgmr.msra.gmra.mxu1 %vm728_vm11, %v1448_v38  ;;  %v1154_v49 = vpop.permute.xlu1 %1153 }
 0x474   :  { %v1152_v43 = vpop.permute.xlu0 %1151  ;;  %1172 = vst.msk [vmem:[#allocation3 + $0x28] sm:$0xff] %vm418_vm5, %v1154_v49 }
 0x475   :  { %1171 = vst.msk [vmem:[#allocation3 + $0x20] sm:$0xff] %vm418_vm5, %v1152_v43 }
 0x476   :  { %1220 = vst.msk [vmem:[#allocation3 + $0x28] sm:$0xff] %vm467_vm6, %v4448_v60  ;;  %1219 = vst.msk [vmem:[#allocation3 + $0x20] sm:$0xff] %vm467_vm6, %v4445_v21 }
 0x477   :  { %v1158_v44 = vpop.permute.xlu1 %1157 }
 0x478   :  { %v1156_v19 = vpop.permute.xlu0 %1155  ;;  %1174 = vst.msk [vmem:[#allocation3 + $0x38] sm:$0xff] %vm418_vm5, %v1158_v44 }
 0x479   :  { %1173 = vst.msk [vmem:[#allocation3 + $0x30] sm:$0xff] %vm418_vm5, %v1156_v19 }
 0x47a   :  { %1222 = vst.msk [vmem:[#allocation3 + $0x38] sm:$0xff] %vm467_vm6, %v4452_v47  ;;  %1221 = vst.msk [vmem:[#allocation3 + $0x30] sm:$0xff] %vm467_vm6, %v4450_v45 }
 0x47b   :  { %v1258_v29 = vpop.permute.xlu1 %1257 }
 0x47c   :  { %v1256_v7 = vpop.permute.xlu0 %1255  ;;  %1276 = vst.msk [vmem:[#allocation3 + $0x28] sm:$0xff] %vm524_vm7, %v1258_v29 }
 0x47d   :  { %1275 = vst.msk [vmem:[#allocation3 + $0x20] sm:$0xff] %vm524_vm7, %v1256_v7 }
 0x47f   :  { %v1262_v60 = vpop.permute.xlu1 %1261 }
 0x480   :  { %v1260_v21 = vpop.permute.xlu0 %1259  ;;  %1278 = vst.msk [vmem:[#allocation3 + $0x38] sm:$0xff] %vm524_vm7, %v1262_v60 }
 0x481   :  { %1277 = vst.msk [vmem:[#allocation3 + $0x30] sm:$0xff] %vm524_vm7, %v1260_v21 }
 0x483   :  { %v1314_v37 = vpop.permute.xlu1 %1313 }
 0x484   :  { %v1312_v5 = vpop.permute.xlu0 %1311  ;;  %1332 = vst.msk [vmem:[#allocation3 + $0x28] sm:$0xff] %vm581_vm8, %v1314_v37 }
 0x485   :  { %1331 = vst.msk [vmem:[#allocation3 + $0x20] sm:$0xff] %vm581_vm8, %v1312_v5 }
 0x486   :  { %1380 = vst.msk [vmem:[#allocation3 + $0x28] sm:$0xff] %vm630_vm9, %v4456_v26  ;;  %1379 = vst.msk [vmem:[#allocation3 + $0x20] sm:$0xff] %vm630_vm9, %v4454_v25 }
 0x487   :  { %v1318_v45 = vpop.permute.xlu1 %1317 }
 0x488   :  { %v1316_v47 = vpop.permute.xlu0 %1315  ;;  %1334 = vst.msk [vmem:[#allocation3 + $0x38] sm:$0xff] %vm581_vm8, %v1318_v45 }
 0x489   :  { %1333 = vst.msk [vmem:[#allocation3 + $0x30] sm:$0xff] %vm581_vm8, %v1316_v47 }
 0x48a   :  { %1382 = vst.msk [vmem:[#allocation3 + $0x38] sm:$0xff] %vm630_vm9, %v4424_v30  ;;  %1381 = vst.msk [vmem:[#allocation3 + $0x30] sm:$0xff] %vm630_vm9, %v4458_v48 }
 0x48b   :  { %v1418_v0 = vpop.permute.xlu1 %1417 }
 0x48c   :  { %v1416_v61 = vpop.permute.xlu0 %1415  ;;  %1436 = vst.msk [vmem:[#allocation3 + $0x28] sm:$0xff] %vm687_vm10, %v1418_v0 }
 0x48d   :  { %1435 = vst.msk [vmem:[#allocation3 + $0x20] sm:$0xff] %vm687_vm10, %v1416_v61 }
 0x48f   :  { %v1422_v26 = vpop.permute.xlu1 %1421 }
 0x490   :  { %v1420_v25 = vpop.permute.xlu0 %1419  ;;  %1438 = vst.msk [vmem:[#allocation3 + $0x38] sm:$0xff] %vm687_vm10, %v1422_v26 }
 0x491   :  { %1437 = vst.msk [vmem:[#allocation3 + $0x30] sm:$0xff] %vm687_vm10, %v1420_v25 }
 0x493   :  { %v1444_v59 = vld [vmem:[#allocation3 + $0x28] sm:$0xff] }
 0x494   :  { %v1443_v17 = vld [vmem:[#allocation3 + $0x20] sm:$0xff] }
 0x495   :  { %v1449_v8 = vpack.c.bf16 %v1444_v59, %v1443_v17 }
 0x497   :  { %3454 = vmatprep.mubr.msk.bf16.mxu1 %vm728_vm11, %v1449_v8  ;;  %v1446_v30 = vld [vmem:[#allocation3 + $0x38] sm:$0xff] }
 0x498   :  { %v1445_v53 = vld [vmem:[#allocation3 + $0x30] sm:$0xff] }
 0x499   :  { %v1450_v48 = vpack.c.bf16 %v1446_v30, %v1445_v53 }
 0x49b   :  { %3455 = vmatmul.mubr.msk.bf16.gmra.mxu1 %vm728_vm11, %v1450_v48 }
 0x533   :  { %v3452_v63 = vpop.f32.mrf.mxu1 }
 0x534   :  { %v1557_v12 = vsel %vm151_vm1, %v3452_v63, 0.0 }
 0x535   :  { %v1520_v18 = vpop.f32.mrf.mxu1 }
 0x536   :  { %v1551_v11 = vsel %vm151_vm1, %v1520_v18, 0.0 }
 0x537   :  { %1552 = vadd.xlane.f32.xlu0 %v1551_v11  ;;  %v3453_v32 = vpop.f32.mrf.mxu1 }
 0x538   :  { %v1560_v13 = vsel %vm151_vm1, %v3453_v32, 0.0 }
 0x539   :  { %v1523_v14 = vpop.f32.mrf.mxu1 }
 0x53a   :  { %v1554_v31 = vsel %vm151_vm1, %v1523_v14, 0.0 }
 0x53b   :  { %1558 = vadd.xlane.f32.xlu0 %v1557_v12  ;;  %1555 = vadd.xlane.f32.xlu1 %v1554_v31 }
 0x53f   :  { %1561 = vadd.xlane.f32.xlu0 %v1560_v13 }
 0x55b   :  { %v3456_v15 = vpop.f32.mrf.mxu1 }
 0x55c   :  { %v1569_v50 = vsel %vm151_vm1, %v3456_v15, 0.0 }
 0x55d   :  { %v1536_v54 = vpop.f32.mrf.mxu1 }
 0x55e   :  { %v1563_v58 = vsel %vm151_vm1, %v1536_v54, 0.0 }
 0x55f   :  { %1564 = vadd.xlane.f32.xlu1 %v1563_v58  ;;  %v3457_v39 = vpop.f32.mrf.mxu1 }
 0x560   :  { %v1572_v20 = vsel %vm151_vm1, %v3457_v39, 0.0 }
 0x561   :  { %v1539_v36 = vpop.f32.mrf.mxu1 }
 0x562   :  { %v1566_v16 = vsel %vm151_vm1, %v1539_v36, 0.0 }
 0x563   :  { %1570 = vadd.xlane.f32.xlu1 %v1569_v50  ;;  %1567 = vadd.xlane.f32.xlu0 %v1566_v16 }
 0x567   :  { %1573 = vadd.xlane.f32.xlu0 %v1572_v20 }
 0x5c0   :  { %v1553_v38 = vpop.xlane.xlu0 %1552 }
 0x5c4   :  { %v1556_v49 = vpop.xlane.xlu1 %1555  ;;  %v1559_v43 = vpop.xlane.xlu0 %1558 }
 0x5c5   :  { %v1575_v44 = vadd.f32 %v1556_v49, %v1553_v38 }
 0x5c7   :  { %v1576_v19 = vadd.f32 %v1575_v44, %v1559_v43 }
 0x5c8   :  { %v1562_v29 = vpop.xlane.xlu0 %1561 }
 0x5c9   :  { %v1577_v60 = vadd.f32 %v1576_v19, %v1562_v29 }
 0x5e8   :  { %v1565_v7 = vpop.xlane.xlu1 %1564 }
 0x5e9   :  { %v1578_v21 = vadd.f32 %v1577_v60, %v1565_v7  ;;  %v1763_v60 = vld [vmem:[#allocation2 + $0x8] sm:$0xff] }
 0x5ec   :  { %v1568_v37 = vpop.xlane.xlu0 %1567  ;;  %v1571_v45 = vpop.xlane.xlu1 %1570 }
 0x5ed   :  { %v1579_v5 = vadd.f32 %v1578_v21, %v1568_v37  ;;  %v2090_v21 = vld [vmem:[#allocation2 + $0x50] sm:$0xff] }
 0x5ef   :  { %v1580_v47 = vadd.f32 %v1579_v5, %v1571_v45 }
 0x5f0   :  { %v1574_v0 = vpop.xlane.xlu0 %1573 }
 0x5f1   :  { %v1581_v61 = vadd.f32 %v1580_v47, %v1574_v0 }
 0x5f3   :  { %v1582_v26 = vrot.slane %v1581_v61, 4 }
 0x5f5   :  { %v1583_v25 = vadd.f32 %v1582_v26, %v1581_v61 }
 0x5f7   :  { %v1584_v59 = vrot.slane %v1583_v25, 2 }
 0x5f9   :  { %v1585_v17 = vadd.f32 %v1584_v59, %v1583_v25 }
 0x5fb   :  { %v1586_v8 = vrot.slane %v1585_v17, 1 }
 0x5fd   :  { %v1587_v30 = vadd.f32 %v1586_v8, %v1585_v17 }
 0x5ff   :  { %v1588_v53 = vmul.f32 0.00390625, %v1587_v30 }
 0x601   :  { %v4538_v48 = vsub.f32 %v1523_v14, %v1588_v53  ;;  %v4540_v11 = vsub.f32 %v1520_v18, %v1588_v53  ;;  %v4542_v12 = vsub.f32 %v3453_v32, %v1588_v53  ;;  %v4544_v31 = vsub.f32 %v3452_v63, %v1588_v53 }
 0x602   :  { %v4550_v50 = vsub.f32 %v1539_v36, %v1588_v53  ;;  %v1593_v16 = vsub.f32 %v1536_v54, %v1588_v53  ;;  %v1596_v32 = vsub.f32 %v3457_v39, %v1588_v53  ;;  %v1595_v38 = vsub.f32 %v3456_v15, %v1588_v53 }
 0x603   :  { %v1598_v13 = vmul.f32 %v4538_v48, %v4538_v48  ;;  %v1597_v58 = vmul.f32 %v4540_v11, %v4540_v11  ;;  %v1600_v18 = vmul.f32 %v4542_v12, %v4542_v12  ;;  %v1599_v63 = vmul.f32 %v4544_v31, %v4544_v31 }
 0x604   :  { %v1602_v54 = vmul.f32 %v4550_v50, %v4550_v50  ;;  %v1601_v43 = vmul.f32 %v1593_v16, %v1593_v16  ;;  %v1604_v29 = vmul.f32 %v1596_v32, %v1596_v32  ;;  %v1603_v7 = vmul.f32 %v1595_v38, %v1595_v38 }
 0x605   :  { %v1608_v20 = vsel %vm151_vm1, %v1598_v13, 0.0  ;;  %v1605_v14 = vsel %vm151_vm1, %v1597_v58, 0.0  ;;  %v1614_v49 = vsel %vm151_vm1, %v1600_v18, 0.0  ;;  %v1611_v36 = vsel %vm151_vm1, %v1599_v63, 0.0 }
 0x606   :  { %1609 = vadd.xlane.f32.xlu0 %v1608_v20  ;;  %1606 = vadd.xlane.f32.xlu1 %v1605_v14  ;;  %v1620_v44 = vsel %vm151_vm1, %v1602_v54, 0.0  ;;  %v1617_v19 = vsel %vm151_vm1, %v1601_v43, 0.0  ;;  %v1626_v15 = vsel %vm151_vm1, %v1604_v29, 0.0  ;;  %v1623_v39 = vsel %vm151_vm1, %v1603_v7, 0.0 }
 0x60a   :  { %1615 = vadd.xlane.f32.xlu0 %v1614_v49  ;;  %1612 = vadd.xlane.f32.xlu1 %v1611_v36 }
 0x60e   :  { %1621 = vadd.xlane.f32.xlu0 %v1620_v44  ;;  %1618 = vadd.xlane.f32.xlu1 %v1617_v19  ;;  %v3372_v19 = vld [vmem:[%s5312_s6] ss:$0 sm:$0xff] }
 0x612   :  { %1627 = vadd.xlane.f32.xlu0 %v1626_v15  ;;  %1624 = vadd.xlane.f32.xlu1 %v1623_v39 }
 0x623   :  { %1779 = vrot.lane.b32.xlu1 %v1763_v60, %s3597_s28  ;;  %v3373_v60 = vld [vmem:[%s5313_s7] ss:$0 sm:$0xff] }
 0x627   :  { %2113 = vrot.lane.b32.xlu1 %v2090_v21, %s3599_s22 }
 0x68f   :  { %v1610_v37 = vpop.xlane.xlu0 %1609  ;;  %v1607_v5 = vpop.xlane.xlu1 %1606 }
 0x690   :  { %v1629_v45 = vadd.f32 %v1610_v37, %v1607_v5 }
 0x693   :  { %v1616_v47 = vpop.xlane.xlu0 %1615  ;;  %v1613_v0 = vpop.xlane.xlu1 %1612 }
 0x694   :  { %v1630_v61 = vadd.f32 %v1629_v45, %v1613_v0 }
 0x696   :  { %v1631_v26 = vadd.f32 %v1630_v61, %v1616_v47 }
 0x697   :  { %v1622_v25 = vpop.xlane.xlu0 %1621  ;;  %v1619_v59 = vpop.xlane.xlu1 %1618 }
 0x698   :  { %v1632_v17 = vadd.f32 %v1631_v26, %v1619_v59 }
 0x69a   :  { %v1633_v8 = vadd.f32 %v1632_v17, %v1622_v25 }
 0x69b   :  { %v1625_v30 = vpop.xlane.xlu1 %1624  ;;  %v1628_v13 = vpop.xlane.xlu0 %1627 }
 0x69c   :  { %v1634_v53 = vadd.f32 %v1633_v8, %v1625_v30 }
 0x69e   :  { %v1635_v58 = vadd.f32 %v1634_v53, %v1628_v13 }
 0x6a0   :  { %v1636_v20 = vrot.slane %v1635_v58, 4 }
 0x6a2   :  { %v1637_v14 = vadd.f32 %v1636_v20, %v1635_v58 }
 0x6a4   :  { %v1638_v18 = vrot.slane %v1637_v14, 2 }
 0x6a6   :  { %v1639_v63 = vadd.f32 %v1638_v18, %v1637_v14 }
 0x6a8   :  { %v1640_v49 = vrot.slane %v1639_v63, 1 }
 0x6aa   :  { %v1641_v36 = vadd.f32 %v1640_v49, %v1639_v63 }
 0x6ac   :  { %v1642_v54 = vmul.f32 0.00390625, %v1641_v36 }
 0x6ae   :  { %v1643_v43 = vadd.f32 1e-05, %v1642_v54 }
 0x6b0   :  { %3553 = vrsqrt.f32 %v1643_v43 }
 0x6bd   :  { %v3554_v44 = vpop.eup %3553 }
 0x6be   :  { %v1645_v29 = vmul.f32 %v3554_v44, %v4540_v11  ;;  %v1646_v7 = vmul.f32 %v3554_v44, %v4538_v48  ;;  %v1647_v15 = vmul.f32 %v3554_v44, %v4544_v31  ;;  %v1648_v39 = vmul.f32 %v3554_v44, %v4542_v12 }
 0x6bf   :  { %v1649_v21 = vmul.f32 %v3554_v44, %v1593_v16  ;;  %v1650_v37 = vmul.f32 %v3554_v44, %v4550_v50  ;;  %v1651_v5 = vmul.f32 %v3554_v44, %v1595_v38  ;;  %v1652_v45 = vmul.f32 %v3554_v44, %v1596_v32 }
 0x6c0   :  { %v1660_v47 = vmul.f32 %v3372_v19, %v1645_v29  ;;  %v1661_v0 = vmul.f32 %v3372_v19, %v1646_v7  ;;  %v1662_v61 = vmul.f32 %v3372_v19, %v1647_v15  ;;  %v1663_v26 = vmul.f32 %v3372_v19, %v1648_v39 }
 0x6c1   :  { %v1664_v11 = vmul.f32 %v3372_v19, %v1649_v21  ;;  %v1665_v25 = vmul.f32 %v3372_v19, %v1650_v37  ;;  %v1666_v48 = vmul.f32 %v3372_v19, %v1651_v5  ;;  %v1667_v59 = vmul.f32 %v3372_v19, %v1652_v45 }
 0x6c2   :  { %v1675_v31 = vadd.f32 %v3373_v60, %v1660_v47  ;;  %v1676_v17 = vadd.f32 %v3373_v60, %v1661_v0  ;;  %v1677_v12 = vadd.f32 %v3373_v60, %v1662_v61  ;;  %v1678_v8 = vadd.f32 %v3373_v60, %v1663_v26 }
 0x6c3   :  { %v1679_v30 = vadd.f32 %v3373_v60, %v1664_v11  ;;  %v1680_v53 = vadd.f32 %v3373_v60, %v1665_v25  ;;  %v1681_v13 = vadd.f32 %v3373_v60, %v1666_v48  ;;  %v1682_v38 = vadd.f32 %v3373_v60, %v1667_v59 }
 0x6c4   :  { %v1683_v16 = vadd.f32 %v1675_v31, %v3810_v33  ;;  %v1684_v50 = vadd.f32 %v1676_v17, %v3788_v23  ;;  %v1685_v32 = vadd.f32 %v1677_v12, %v3827_v41  ;;  %v1686_v58 = vadd.f32 %v1678_v8, %v3840_v46  ;;  %v1780_v46 = vpop.permute.xlu1 %1779 }
 0x6c5   :  { %v1687_v20 = vadd.f32 %v1679_v30, %v3864_v56  ;;  %v1688_v14 = vadd.f32 %v1680_v53, %v3875_v62  ;;  %v1689_v18 = vadd.f32 %v1681_v13, %v3882_v1  ;;  %v1690_v54 = vadd.f32 %v1682_v38, %v3894_v6  ;;  %1803 = vst.msk [vmem:[#allocation3] sm:$0xff] %vm264_vm3, %v1780_v46 }
 0x6c6   :  { %v1699_v63 = vmul.f32 0.70710677, %v1683_v16  ;;  %v1700_v49 = vmul.f32 0.70710677, %v1684_v50  ;;  %v1701_v36 = vmul.f32 0.70710677, %v1685_v32 }
 0x6c7   :  { %v1702_v43 = vmul.f32 0.70710677, %v1686_v58  ;;  %v1703_v33 = vmul.f32 0.70710677, %v1687_v20  ;;  %v1704_v23 = vmul.f32 0.70710677, %v1688_v14 }
 0x6c8   :  { %3555 = verf.f32 %v1699_v63  ;;  %v1705_v41 = vmul.f32 0.70710677, %v1689_v18  ;;  %v1706_v44 = vmul.f32 0.70710677, %v1690_v54  ;;  %v1691_v1 = vmul.f32 0.5, %v1683_v16 }
 0x6c9   :  { %3557 = verf.f32 %v1700_v49  ;;  %v1692_v29 = vmul.f32 0.5, %v1684_v50  ;;  %v1693_v39 = vmul.f32 0.5, %v1685_v32  ;;  %v1694_v5 = vmul.f32 0.5, %v1686_v58 }
 0x6ca   :  { %3559 = verf.f32 %v1701_v36  ;;  %v1695_v61 = vmul.f32 0.5, %v1687_v20  ;;  %v1696_v48 = vmul.f32 0.5, %v1688_v14  ;;  %v1697_v12 = vmul.f32 0.5, %v1689_v18 }
 0x6cb   :  { %3561 = verf.f32 %v1702_v43  ;;  %v1698_v53 = vmul.f32 0.5, %v1690_v54 }
 0x6cc   :  { %3563 = verf.f32 %v1703_v33 }
 0x6cd   :  { %3565 = verf.f32 %v1704_v23 }
 0x6ce   :  { %3567 = verf.f32 %v1705_v41 }
 0x6cf   :  { %3569 = verf.f32 %v1706_v44 }
 0x6d5   :  { %v3556_v56 = vpop.eup %3555 }
 0x6d6   :  { %v3558_v62 = vpop.eup %3557  ;;  %v1715_v6 = vadd.f32 1.0, %v3556_v56 }
 0x6d7   :  { %v3560_v19 = vpop.eup %3559  ;;  %v1716_v7 = vadd.f32 1.0, %v3558_v62 }
 0x6d8   :  { %v3562_v15 = vpop.eup %3561  ;;  %v1717_v60 = vadd.f32 1.0, %v3560_v19  ;;  %v1723_v21 = vmul.f32 %v1715_v6, %v1691_v1 }
 0x6d9   :  { %v3564_v37 = vpop.eup %3563  ;;  %v1718_v45 = vadd.f32 1.0, %v3562_v15  ;;  %v1724_v47 = vmul.f32 %v1716_v7, %v1692_v29 }
 0x6da   :  { %v3566_v0 = vpop.eup %3565  ;;  %v1719_v26 = vadd.f32 1.0, %v3564_v37  ;;  %v1725_v11 = vmul.f32 %v1717_v60, %v1693_v39  ;;  %1731 = vst.msk [vmem:[#allocation2 + $0x10] sm:$0xff] %vm151_vm1, %v1723_v21 }
 0x6db   :  { %v3568_v25 = vpop.eup %3567  ;;  %v1720_v59 = vadd.f32 1.0, %v3566_v0  ;;  %v1726_v31 = vmul.f32 %v1718_v45, %v1694_v5  ;;  %1732 = vst.msk [vmem:[#allocation2 + $0x18] sm:$0xff] %vm151_vm1, %v1724_v47 }
 0x6dc   :  { %v3570_v17 = vpop.eup %3569  ;;  %v1721_v8 = vadd.f32 1.0, %v3568_v25  ;;  %v1727_v30 = vmul.f32 %v1719_v26, %v1695_v61  ;;  %1733 = vst.msk [vmem:[#allocation2 + $0x20] sm:$0xff] %vm151_vm1, %v1725_v11 }
 0x6dd   :  { %v1722_v13 = vadd.f32 1.0, %v3570_v17  ;;  %v1728_v16 = vmul.f32 %v1720_v59, %v1696_v48  ;;  %1734 = vst.msk [vmem:[#allocation2 + $0x28] sm:$0xff] %vm151_vm1, %v1726_v31 }
 0x6de   :  { %v1729_v50 = vmul.f32 %v1721_v8, %v1697_v12  ;;  %1735 = vst.msk [vmem:[#allocation2 + $0x30] sm:$0xff] %vm151_vm1, %v1727_v30  ;;  %v3525_v12 = vld [vmem:[%s5314_s8 + $0x10] ss:$0 sps:$4 sm:$0x33]  }
 0x6df   :  { %v1730_v32 = vmul.f32 %v1722_v13, %v1698_v53  ;;  %1736 = vst.msk [vmem:[#allocation2 + $0x38] sm:$0xff] %vm151_vm1, %v1728_v16  ;;  %3500 = vmatprep.subr.msk.bf16.mxu0 %vm741_vm2, %v3525_v12  ;;  %v2232_v53 = vsel %vm741_vm2, %v3525_v12, 0  ;;  %v3526_v13 = vld [vmem:[%s5314_s8 + $0x8] sm:$0xff]   ;;  %vm2764_vm2 = vcmask 392512  }
 0x6e0   :  { %1737 = vst.msk [vmem:[#allocation2 + $0x40] sm:$0xff] %vm151_vm1, %v1729_v50  ;;  %3459 = vmatpush3.bf16.msra.mxu0 %v2232_v53 }
 0x6e1   :  { %1738 = vst.msk [vmem:[#allocation2 + $0x48] sm:$0xff] %vm151_vm1, %v1730_v32  ;;  %v1764_v38 = vld [vmem:[#allocation2 + $0x10] sm:$0xff]  ;;  %3460 = vmatprep.subr.bf16.mxu0 %v3526_v13  ;;  %v3527_v32 = vld [vmem:[%s5314_s8] sm:$0xff]   ;;  %s3605_s8 = smov 56  }
 0x6e2   :  { %v1867_v58 = vld [vmem:[#allocation2 + $0xf] sm:$0xff]  ;;  %v1765_v20 = vld [vmem:[#allocation2 + $0x18] sm:$0xff]  ;;  %1781 = vrot.lane.b32.xlu0 %v1764_v38, %s3597_s28 }
 0x6e3   :  { %v1748_v14 = vmul.f32 %v1867_v58, %v3950_v28  ;;  %1783 = vrot.lane.b32.xlu1 %v1765_v20, %s3597_s28  ;;  %v1766_v18 = vld [vmem:[#allocation2 + $0x20] sm:$0xff]  ;;  %v4602_v63 = vld [vmem:[#allocation2 + $0x17] sm:$0xff]  ;;  %v1811_v15 = vld [vmem:[#allocation2 + $0x9] sm:$0xff]  ;;  %v1875_v0 = vmul.f32 %v1867_v58, %v3943_v24 }
 0x6e4   :  { %v4604_v49 = vld [vmem:[#allocation2 + $0x27] sm:$0xff]  ;;  %v4606_v36 = vld [vmem:[#allocation2 + $0x1f] sm:$0xff]  ;;  %v1749_v23 = vmul.f32 %v4602_v63, %v3971_v40  ;;  %v1812_v39 = vld [vmem:[#allocation2 + $0x11] sm:$0xff]  ;;  %v1819_v60 = vmul.f32 %v1811_v15, %v3941_v22  ;;  %v1876_v61 = vmul.f32 %v4602_v63, %v3950_v28  ;;  %v2035_v8 = vmul.f32 %v4602_v63, %v3943_v24  ;;  %3461 = vmatpush3.bf16.msra.mxu0 %v3526_v13 }
 0x6e5   :  { %1756 = vst.msk [vmem:[#allocation3 + $0x8] sm:$0xff] %vm151_vm1, %v1748_v14  ;;  %v4609_v54 = vld [vmem:[#allocation2 + $0x2f] sm:$0xff]  ;;  %v1750_v41 = vmul.f32 %v4606_v36, %v3973_v42  ;;  %v1751_v44 = vmul.f32 %v4604_v49, %v3991_v55  ;;  %v1820_v21 = vmul.f32 %v1812_v39, %v3948_v27  ;;  %v1813_v37 = vld [vmem:[#allocation2 + $0x19] sm:$0xff]  ;;  %v1814_v5 = vld [vmem:[#allocation2 + $0x21] sm:$0xff]  ;;  %v1877_v26 = vmul.f32 %v4606_v36, %v3971_v40 }
 0x6e6   :  { %1939 = vrot.lane.b32.xlu0 %v1764_v38, %s3598_s20  ;;  %v4611_v43 = vld [vmem:[#allocation2 + $0x37] sm:$0xff]  ;;  %1757 = vst.msk [vmem:[#allocation3 + $0x10] sm:$0xff] %vm151_vm1, %v1749_v23  ;;  %v1752_v56 = vmul.f32 %v4609_v54, %v3993_v57  ;;  %v1926_v1 = vld [vmem:[#allocation2 + $0x28] sm:$0xff]  ;;  %v1821_v45 = vmul.f32 %v1813_v37, %v3956_v34  ;;  %v1822_v47 = vmul.f32 %v1814_v5, %v3958_v35 }
 0x6e7   :  { %1785 = vrot.lane.b32.xlu1 %v1766_v18, %s3597_s28  ;;  %v4613_v33 = vld [vmem:[#allocation2 + $0x3f] sm:$0xff]  ;;  %v1753_v46 = vmul.f32 %v4611_v43, %v4022_v9  ;;  %1758 = vst.msk [vmem:[#allocation3 + $0x18] sm:$0xff] %vm151_vm1, %v1750_v41  ;;  %1759 = vst.msk [vmem:[#allocation3 + $0x20] sm:$0xff] %vm151_vm1, %v1751_v44  ;;  %v2086_v6 = vld [vmem:[#allocation2 + $0x30] sm:$0xff]  ;;  %v1878_v11 = vmul.f32 %v4604_v49, %v3973_v42  ;;  %v1979_v25 = vmul.f32 %v1812_v39, %v3941_v22 }
 0x6e8   :  { %v1754_v62 = vmul.f32 %v4613_v33, %v4024_v10  ;;  %1760 = vst.msk [vmem:[#allocation3 + $0x28] sm:$0xff] %vm151_vm1, %v1752_v56  ;;  %v1769_v19 = vld [vmem:[#allocation2 + $0x38] sm:$0xff]  ;;  %v1770_v29 = vld [vmem:[#allocation2 + $0x40] sm:$0xff]  ;;  %v1930_v7 = vld [vmem:[#allocation2 + $0x48] sm:$0xff]  ;;  %v1980_v48 = vmul.f32 %v1813_v37, %v3948_v27  ;;  %v1981_v31 = vmul.f32 %v1814_v5, %v3956_v34  ;;  %v2036_v30 = vmul.f32 %v4606_v36, %v3950_v28 }
 0x6e9   :  { %1761 = vst.msk [vmem:[#allocation3 + $0x30] sm:$0xff] %vm151_vm1, %v1753_v46  ;;  %v1974_v59 = vld [vmem:[#allocation2 + $0x29] sm:$0xff]  ;;  %v2037_v16 = vmul.f32 %v4604_v49, %v3971_v40  ;;  %v2038_v50 = vmul.f32 %v4609_v54, %v3973_v42  ;;  %v2139_v38 = vmul.f32 %v1813_v37, %v3941_v22  ;;  %3462 = vmatprep.subr.bf16.mxu0 %v3527_v32  ;;  %v1817_v36 = vld [vmem:[#allocation2 + $0x39] sm:$0xff]  ;;  %v1818_v23 = vld [vmem:[#allocation2 + $0x41] sm:$0xff]  ;;  %v4742_v37 = vpop.permute.xlu1 %2113 }
 0x6ea   :  { %1943 = vrot.lane.b32.xlu0 %v1766_v18, %s3598_s20  ;;  %1762 = vst.msk [vmem:[#allocation3 + $0x38] sm:$0xff] %vm151_vm1, %v1754_v62  ;;  %v1982_v17 = vmul.f32 %v1974_v59, %v3958_v35  ;;  %v2140_v58 = vmul.f32 %v1814_v5, %v3948_v27  ;;  %3463 = vmatpush3.bf16.msra.mxu0 %v3527_v32  ;;  %v1874_v62 = vld [vmem:[#allocation2 + $0x47] sm:$0xff]  ;;  %vm2707_vm1 = vcmask 326912  }
 0x6eb   :  { %1941 = vrot.lane.b32.xlu1 %v1765_v20, %s3598_s20  ;;  %3490 = vmatprep.subr.bf16.mxu0 %v3596_v3  ;;  %v2141_v14 = vmul.f32 %v1974_v59, %v3956_v34  ;;  %v1823_v63 = vmul.f32 %v1974_v59, %v3981_v51  ;;  %v1825_v41 = vmul.f32 %v1817_v36, %v4007_v2 }
 0x6ec   :  { %v1826_v44 = vmul.f32 %v1818_v23, %v4009_v4  ;;  %v1879_v46 = vmul.f32 %v4609_v54, %v3991_v55  ;;  %v1880_v56 = vmul.f32 %v4611_v43, %v3993_v57  ;;  %v1984_v54 = vmul.f32 %v1817_v36, %v3983_v52 }
 0x6ed   :  { %v2039_v39 = vmul.f32 %v4611_v43, %v3991_v55  ;;  %v2041_v5 = vmul.f32 %v1874_v62, %v4022_v9  ;;  %v2143_v43 = vmul.f32 %v1817_v36, %v3981_v51 }
 0x6ee   :  { %2099 = vrot.lane.b32.xlu0 %v1765_v20, %s3599_s22  ;;  %v2134_v20 = vld [vmem:[#allocation2 + $0x31] sm:$0xff] }
 0x6ef   :  { %1945 = vrot.lane.b32.xlu1 %v1926_v1, %s3598_s20  ;;  %v1824_v49 = vmul.f32 %v2134_v20, %v3983_v52 }
 0x6f2   :  { %2103 = vrot.lane.b32.xlu0 %v1926_v1, %s3599_s22 }
 0x6f3   :  { %2101 = vrot.lane.b32.xlu1 %v1766_v18, %s3599_s22  ;;  %v2142_v18 = vmul.f32 %v2134_v20, %v3958_v35 }
 0x6f6   :  { %1787 = vrot.lane.b32.xlu0 %v1926_v1, %s3597_s28  ;;  %v1881_v1 = vmul.f32 %v4613_v33, %v4022_v9 }
 0x6f7   :  { %2105 = vrot.lane.b32.xlu1 %v2086_v6, %s3599_s22 }
 0x6fa   :  { %1791 = vrot.lane.b32.xlu0 %v1769_v19, %s3597_s28 }
 0x6fb   :  { %1789 = vrot.lane.b32.xlu1 %v2086_v6, %s3597_s28 }
 0x6fe   :  { %1947 = vrot.lane.b32.xlu0 %v2086_v6, %s3598_s20  ;;  %v1882_v6 = vmul.f32 %v1874_v62, %v4024_v10 }
 0x6ff   :  { %1793 = vrot.lane.b32.xlu1 %v1770_v29, %s3597_s28  ;;  %s3608_s28 = smov 64  }
 0x702   :  { %1951 = vrot.lane.b32.xlu0 %v1770_v29, %s3598_s20 }
 0x703   :  { %1949 = vrot.lane.b32.xlu1 %v1769_v19, %s3598_s20 }
 0x706   :  { %2107 = vrot.lane.b32.xlu0 %v1769_v19, %s3599_s22  ;;  %v1983_v19 = vmul.f32 %v2134_v20, %v3981_v51 }
 0x707   :  { %1953 = vrot.lane.b32.xlu1 %v1930_v7, %s3598_s20 }
 0x70a   :  { %2111 = vrot.lane.b32.xlu0 %v1930_v7, %s3599_s22  ;;  %v1985_v7 = vmul.f32 %v1818_v23, %v4007_v2 }
 0x70b   :  { %2109 = vrot.lane.b32.xlu1 %v1770_v29, %s3599_s22  ;;  %v1978_v29 = vld [vmem:[#allocation2 + $0x49] sm:$0xff] }
 0x70c   :  { %v1986_v15 = vmul.f32 %v1978_v29, %v4009_v4 }
 0x70e   :  { %1835 = vrot.lane.b32.xlu0 %v1819_v60, %s3600_s29  ;;  %v2040_v60 = vmul.f32 %v4613_v33, %v3993_v57 }
 0x70f   :  { %1837 = vrot.lane.b32.xlu1 %v1820_v21, %s3600_s29  ;;  %v2034_v21 = vld [vmem:[#allocation2 + $0x4f] sm:$0xff] }
 0x712   :  { %1839 = vrot.lane.b32.xlu0 %v1821_v45, %s3600_s29  ;;  %v2042_v45 = vmul.f32 %v2034_v21, %v4024_v10 }
 0x713   :  { %1841 = vrot.lane.b32.xlu1 %v1822_v47, %s3600_s29 }
 0x716   :  { %1891 = vrot.lane.b32.xlu0 %v1875_v0, %s3601_s18  ;;  %v2144_v0 = vmul.f32 %v1818_v23, %v3983_v52 }
 0x717   :  { %1893 = vrot.lane.b32.xlu1 %v1876_v61, %s3601_s18  ;;  %v2138_v61 = vld [vmem:[#allocation2 + $0x51] sm:$0xff] }
 0x71a   :  { %1895 = vrot.lane.b32.xlu0 %v1877_v26, %s3601_s18 }
 0x71b   :  { %1897 = vrot.lane.b32.xlu1 %v1878_v11, %s3601_s18  ;;  %v2145_v11 = vmul.f32 %v1978_v29, %v4007_v2 }
 0x71e   :  { %1995 = vrot.lane.b32.xlu0 %v1979_v25, %s3602_s21 }
 0x71f   :  { %1997 = vrot.lane.b32.xlu1 %v1980_v48, %s3602_s21  ;;  %v2146_v48 = vmul.f32 %v2138_v61, %v4009_v4 }
 0x722   :  { %1999 = vrot.lane.b32.xlu0 %v1981_v31, %s3602_s21 }
 0x723   :  { %2001 = vrot.lane.b32.xlu1 %v1982_v17, %s3602_s21 }
 0x726   :  { %2051 = vrot.lane.b32.xlu0 %v2035_v8, %s3603_s25 }
 0x727   :  { %2053 = vrot.lane.b32.xlu1 %v2036_v30, %s3603_s25 }
 0x72a   :  { %2055 = vrot.lane.b32.xlu0 %v2037_v16, %s3603_s25 }
 0x72b   :  { %2057 = vrot.lane.b32.xlu1 %v2038_v50, %s3603_s25 }
 0x72e   :  { %2155 = vrot.lane.b32.xlu0 %v2139_v38, %s3604_s27 }
 0x72f   :  { %2157 = vrot.lane.b32.xlu1 %v2140_v58, %s3604_s27 }
 0x732   :  { %2159 = vrot.lane.b32.xlu0 %v2141_v14, %s3604_s27 }
 0x733   :  { %2161 = vrot.lane.b32.xlu1 %v2142_v18, %s3604_s27 }
 0x736   :  { %1843 = vrot.lane.b32.xlu0 %v1823_v63, %s3600_s29 }
 0x737   :  { %1845 = vrot.lane.b32.xlu1 %v1824_v49, %s3600_s29 }
 0x73a   :  { %1847 = vrot.lane.b32.xlu0 %v1825_v41, %s3600_s29 }
 0x73b   :  { %1849 = vrot.lane.b32.xlu1 %v1826_v44, %s3600_s29 }
 0x73e   :  { %1899 = vrot.lane.b32.xlu0 %v1879_v46, %s3601_s18 }
 0x73f   :  { %1901 = vrot.lane.b32.xlu1 %v1880_v56, %s3601_s18 }
 0x742   :  { %1903 = vrot.lane.b32.xlu0 %v1881_v1, %s3601_s18 }
 0x743   :  { %1905 = vrot.lane.b32.xlu1 %v1882_v6, %s3601_s18 }
 0x746   :  { %2003 = vrot.lane.b32.xlu0 %v1983_v19, %s3602_s21 }
 0x747   :  { %2005 = vrot.lane.b32.xlu1 %v1984_v54, %s3602_s21 }
 0x74a   :  { %2007 = vrot.lane.b32.xlu0 %v1985_v7, %s3602_s21 }
 0x74b   :  { %2009 = vrot.lane.b32.xlu1 %v1986_v15, %s3602_s21 }
 0x74e   :  { %2059 = vrot.lane.b32.xlu0 %v2039_v39, %s3603_s25 }
 0x74f   :  { %2061 = vrot.lane.b32.xlu1 %v2040_v60, %s3603_s25 }
 0x752   :  { %2063 = vrot.lane.b32.xlu0 %v2041_v5, %s3603_s25 }
 0x753   :  { %2065 = vrot.lane.b32.xlu1 %v2042_v45, %s3603_s25 }
 0x754   :  { %v1782_v47 = vpop.permute.xlu0 %1781 }
 0x755   :  { %1804 = vst.msk [vmem:[#allocation3 + $0x8] sm:$0xff] %vm264_vm3, %v1782_v47  ;;  %v1784_v33 = vpop.permute.xlu1 %1783  ;;  %v2480_v47 = vld [vmem:[#allocation2 + $0x7] sm:$0xff] }
 0x756   :  { %1805 = vst.msk [vmem:[#allocation3 + $0x10] sm:$0xff] %vm264_vm3, %v1784_v33  ;;  %2163 = vrot.lane.b32.xlu0 %v2143_v43, %s3604_s27  ;;  %v2488_v33 = vmul.f32 %v2480_v47, %v3943_v24 }
 0x757   :  { %2165 = vrot.lane.b32.xlu1 %v2144_v0, %s3604_s27 }
 0x758   :  { %v1940_v26 = vpop.permute.xlu0 %1939 }
 0x759   :  { %v1786_v25 = vpop.permute.xlu1 %1785 }
 0x75a   :  { %1806 = vst.msk [vmem:[#allocation3 + $0x18] sm:$0xff] %vm264_vm3, %v1786_v25  ;;  %2167 = vrot.lane.b32.xlu0 %v2145_v11, %s3604_s27 }
 0x75b   :  { %2169 = vrot.lane.b32.xlu1 %v2146_v48, %s3604_s27 }
 0x75c   :  { %v1944_v59 = vpop.permute.xlu0 %1943 }
 0x75d   :  { %v1942_v31 = vpop.permute.xlu1 %1941 }
 0x760   :  { %v2100_v17 = vpop.permute.xlu0 %2099 }
 0x761   :  { %v1946_v12 = vpop.permute.xlu1 %1945 }
 0x764   :  { %v2104_v8 = vpop.permute.xlu0 %2103 }
 0x765   :  { %v2102_v30 = vpop.permute.xlu1 %2101 }
 0x768   :  { %v1788_v53 = vpop.permute.xlu0 %1787 }
 0x769   :  { %1807 = vst.msk [vmem:[#allocation3 + $0x20] sm:$0xff] %vm264_vm3, %v1788_v53  ;;  %v2106_v13 = vpop.permute.xlu1 %2105 }
 0x76c   :  { %v1792_v16 = vpop.permute.xlu0 %1791 }
 0x76d   :  { %1809 = vst.msk [vmem:[#allocation3 + $0x30] sm:$0xff] %vm264_vm3, %v1792_v16  ;;  %v1790_v50 = vpop.permute.xlu1 %1789 }
 0x76e   :  { %1808 = vst.msk [vmem:[#allocation3 + $0x28] sm:$0xff] %vm264_vm3, %v1790_v50 }
 0x770   :  { %v4762_v32 = vpop.permute.xlu0 %1947 }
 0x771   :  { %v1794_v38 = vpop.permute.xlu1 %1793 }
 0x772   :  { %1810 = vst.msk [vmem:[#allocation3 + $0x38] sm:$0xff] %vm264_vm3, %v1794_v38  ;;  %vm2821_vm3 = vcmask 458112  }
 0x774   :  { %v4765_v58 = vpop.permute.xlu0 %1951 }
 0x775   :  { %v4767_v20 = vpop.permute.xlu1 %1949 }
 0x778   :  { %v4769_v14 = vpop.permute.xlu0 %2107 }
 0x779   :  { %v4771_v18 = vpop.permute.xlu1 %1953 }
 0x77c   :  { %v4773_v63 = vpop.permute.xlu0 %2111 }
 0x77d   :  { %v4775_v49 = vpop.permute.xlu1 %2109 }
 0x780   :  { %v1836_v36 = vpop.permute.xlu0 %1835 }
 0x781   :  { %1859 = vst.msk [vmem:[#allocation3] sm:$0xff] %vm361_vm4, %v1836_v36  ;;  %v1838_v23 = vpop.permute.xlu1 %1837 }
 0x782   :  { %1860 = vst.msk [vmem:[#allocation3 + $0x8] sm:$0xff] %vm361_vm4, %v1838_v23 }
 0x784   :  { %v1840_v41 = vpop.permute.xlu0 %1839 }
 0x785   :  { %1861 = vst.msk [vmem:[#allocation3 + $0x10] sm:$0xff] %vm361_vm4, %v1840_v41  ;;  %v1842_v44 = vpop.permute.xlu1 %1841 }
 0x786   :  { %1862 = vst.msk [vmem:[#allocation3 + $0x18] sm:$0xff] %vm361_vm4, %v1842_v44 }
 0x788   :  { %v1892_v46 = vpop.permute.xlu0 %1891 }
 0x789   :  { %1915 = vst.msk [vmem:[#allocation3] sm:$0xff] %vm418_vm5, %v1892_v46  ;;  %v1894_v56 = vpop.permute.xlu1 %1893 }
 0x78a   :  { %1963 = vst.msk [vmem:[#allocation3] sm:$0xff] %vm467_vm6, %v1940_v26 }
 0x78b   :  { %1916 = vst.msk [vmem:[#allocation3 + $0x8] sm:$0xff] %vm418_vm5, %v1894_v56 }
 0x78c   :  { %1964 = vst.msk [vmem:[#allocation3 + $0x8] sm:$0xff] %vm467_vm6, %v1942_v31  ;;  %v1896_v62 = vpop.permute.xlu0 %1895 }
 0x78d   :  { %1917 = vst.msk [vmem:[#allocation3 + $0x10] sm:$0xff] %vm418_vm5, %v1896_v62  ;;  %v1898_v1 = vpop.permute.xlu1 %1897 }
 0x78e   :  { %1965 = vst.msk [vmem:[#allocation3 + $0x10] sm:$0xff] %vm467_vm6, %v1944_v59 }
 0x78f   :  { %1918 = vst.msk [vmem:[#allocation3 + $0x18] sm:$0xff] %vm418_vm5, %v1898_v1 }
 0x790   :  { %1966 = vst.msk [vmem:[#allocation3 + $0x18] sm:$0xff] %vm467_vm6, %v1946_v12  ;;  %v1996_v6 = vpop.permute.xlu0 %1995 }
 0x791   :  { %2019 = vst.msk [vmem:[#allocation3] sm:$0xff] %vm524_vm7, %v1996_v6  ;;  %v1998_v19 = vpop.permute.xlu1 %1997 }
 0x792   :  { %2020 = vst.msk [vmem:[#allocation3 + $0x8] sm:$0xff] %vm524_vm7, %v1998_v19 }
 0x794   :  { %v2000_v54 = vpop.permute.xlu0 %1999 }
 0x795   :  { %2021 = vst.msk [vmem:[#allocation3 + $0x10] sm:$0xff] %vm524_vm7, %v2000_v54  ;;  %v2002_v29 = vpop.permute.xlu1 %2001 }
 0x796   :  { %2022 = vst.msk [vmem:[#allocation3 + $0x18] sm:$0xff] %vm524_vm7, %v2002_v29 }
 0x798   :  { %v2052_v7 = vpop.permute.xlu0 %2051 }
 0x799   :  { %2075 = vst.msk [vmem:[#allocation3] sm:$0xff] %vm581_vm8, %v2052_v7  ;;  %v2054_v15 = vpop.permute.xlu1 %2053 }
 0x79a   :  { %2123 = vst.msk [vmem:[#allocation3] sm:$0xff] %vm630_vm9, %v2100_v17 }
 0x79b   :  { %2076 = vst.msk [vmem:[#allocation3 + $0x8] sm:$0xff] %vm581_vm8, %v2054_v15 }
 0x79c   :  { %2124 = vst.msk [vmem:[#allocation3 + $0x8] sm:$0xff] %vm630_vm9, %v2102_v30  ;;  %v2056_v39 = vpop.permute.xlu0 %2055 }
 0x79d   :  { %2077 = vst.msk [vmem:[#allocation3 + $0x10] sm:$0xff] %vm581_vm8, %v2056_v39  ;;  %v2058_v60 = vpop.permute.xlu1 %2057 }
 0x79e   :  { %2125 = vst.msk [vmem:[#allocation3 + $0x10] sm:$0xff] %vm630_vm9, %v2104_v8 }
 0x79f   :  { %2078 = vst.msk [vmem:[#allocation3 + $0x18] sm:$0xff] %vm581_vm8, %v2058_v60 }
 0x7a0   :  { %2126 = vst.msk [vmem:[#allocation3 + $0x18] sm:$0xff] %vm630_vm9, %v2106_v13  ;;  %v2156_v21 = vpop.permute.xlu0 %2155 }
 0x7a1   :  { %2179 = vst.msk [vmem:[#allocation3] sm:$0xff] %vm687_vm10, %v2156_v21  ;;  %v2158_v5 = vpop.permute.xlu1 %2157 }
 0x7a2   :  { %2180 = vst.msk [vmem:[#allocation3 + $0x8] sm:$0xff] %vm687_vm10, %v2158_v5 }
 0x7a4   :  { %v2160_v45 = vpop.permute.xlu0 %2159 }
 0x7a5   :  { %2181 = vst.msk [vmem:[#allocation3 + $0x10] sm:$0xff] %vm687_vm10, %v2160_v45  ;;  %v2162_v43 = vpop.permute.xlu1 %2161 }
 0x7a6   :  { %2182 = vst.msk [vmem:[#allocation3 + $0x18] sm:$0xff] %vm687_vm10, %v2162_v43 }
 0x7a8   :  { %v1844_v0 = vpop.permute.xlu0 %1843  ;;  %v2187_v61 = vld [vmem:[#allocation3] sm:$0xff] }
 0x7a9   :  { %1863 = vst.msk [vmem:[#allocation3 + $0x20] sm:$0xff] %vm361_vm4, %v1844_v0  ;;  %v1846_v26 = vpop.permute.xlu1 %1845  ;;  %v2188_v11 = vld [vmem:[#allocation3 + $0x8] sm:$0xff] }
 0x7aa   :  { %2496 = vst.msk [vmem:[#allocation3] sm:$0xff] %vm79_vm0, %v2488_v33  ;;  %v2195_v25 = vpack.c.bf16 %v2188_v11, %v2187_v61 }
 0x7ab   :  { %1864 = vst.msk [vmem:[#allocation3 + $0x28] sm:$0xff] %vm361_vm4, %v1846_v26 }
 0x7ac   :  { %3464 = vmatprep.mubr.msk.bf16.mxu0 %vm728_vm11, %v2195_v25  ;;  %v1848_v48 = vpop.permute.xlu0 %1847  ;;  %v2189_v59 = vld [vmem:[#allocation3 + $0x10] sm:$0xff] }
 0x7ad   :  { %1865 = vst.msk [vmem:[#allocation3 + $0x30] sm:$0xff] %vm361_vm4, %v1848_v48  ;;  %v1850_v31 = vpop.permute.xlu1 %1849  ;;  %v2190_v17 = vld [vmem:[#allocation3 + $0x18] sm:$0xff] }
 0x7ae   :  { %1866 = vst.msk [vmem:[#allocation3 + $0x38] sm:$0xff] %vm361_vm4, %v1850_v31  ;;  %v2196_v12 = vpack.c.bf16 %v2190_v17, %v2189_v59  ;;  %vm2870_vm4 = vcmask 523712  }
 0x7b0   :  { %3465 = vmatmul.mubr.msk.bf16.vlgmr.msra.gmra.mxu0 %vm728_vm11, %v2196_v12  ;;  %v1900_v8 = vpop.permute.xlu0 %1899 }
 0x7b1   :  { %1919 = vst.msk [vmem:[#allocation3 + $0x20] sm:$0xff] %vm418_vm5, %v1900_v8  ;;  %v1902_v30 = vpop.permute.xlu1 %1901 }
 0x7b2   :  { %1967 = vst.msk [vmem:[#allocation3 + $0x20] sm:$0xff] %vm467_vm6, %v4762_v32 }
 0x7b3   :  { %1920 = vst.msk [vmem:[#allocation3 + $0x28] sm:$0xff] %vm418_vm5, %v1902_v30 }
 0x7b4   :  { %1968 = vst.msk [vmem:[#allocation3 + $0x28] sm:$0xff] %vm467_vm6, %v4767_v20  ;;  %v1904_v53 = vpop.permute.xlu0 %1903 }
 0x7b5   :  { %1921 = vst.msk [vmem:[#allocation3 + $0x30] sm:$0xff] %vm418_vm5, %v1904_v53  ;;  %v1906_v13 = vpop.permute.xlu1 %1905 }
 0x7b6   :  { %1969 = vst.msk [vmem:[#allocation3 + $0x30] sm:$0xff] %vm467_vm6, %v4765_v58 }
 0x7b7   :  { %1922 = vst.msk [vmem:[#allocation3 + $0x38] sm:$0xff] %vm418_vm5, %v1906_v13  ;;  %vm2927_vm5 = vcmask 589312  }
 0x7b8   :  { %1970 = vst.msk [vmem:[#allocation3 + $0x38] sm:$0xff] %vm467_vm6, %v4771_v18  ;;  %v2004_v16 = vpop.permute.xlu0 %2003  ;;  %vm2984_vm6 = vcmask 588800  }
 0x7b9   :  { %2023 = vst.msk [vmem:[#allocation3 + $0x20] sm:$0xff] %vm524_vm7, %v2004_v16  ;;  %v2006_v50 = vpop.permute.xlu1 %2005 }
 0x7ba   :  { %2024 = vst.msk [vmem:[#allocation3 + $0x28] sm:$0xff] %vm524_vm7, %v2006_v50 }
 0x7bc   :  { %v2008_v32 = vpop.permute.xlu0 %2007 }
 0x7bd   :  { %2025 = vst.msk [vmem:[#allocation3 + $0x30] sm:$0xff] %vm524_vm7, %v2008_v32  ;;  %v2010_v38 = vpop.permute.xlu1 %2009 }
 0x7be   :  { %2026 = vst.msk [vmem:[#allocation3 + $0x38] sm:$0xff] %vm524_vm7, %v2010_v38  ;;  %vm3609_vm7 = vmmov 0  }
 0x7c0   :  { %v2060_v20 = vpop.permute.xlu0 %2059 }
 0x7c1   :  { %2079 = vst.msk [vmem:[#allocation3 + $0x20] sm:$0xff] %vm581_vm8, %v2060_v20  ;;  %v2062_v58 = vpop.permute.xlu1 %2061 }
 0x7c2   :  { %2127 = vst.msk [vmem:[#allocation3 + $0x20] sm:$0xff] %vm630_vm9, %v4769_v14 }
 0x7c3   :  { %2080 = vst.msk [vmem:[#allocation3 + $0x28] sm:$0xff] %vm581_vm8, %v2062_v58 }
 0x7c4   :  { %2128 = vst.msk [vmem:[#allocation3 + $0x28] sm:$0xff] %vm630_vm9, %v4775_v49  ;;  %v2064_v18 = vpop.permute.xlu0 %2063 }
 0x7c5   :  { %2081 = vst.msk [vmem:[#allocation3 + $0x30] sm:$0xff] %vm581_vm8, %v2064_v18  ;;  %v2066_v36 = vpop.permute.xlu1 %2065 }
 0x7c6   :  { %2129 = vst.msk [vmem:[#allocation3 + $0x30] sm:$0xff] %vm630_vm9, %v4773_v63 }
 0x7c7   :  { %2082 = vst.msk [vmem:[#allocation3 + $0x38] sm:$0xff] %vm581_vm8, %v2066_v36  ;;  %vm3224_vm8 = vcmask 261120  }
 0x7c8   :  { %2130 = vst.msk [vmem:[#allocation3 + $0x38] sm:$0xff] %vm630_vm9, %v4742_v37  ;;  %v2164_v23 = vpop.permute.xlu0 %2163 }
 0x7c9   :  { %2183 = vst.msk [vmem:[#allocation3 + $0x20] sm:$0xff] %vm687_vm10, %v2164_v23  ;;  %v2166_v14 = vpop.permute.xlu1 %2165 }
 0x7ca   :  { %2184 = vst.msk [vmem:[#allocation3 + $0x28] sm:$0xff] %vm687_vm10, %v2166_v14 }
 0x7cc   :  { %v2168_v41 = vpop.permute.xlu0 %2167 }
 0x7cd   :  { %2185 = vst.msk [vmem:[#allocation3 + $0x30] sm:$0xff] %vm687_vm10, %v2168_v41  ;;  %v2170_v49 = vpop.permute.xlu1 %2169 }
 0x7ce   :  { %2186 = vst.msk [vmem:[#allocation3 + $0x38] sm:$0xff] %vm687_vm10, %v2170_v49 }
 0x7d0   :  { %v2191_v44 = vld [vmem:[#allocation3 + $0x20] sm:$0xff] }
 0x7d1   :  { %v2192_v46 = vld [vmem:[#allocation3 + $0x28] sm:$0xff] }
 0x7d2   :  { %v2197_v63 = vpack.c.bf16 %v2192_v46, %v2191_v44 }
 0x7d4   :  { %3468 = vmatprep.mubr.msk.bf16.mxu0 %vm728_vm11, %v2197_v63  ;;  %v2193_v56 = vld [vmem:[#allocation3 + $0x30] sm:$0xff] }
 0x7d5   :  { %v2194_v62 = vld [vmem:[#allocation3 + $0x38] sm:$0xff] }
 0x7d6   :  { %v2198_v37 = vpack.c.bf16 %v2194_v62, %v2193_v56 }
 0x7d8   :  { %3469 = vmatmul.mubr.msk.bf16.gmra.mxu0 %vm728_vm11, %v2198_v37 }
 0x7d9   :  { %3494 = vmatprep.mubr.msk.bf16.mxu0 %vm3609_vm7, %v3596_v3 }
 0x870   :  { %v3466_v1 = vpop.f32.mrf.mxu0 }
 0x871   :  { %v2305_v7 = vsel %vm79_vm0, %v3466_v1, 0.0 }
 0x872   :  { %v2268_v6 = vpop.f32.mrf.mxu0 }
 0x873   :  { %v2299_v19 = vsel %vm79_vm0, %v2268_v6, 0.0 }
 0x874   :  { %2300 = vadd.xlane.f32.xlu0 %v2299_v19  ;;  %v3467_v54 = vpop.f32.mrf.mxu0 }
 0x875   :  { %v2308_v39 = vsel %vm79_vm0, %v3467_v54, 0.0 }
 0x876   :  { %v2271_v29 = vpop.f32.mrf.mxu0 }
 0x877   :  { %v2302_v15 = vsel %vm79_vm0, %v2271_v29, 0.0 }
 0x878   :  { %2306 = vadd.xlane.f32.xlu0 %v2305_v7  ;;  %2303 = vadd.xlane.f32.xlu1 %v2302_v15 }
 0x87c   :  { %2309 = vadd.xlane.f32.xlu0 %v2308_v39 }
 0x898   :  { %v3470_v60 = vpop.f32.mrf.mxu0 }
 0x899   :  { %v2317_v43 = vsel %vm79_vm0, %v3470_v60, 0.0 }
 0x89a   :  { %v2284_v21 = vpop.f32.mrf.mxu0 }
 0x89b   :  { %v2311_v5 = vsel %vm79_vm0, %v2284_v21, 0.0 }
 0x89c   :  { %2312 = vadd.xlane.f32.xlu1 %v2311_v5  ;;  %v3471_v45 = vpop.f32.mrf.mxu0 }
 0x89d   :  { %v2320_v0 = vsel %vm79_vm0, %v3471_v45, 0.0 }
 0x89e   :  { %v2287_v47 = vpop.f32.mrf.mxu0 }
 0x89f   :  { %v2314_v33 = vsel %vm79_vm0, %v2287_v47, 0.0 }
 0x8a0   :  { %2318 = vadd.xlane.f32.xlu1 %v2317_v43  ;;  %2315 = vadd.xlane.f32.xlu0 %v2314_v33 }
 0x8a4   :  { %2321 = vadd.xlane.f32.xlu0 %v2320_v0  ;;  %v2504_v0 = vld [vmem:[#allocation2 + $0x8] sm:$0xff] }
 0x8fd   :  { %v2301_v61 = vpop.xlane.xlu0 %2300 }
 0x901   :  { %v2304_v26 = vpop.xlane.xlu1 %2303  ;;  %v2307_v11 = vpop.xlane.xlu0 %2306 }
 0x902   :  { %v2323_v25 = vadd.f32 %v2304_v26, %v2301_v61  ;;  %v2837_v61 = vld [vmem:[#allocation2 + $0x50] sm:$0xff] }
 0x904   :  { %v2324_v48 = vadd.f32 %v2323_v25, %v2307_v11 }
 0x905   :  { %v2310_v59 = vpop.xlane.xlu0 %2309 }
 0x906   :  { %v2325_v17 = vadd.f32 %v2324_v48, %v2310_v59 }
 0x925   :  { %v2313_v31 = vpop.xlane.xlu1 %2312 }
 0x926   :  { %v2326_v12 = vadd.f32 %v2325_v17, %v2313_v31 }
 0x929   :  { %v2316_v8 = vpop.xlane.xlu0 %2315  ;;  %v2319_v53 = vpop.xlane.xlu1 %2318 }
 0x92a   :  { %v2327_v30 = vadd.f32 %v2326_v12, %v2316_v8 }
 0x92c   :  { %v2328_v13 = vadd.f32 %v2327_v30, %v2319_v53 }
 0x92d   :  { %v2322_v16 = vpop.xlane.xlu0 %2321 }
 0x92e   :  { %v2329_v50 = vadd.f32 %v2328_v13, %v2322_v16 }
 0x930   :  { %v2330_v32 = vrot.slane %v2329_v50, 4 }
 0x932   :  { %v2331_v38 = vadd.f32 %v2330_v32, %v2329_v50 }
 0x934   :  { %v2332_v20 = vrot.slane %v2331_v38, 2 }
 0x936   :  { %v2333_v58 = vadd.f32 %v2332_v20, %v2331_v38 }
 0x938   :  { %v2334_v18 = vrot.slane %v2333_v58, 1 }
 0x93a   :  { %v2335_v36 = vadd.f32 %v2334_v18, %v2333_v58 }
 0x93c   :  { %v2337_v23 = vmul.f32 0.001953125, %v2335_v36 }
 0x93e   :  { %v4855_v14 = vsub.f32 %v2271_v29, %v2337_v23  ;;  %v4857_v41 = vsub.f32 %v2268_v6, %v2337_v23  ;;  %v4859_v49 = vsub.f32 %v3467_v54, %v2337_v23  ;;  %v4861_v44 = vsub.f32 %v3466_v1, %v2337_v23 }
 0x93f   :  { %v4867_v56 = vsub.f32 %v2287_v47, %v2337_v23  ;;  %v4869_v62 = vsub.f32 %v2284_v21, %v2337_v23  ;;  %v2345_v54 = vsub.f32 %v3471_v45, %v2337_v23  ;;  %v2344_v29 = vsub.f32 %v3470_v60, %v2337_v23 }
 0x940   :  { %v2347_v46 = vmul.f32 %v4855_v14, %v4855_v14  ;;  %v2346_v63 = vmul.f32 %v4857_v41, %v4857_v41  ;;  %v2349_v6 = vmul.f32 %v4859_v49, %v4859_v49  ;;  %v2348_v1 = vmul.f32 %v4861_v44, %v4861_v44 }
 0x941   :  { %v2351_v39 = vmul.f32 %v4867_v56, %v4867_v56  ;;  %v2350_v21 = vmul.f32 %v4869_v62, %v4869_v62  ;;  %v2353_v43 = vmul.f32 %v2345_v54, %v2345_v54  ;;  %v2352_v33 = vmul.f32 %v2344_v29, %v2344_v29 }
 0x942   :  { %v2357_v37 = vsel %vm79_vm0, %v2347_v46, 0.0  ;;  %v2354_v19 = vsel %vm79_vm0, %v2346_v63, 0.0  ;;  %v2363_v7 = vsel %vm79_vm0, %v2349_v6, 0.0  ;;  %v2360_v15 = vsel %vm79_vm0, %v2348_v1, 0.0 }
 0x943   :  { %2358 = vadd.xlane.f32.xlu0 %v2357_v37  ;;  %2355 = vadd.xlane.f32.xlu1 %v2354_v19  ;;  %v2369_v5 = vsel %vm79_vm0, %v2351_v39, 0.0  ;;  %v2366_v47 = vsel %vm79_vm0, %v2350_v21, 0.0  ;;  %v2375_v60 = vsel %vm79_vm0, %v2353_v43, 0.0  ;;  %v2372_v45 = vsel %vm79_vm0, %v2352_v33, 0.0  ;;  %v3381_v19 = vld [vmem:[%s5315_s9] ss:$0 sm:$0xff] }
 0x944   :  { %v3382_v39 = vld [vmem:[%s5316_s10] ss:$0 sm:$0xff] }
 0x947   :  { %2364 = vadd.xlane.f32.xlu0 %v2363_v7  ;;  %2361 = vadd.xlane.f32.xlu1 %v2360_v15 }
 0x94b   :  { %2370 = vadd.xlane.f32.xlu0 %v2369_v5  ;;  %2367 = vadd.xlane.f32.xlu1 %v2366_v47 }
 0x94f   :  { %2376 = vadd.xlane.f32.xlu0 %v2375_v60  ;;  %2373 = vadd.xlane.f32.xlu1 %v2372_v45 }
 0x960   :  { %2520 = vrot.lane.b32.xlu1 %v2504_v0, %s3600_s29 }
 0x964   :  { %2860 = vrot.lane.b32.xlu1 %v2837_v61, %s3605_s8 }
 0x9cc   :  { %v2359_v26 = vpop.xlane.xlu0 %2358  ;;  %v2356_v11 = vpop.xlane.xlu1 %2355 }
 0x9cd   :  { %v2378_v25 = vadd.f32 %v2359_v26, %v2356_v11 }
 0x9d0   :  { %v2365_v48 = vpop.xlane.xlu0 %2364  ;;  %v2362_v59 = vpop.xlane.xlu1 %2361 }
 0x9d1   :  { %v2379_v31 = vadd.f32 %v2378_v25, %v2362_v59 }
 0x9d3   :  { %v2380_v17 = vadd.f32 %v2379_v31, %v2365_v48 }
 0x9d4   :  { %v2371_v12 = vpop.xlane.xlu0 %2370  ;;  %v2368_v8 = vpop.xlane.xlu1 %2367 }
 0x9d5   :  { %v2381_v30 = vadd.f32 %v2380_v17, %v2368_v8 }
 0x9d7   :  { %v2382_v53 = vadd.f32 %v2381_v30, %v2371_v12 }
 0x9d8   :  { %v2374_v13 = vpop.xlane.xlu1 %2373  ;;  %v2377_v50 = vpop.xlane.xlu0 %2376 }
 0x9d9   :  { %v2383_v16 = vadd.f32 %v2382_v53, %v2374_v13 }
 0x9db   :  { %v2384_v32 = vadd.f32 %v2383_v16, %v2377_v50 }
 0x9dc   :  { %v2521_v13 = vpop.permute.xlu1 %2520 }
 0x9dd   :  { %v2385_v38 = vrot.slane %v2384_v32, 4  ;;  %2545 = vst.msk [vmem:[#allocation3] sm:$0xff] %vm2544_vm12, %v2521_v13 }
 0x9df   :  { %v2386_v20 = vadd.f32 %v2385_v38, %v2384_v32 }
 0x9e1   :  { %v2387_v58 = vrot.slane %v2386_v20, 2 }
 0x9e3   :  { %v2388_v18 = vadd.f32 %v2387_v58, %v2386_v20 }
 0x9e5   :  { %v2389_v36 = vrot.slane %v2388_v18, 1 }
 0x9e7   :  { %v2390_v23 = vadd.f32 %v2389_v36, %v2388_v18 }
 0x9e9   :  { %v2391_v46 = vmul.f32 0.001953125, %v2390_v23 }
 0x9eb   :  { %v2392_v63 = vadd.f32 1e-05, %v2391_v46 }
 0x9ed   :  { %3571 = vrsqrt.f32 %v2392_v63 }
 0x9fa   :  { %v3572_v37 = vpop.eup %3571 }
 0x9fb   :  { %v2394_v6 = vmul.f32 %v3572_v37, %v4857_v41  ;;  %v2395_v1 = vmul.f32 %v3572_v37, %v4855_v14  ;;  %v2396_v7 = vmul.f32 %v3572_v37, %v4861_v44  ;;  %v2397_v15 = vmul.f32 %v3572_v37, %v4859_v49 }
 0x9fc   :  { %v2398_v21 = vmul.f32 %v3572_v37, %v4869_v62  ;;  %v2399_v5 = vmul.f32 %v3572_v37, %v4867_v56  ;;  %v2400_v47 = vmul.f32 %v3572_v37, %v2344_v29  ;;  %v2401_v43 = vmul.f32 %v3572_v37, %v2345_v54 }
 0x9fd   :  { %v2409_v33 = vmul.f32 %v3381_v19, %v2394_v6  ;;  %v2410_v60 = vmul.f32 %v3381_v19, %v2395_v1  ;;  %v2411_v45 = vmul.f32 %v3381_v19, %v2396_v7  ;;  %v2412_v41 = vmul.f32 %v3381_v19, %v2397_v15 }
 0x9fe   :  { %v2413_v0 = vmul.f32 %v3381_v19, %v2398_v21  ;;  %v2414_v14 = vmul.f32 %v3381_v19, %v2399_v5  ;;  %v2415_v61 = vmul.f32 %v3381_v19, %v2400_v47  ;;  %v2416_v11 = vmul.f32 %v3381_v19, %v2401_v43 }
 0x9ff   :  { %v2424_v44 = vadd.f32 %v3382_v39, %v2409_v33  ;;  %v2425_v26 = vadd.f32 %v3382_v39, %v2410_v60  ;;  %v2426_v49 = vadd.f32 %v3382_v39, %v2411_v45  ;;  %v2427_v25 = vadd.f32 %v3382_v39, %v2412_v41 }
 0xa00   :  { %v2428_v48 = vadd.f32 %v3382_v39, %v2413_v0  ;;  %v2429_v59 = vadd.f32 %v3382_v39, %v2414_v14  ;;  %v2430_v31 = vadd.f32 %v3382_v39, %v2415_v61  ;;  %v2431_v29 = vadd.f32 %v3382_v39, %v2416_v11 }
 0xa01   :  { %v2440_v62 = vmul.f32 0.70710677, %v2424_v44  ;;  %v2441_v17 = vmul.f32 0.70710677, %v2425_v26  ;;  %v2442_v56 = vmul.f32 0.70710677, %v2426_v49 }
 0xa02   :  { %v2443_v54 = vmul.f32 0.70710677, %v2427_v25  ;;  %v2444_v12 = vmul.f32 0.70710677, %v2428_v48  ;;  %v2445_v8 = vmul.f32 0.70710677, %v2429_v59 }
 0xa03   :  { %3573 = verf.f32 %v2440_v62  ;;  %v2446_v30 = vmul.f32 0.70710677, %v2430_v31  ;;  %v2447_v53 = vmul.f32 0.70710677, %v2431_v29  ;;  %v2432_v32 = vmul.f32 0.5, %v2424_v44 }
 0xa04   :  { %3575 = verf.f32 %v2441_v17  ;;  %v2433_v58 = vmul.f32 0.5, %v2425_v26  ;;  %v2434_v23 = vmul.f32 0.5, %v2426_v49  ;;  %v2435_v19 = vmul.f32 0.5, %v2427_v25 }
 0xa05   :  { %3577 = verf.f32 %v2442_v56  ;;  %v2436_v15 = vmul.f32 0.5, %v2428_v48  ;;  %v2437_v47 = vmul.f32 0.5, %v2429_v59  ;;  %v2438_v45 = vmul.f32 0.5, %v2430_v31 }
 0xa06   :  { %3579 = verf.f32 %v2443_v54  ;;  %v2439_v14 = vmul.f32 0.5, %v2431_v29 }
 0xa07   :  { %3581 = verf.f32 %v2444_v12 }
 0xa08   :  { %3583 = verf.f32 %v2445_v8 }
 0xa09   :  { %3585 = verf.f32 %v2446_v30 }
 0xa0a   :  { %3587 = verf.f32 %v2447_v53 }
 0xa10   :  { %v3574_v16 = vpop.eup %3573 }
 0xa11   :  { %v3576_v50 = vpop.eup %3575  ;;  %v2456_v38 = vadd.f32 1.0, %v3574_v16 }
 0xa12   :  { %v3578_v20 = vpop.eup %3577  ;;  %v2457_v18 = vadd.f32 1.0, %v3576_v50 }
 0xa13   :  { %v3580_v36 = vpop.eup %3579  ;;  %v2458_v46 = vadd.f32 1.0, %v3578_v20  ;;  %v2464_v63 = vmul.f32 %v2456_v38, %v2432_v32 }
 0xa14   :  { %v3582_v37 = vpop.eup %3581  ;;  %v2459_v6 = vadd.f32 1.0, %v3580_v36  ;;  %v2465_v1 = vmul.f32 %v2457_v18, %v2433_v58 }
 0xa15   :  { %v3584_v7 = vpop.eup %3583  ;;  %v2460_v39 = vadd.f32 1.0, %v3582_v37  ;;  %v2466_v21 = vmul.f32 %v2458_v46, %v2434_v23  ;;  %2472 = vst.msk [vmem:[#allocation2 + $0x10] sm:$0xff] %vm79_vm0, %v2464_v63 }
 0xa16   :  { %v3586_v5 = vpop.eup %3585  ;;  %v2461_v43 = vadd.f32 1.0, %v3584_v7  ;;  %v2467_v33 = vmul.f32 %v2459_v6, %v2435_v19  ;;  %2473 = vst.msk [vmem:[#allocation2 + $0x18] sm:$0xff] %vm79_vm0, %v2465_v1 }
 0xa17   :  { %v3588_v60 = vpop.eup %3587  ;;  %v2462_v41 = vadd.f32 1.0, %v3586_v5  ;;  %v2468_v0 = vmul.f32 %v2460_v39, %v2436_v15  ;;  %2474 = vst.msk [vmem:[#allocation2 + $0x20] sm:$0xff] %vm79_vm0, %v2466_v21  ;;  %v3528_v5 = vld [vmem:[%s5317_s11 + $0x20] ss:$0 sps:$4 sm:$0xff]  }
 0xa18   :  { %v2463_v61 = vadd.f32 1.0, %v3588_v60  ;;  %v2469_v44 = vmul.f32 %v2461_v43, %v2437_v47  ;;  %2475 = vst.msk [vmem:[#allocation2 + $0x28] sm:$0xff] %vm79_vm0, %v2467_v33  ;;  %3501 = vmatprep.subr.msk.bf16.mxu1 %vm2997_vm13, %v3528_v5  ;;  %v2999_v33 = vsel %vm2997_vm13, %v3528_v5, 0 }
 0xa19   :  { %v2470_v26 = vmul.f32 %v2462_v41, %v2438_v45  ;;  %2476 = vst.msk [vmem:[#allocation2 + $0x30] sm:$0xff] %vm79_vm0, %v2468_v0  ;;  %3473 = vmatpush3.bf16.msra.mxu1 %v2999_v33  ;;  %v3529_v45 = vld [vmem:[%s5317_s11 + $0x18] sm:$0xff]  }
 0xa1a   :  { %v2471_v49 = vmul.f32 %v2463_v61, %v2439_v14  ;;  %2477 = vst.msk [vmem:[#allocation2 + $0x38] sm:$0xff] %vm79_vm0, %v2469_v44  ;;  %3474 = vmatprep.subr.bf16.mxu1 %v3529_v45  ;;  %v3530_v14 = vld [vmem:[%s5317_s11 + $0x10] sm:$0xff]  }
 0xa1b   :  { %2478 = vst.msk [vmem:[#allocation2 + $0x40] sm:$0xff] %vm79_vm0, %v2470_v26  ;;  %v3531_v26 = vld [vmem:[%s5317_s11 + $0x8] sm:$0xff]  }
 0xa1c   :  { %2479 = vst.msk [vmem:[#allocation2 + $0x48] sm:$0xff] %vm79_vm0, %v2471_v49  ;;  %v2505_v11 = vld [vmem:[#allocation2 + $0x10] sm:$0xff] }
 0xa1d   :  { %v2610_v25 = vld [vmem:[#allocation2 + $0xf] sm:$0xff]  ;;  %v2506_v48 = vld [vmem:[#allocation2 + $0x18] sm:$0xff]  ;;  %2522 = vrot.lane.b32.xlu0 %v2505_v11, %s3600_s29  ;;  %3475 = vmatpush3.bf16.msra.mxu1 %v3529_v45 }
 0xa1e   :  { %v2489_v59 = vmul.f32 %v2610_v25, %v3950_v28  ;;  %2524 = vrot.lane.b32.xlu1 %v2506_v48, %s3600_s29  ;;  %v2507_v31 = vld [vmem:[#allocation2 + $0x20] sm:$0xff]  ;;  %v4916_v62 = vld [vmem:[#allocation2 + $0x17] sm:$0xff]  ;;  %v2553_v36 = vld [vmem:[#allocation2 + $0x9] sm:$0xff]  ;;  %v2618_v7 = vmul.f32 %v2610_v25, %v3943_v24  ;;  %3476 = vmatprep.subr.bf16.mxu1 %v3530_v14 }
 0xa1f   :  { %v4918_v17 = vld [vmem:[#allocation2 + $0x27] sm:$0xff]  ;;  %v4920_v56 = vld [vmem:[#allocation2 + $0x1f] sm:$0xff]  ;;  %v2490_v8 = vmul.f32 %v4916_v62, %v3971_v40  ;;  %v2554_v23 = vld [vmem:[#allocation2 + $0x11] sm:$0xff]  ;;  %v2561_v46 = vmul.f32 %v2553_v36, %v3941_v22  ;;  %v2619_v15 = vmul.f32 %v4916_v62, %v3950_v28  ;;  %v2781_v61 = vmul.f32 %v4916_v62, %v3943_v24 }
 0xa20   :  { %2497 = vst.msk [vmem:[#allocation3 + $0x8] sm:$0xff] %vm79_vm0, %v2489_v59  ;;  %v4923_v29 = vld [vmem:[#allocation2 + $0x2f] sm:$0xff]  ;;  %v2491_v30 = vmul.f32 %v4920_v56, %v3973_v42  ;;  %v2492_v53 = vmul.f32 %v4918_v17, %v3991_v55  ;;  %v2562_v63 = vmul.f32 %v2554_v23, %v3948_v27  ;;  %v2555_v37 = vld [vmem:[#allocation2 + $0x19] sm:$0xff]  ;;  %v2556_v19 = vld [vmem:[#allocation2 + $0x21] sm:$0xff]  ;;  %v2620_v39 = vmul.f32 %v4920_v56, %v3971_v40 }
 0xa21   :  { %2683 = vrot.lane.b32.xlu0 %v2505_v11, %s3604_s27  ;;  %v4925_v54 = vld [vmem:[#allocation2 + $0x37] sm:$0xff]  ;;  %2498 = vst.msk [vmem:[#allocation3 + $0x10] sm:$0xff] %vm79_vm0, %v2490_v8  ;;  %v2493_v16 = vmul.f32 %v4923_v29, %v3993_v57  ;;  %v2670_v32 = vld [vmem:[#allocation2 + $0x28] sm:$0xff]  ;;  %v2563_v6 = vmul.f32 %v2555_v37, %v3956_v34  ;;  %v2564_v1 = vmul.f32 %v2556_v19, %v3958_v35 }
 0xa22   :  { %2526 = vrot.lane.b32.xlu1 %v2507_v31, %s3600_s29  ;;  %v4927_v12 = vld [vmem:[#allocation2 + $0x3f] sm:$0xff]  ;;  %v2494_v13 = vmul.f32 %v4925_v54, %v4022_v9  ;;  %2499 = vst.msk [vmem:[#allocation3 + $0x18] sm:$0xff] %vm79_vm0, %v2491_v30  ;;  %2500 = vst.msk [vmem:[#allocation3 + $0x20] sm:$0xff] %vm79_vm0, %v2492_v53  ;;  %v2833_v38 = vld [vmem:[#allocation2 + $0x30] sm:$0xff]  ;;  %v2621_v21 = vmul.f32 %v4918_v17, %v3973_v42  ;;  %v2724_v47 = vmul.f32 %v2554_v23, %v3941_v22 }
 0xa23   :  { %v2495_v50 = vmul.f32 %v4927_v12, %v4024_v10  ;;  %2501 = vst.msk [vmem:[#allocation3 + $0x28] sm:$0xff] %vm79_vm0, %v2493_v16  ;;  %v2510_v20 = vld [vmem:[#allocation2 + $0x38] sm:$0xff]  ;;  %v2511_v58 = vld [vmem:[#allocation2 + $0x40] sm:$0xff]  ;;  %v2674_v18 = vld [vmem:[#allocation2 + $0x48] sm:$0xff]  ;;  %v2725_v43 = vmul.f32 %v2555_v37, %v3948_v27  ;;  %v2726_v41 = vmul.f32 %v2556_v19, %v3956_v34  ;;  %v2782_v44 = vmul.f32 %v4920_v56, %v3950_v28 }
 0xa24   :  { %2502 = vst.msk [vmem:[#allocation3 + $0x30] sm:$0xff] %vm79_vm0, %v2494_v13  ;;  %v2719_v60 = vld [vmem:[#allocation2 + $0x29] sm:$0xff]  ;;  %3477 = vmatpush3.bf16.msra.mxu1 %v3530_v14  ;;  %v2783_v49 = vmul.f32 %v4918_v17, %v3971_v40  ;;  %v2784_v24 = vmul.f32 %v4923_v29, %v3973_v42  ;;  %v3532_v28 = vld [vmem:[%s5317_s11] sm:$0xff]   ;;  %v2887_v11 = vmul.f32 %v2555_v37, %v3941_v22  ;;  %v2882_v40 = vld [vmem:[#allocation2 + $0x31] sm:$0xff] }
 0xa25   :  { %2687 = vrot.lane.b32.xlu0 %v2507_v31, %s3604_s27  ;;  %2503 = vst.msk [vmem:[#allocation3 + $0x38] sm:$0xff] %vm79_vm0, %v2495_v50  ;;  %v2727_v0 = vmul.f32 %v2719_v60, %v3958_v35  ;;  %3478 = vmatprep.subr.bf16.mxu1 %v3531_v26  ;;  %v2888_v25 = vmul.f32 %v2556_v19, %v3948_v27  ;;  %v2559_v27 = vld [vmem:[#allocation2 + $0x39] sm:$0xff]  ;;  %v2617_v56 = vld [vmem:[#allocation2 + $0x47] sm:$0xff] }
 0xa26   :  { %2685 = vrot.lane.b32.xlu1 %v2506_v48, %s3604_s27  ;;  %v2889_v42 = vmul.f32 %v2719_v60, %v3956_v34  ;;  %v2565_v22 = vmul.f32 %v2719_v60, %v3981_v51  ;;  %v2566_v59 = vmul.f32 %v2882_v40, %v3983_v52  ;;  %v2567_v62 = vmul.f32 %v2559_v27, %v4007_v2  ;;  %v2723_v13 = vld [vmem:[#allocation2 + $0x49] sm:$0xff] }
 0xa27   :  { %v2623_v17 = vmul.f32 %v4925_v54, %v3993_v57  ;;  %v2624_v8 = vmul.f32 %v4927_v12, %v4022_v9  ;;  %v2625_v30 = vmul.f32 %v2617_v56, %v4024_v10  ;;  %v2728_v53 = vmul.f32 %v2882_v40, %v3981_v51 }
 0xa28   :  { %3479 = vmatpush3.bf16.msra.mxu1 %v3531_v26  ;;  %v2731_v50 = vmul.f32 %v2723_v13, %v4009_v4 }
 0xa29   :  { %2846 = vrot.lane.b32.xlu0 %v2506_v48, %s3605_s8  ;;  %3480 = vmatprep.subr.bf16.mxu1 %v3532_v28  ;;  %v2890_v48 = vmul.f32 %v2882_v40, %v3958_v35  ;;  %v2622_v35 = vmul.f32 %v4923_v29, %v3991_v55  ;;  %v2729_v29 = vmul.f32 %v2559_v27, %v3983_v52 }
 0xa2a   :  { %2689 = vrot.lane.b32.xlu1 %v2670_v32, %s3604_s27 }
 0xa2c   :  { %3481 = vmatpush3.bf16.msra.mxu1 %v3532_v28 }
 0xa2d   :  { %2850 = vrot.lane.b32.xlu0 %v2670_v32, %s3605_s8 }
 0xa2e   :  { %2848 = vrot.lane.b32.xlu1 %v2507_v31, %s3605_s8  ;;  %v2560_v31 = vld [vmem:[#allocation2 + $0x41] sm:$0xff] }
 0xa2f   :  { %v2568_v34 = vmul.f32 %v2560_v31, %v4009_v4  ;;  %v2730_v16 = vmul.f32 %v2560_v31, %v4007_v2 }
 0xa31   :  { %2528 = vrot.lane.b32.xlu0 %v2670_v32, %s3600_s29  ;;  %v2785_v32 = vmul.f32 %v4925_v54, %v3991_v55  ;;  %v2891_v55 = vmul.f32 %v2559_v27, %v3981_v51  ;;  %v2892_v54 = vmul.f32 %v2560_v31, %v3983_v52 }
 0xa32   :  { %2852 = vrot.lane.b32.xlu1 %v2833_v38, %s3605_s8 }
 0xa35   :  { %2532 = vrot.lane.b32.xlu0 %v2510_v20, %s3600_s29 }
 0xa36   :  { %2530 = vrot.lane.b32.xlu1 %v2833_v38, %s3600_s29 }
 0xa39   :  { %2691 = vrot.lane.b32.xlu0 %v2833_v38, %s3604_s27  ;;  %v2786_v38 = vmul.f32 %v4927_v12, %v3993_v57  ;;  %v2886_v12 = vld [vmem:[#allocation2 + $0x51] sm:$0xff] }
 0xa3a   :  { %2534 = vrot.lane.b32.xlu1 %v2511_v58, %s3600_s29  ;;  %s3606_s29 = smov 40  }
 0xa3d   :  { %2695 = vrot.lane.b32.xlu0 %v2511_v58, %s3604_s27 }
 0xa3e   :  { %2693 = vrot.lane.b32.xlu1 %v2510_v20, %s3604_s27 }
 0xa41   :  { %2854 = vrot.lane.b32.xlu0 %v2510_v20, %s3605_s8  ;;  %v2780_v20 = vld [vmem:[#allocation2 + $0x4f] sm:$0xff] }
 0xa42   :  { %2697 = vrot.lane.b32.xlu1 %v2674_v18, %s3604_s27  ;;  %v2788_v36 = vmul.f32 %v2780_v20, %v4024_v10  ;;  %v2893_v10 = vmul.f32 %v2723_v13, %v4007_v2 }
 0xa45   :  { %2858 = vrot.lane.b32.xlu0 %v2674_v18, %s3605_s8  ;;  %v2787_v18 = vmul.f32 %v2617_v56, %v4022_v9 }
 0xa46   :  { %2856 = vrot.lane.b32.xlu1 %v2511_v58, %s3605_s8  ;;  %v5059_v58 = vpop.permute.xlu1 %2860 }
 0xa49   :  { %2577 = vrot.lane.b32.xlu0 %v2561_v46, %s3598_s20 }
 0xa4a   :  { %2579 = vrot.lane.b32.xlu1 %v2562_v63, %s3598_s20  ;;  %v2894_v63 = vmul.f32 %v2886_v12, %v4009_v4 }
 0xa4d   :  { %2581 = vrot.lane.b32.xlu0 %v2563_v6, %s3598_s20 }
 0xa4e   :  { %2583 = vrot.lane.b32.xlu1 %v2564_v1, %s3598_s20 }
 0xa51   :  { %2634 = vrot.lane.b32.xlu0 %v2618_v7, %s3603_s25 }
 0xa52   :  { %2636 = vrot.lane.b32.xlu1 %v2619_v15, %s3603_s25 }
 0xa55   :  { %2638 = vrot.lane.b32.xlu0 %v2620_v39, %s3603_s25 }
 0xa56   :  { %2640 = vrot.lane.b32.xlu1 %v2621_v21, %s3603_s25 }
 0xa59   :  { %2740 = vrot.lane.b32.xlu0 %v2724_v47, %s3606_s29 }
 0xa5a   :  { %2742 = vrot.lane.b32.xlu1 %v2725_v43, %s3606_s29 }
 0xa5d   :  { %2744 = vrot.lane.b32.xlu0 %v2726_v41, %s3606_s29 }
 0xa5e   :  { %2746 = vrot.lane.b32.xlu1 %v2727_v0, %s3606_s29 }
 0xa61   :  { %2797 = vrot.lane.b32.xlu0 %v2781_v61, %s3607_s30 }
 0xa62   :  { %2799 = vrot.lane.b32.xlu1 %v2782_v44, %s3607_s30 }
 0xa65   :  { %2801 = vrot.lane.b32.xlu0 %v2783_v49, %s3607_s30 }
 0xa66   :  { %2803 = vrot.lane.b32.xlu1 %v2784_v24, %s3607_s30 }
 0xa69   :  { %2903 = vrot.lane.b32.xlu0 %v2887_v11, %s3608_s28 }
 0xa6a   :  { %2905 = vrot.lane.b32.xlu1 %v2888_v25, %s3608_s28 }
 0xa6d   :  { %2907 = vrot.lane.b32.xlu0 %v2889_v42, %s3608_s28 }
 0xa6e   :  { %2909 = vrot.lane.b32.xlu1 %v2890_v48, %s3608_s28 }
 0xa71   :  { %2585 = vrot.lane.b32.xlu0 %v2565_v22, %s3598_s20 }
 0xa72   :  { %2587 = vrot.lane.b32.xlu1 %v2566_v59, %s3598_s20 }
 0xa75   :  { %2589 = vrot.lane.b32.xlu0 %v2567_v62, %s3598_s20 }
 0xa76   :  { %2591 = vrot.lane.b32.xlu1 %v2568_v34, %s3598_s20 }
 0xa79   :  { %2642 = vrot.lane.b32.xlu0 %v2622_v35, %s3603_s25 }
 0xa7a   :  { %2644 = vrot.lane.b32.xlu1 %v2623_v17, %s3603_s25 }
 0xa7d   :  { %2646 = vrot.lane.b32.xlu0 %v2624_v8, %s3603_s25 }
 0xa7e   :  { %2648 = vrot.lane.b32.xlu1 %v2625_v30, %s3603_s25 }
 0xa81   :  { %2748 = vrot.lane.b32.xlu0 %v2728_v53, %s3606_s29 }
 0xa82   :  { %2750 = vrot.lane.b32.xlu1 %v2729_v29, %s3606_s29 }
 0xa85   :  { %2752 = vrot.lane.b32.xlu0 %v2730_v16, %s3606_s29 }
 0xa86   :  { %2754 = vrot.lane.b32.xlu1 %v2731_v50, %s3606_s29 }
 0xa89   :  { %2805 = vrot.lane.b32.xlu0 %v2785_v32, %s3607_s30 }
 0xa8a   :  { %2807 = vrot.lane.b32.xlu1 %v2786_v38, %s3607_s30 }
 0xa8d   :  { %2809 = vrot.lane.b32.xlu0 %v2787_v18, %s3607_s30 }
 0xa8e   :  { %2811 = vrot.lane.b32.xlu1 %v2788_v36, %s3607_s30 }
 0xa8f   :  { %v2523_v23 = vpop.permute.xlu0 %2522 }
 0xa90   :  { %2546 = vst.msk [vmem:[#allocation3 + $0x8] sm:$0xff] %vm2544_vm12, %v2523_v23  ;;  %v2525_v57 = vpop.permute.xlu1 %2524 }
 0xa91   :  { %2547 = vst.msk [vmem:[#allocation3 + $0x10] sm:$0xff] %vm2544_vm12, %v2525_v57  ;;  %2911 = vrot.lane.b32.xlu0 %v2891_v55, %s3608_s28 }
 0xa92   :  { %2913 = vrot.lane.b32.xlu1 %v2892_v54, %s3608_s28 }
 0xa93   :  { %v2684_v9 = vpop.permute.xlu0 %2683 }
 0xa94   :  { %v2527_v46 = vpop.permute.xlu1 %2526 }
 0xa95   :  { %2548 = vst.msk [vmem:[#allocation3 + $0x18] sm:$0xff] %vm2544_vm12, %v2527_v46  ;;  %2915 = vrot.lane.b32.xlu0 %v2893_v10, %s3608_s28 }
 0xa96   :  { %2917 = vrot.lane.b32.xlu1 %v2894_v63, %s3608_s28 }
 0xa97   :  { %v2688_v51 = vpop.permute.xlu0 %2687 }
 0xa98   :  { %v2686_v52 = vpop.permute.xlu1 %2685 }
 0xa9b   :  { %v2847_v37 = vpop.permute.xlu0 %2846 }
 0xa9c   :  { %v2690_v19 = vpop.permute.xlu1 %2689 }
 0xa9f   :  { %v5076_v6 = vpop.permute.xlu0 %2850 }
 0xaa0   :  { %v2849_v1 = vpop.permute.xlu1 %2848 }
 0xaa3   :  { %v2529_v7 = vpop.permute.xlu0 %2528 }
 0xaa4   :  { %2549 = vst.msk [vmem:[#allocation3 + $0x20] sm:$0xff] %vm2544_vm12, %v2529_v7  ;;  %v2853_v2 = vpop.permute.xlu1 %2852 }
 0xaa7   :  { %v2533_v15 = vpop.permute.xlu0 %2532 }
 0xaa8   :  { %2551 = vst.msk [vmem:[#allocation3 + $0x30] sm:$0xff] %vm2544_vm12, %v2533_v15  ;;  %v2531_v4 = vpop.permute.xlu1 %2530 }
 0xaa9   :  { %2550 = vst.msk [vmem:[#allocation3 + $0x28] sm:$0xff] %vm2544_vm12, %v2531_v4  ;;  %v3533_v4 = vld [vmem:[%s5319_s14 + $0x8] sm:$0xff]  }
 0xaaa   :  { %3491 = vmatpush3.bf16.msra.mxu0 %v3533_v4 }
 0xaab   :  { %v5081_v39 = vpop.permute.xlu0 %2691  ;;  %3492 = vmatprep.subr.bf16.mxu0 %v3596_v3 }
 0xaac   :  { %v2535_v21 = vpop.permute.xlu1 %2534 }
 0xaad   :  { %2552 = vst.msk [vmem:[#allocation3 + $0x38] sm:$0xff] %vm2544_vm12, %v2535_v21 }
 0xaaf   :  { %v5084_v5 = vpop.permute.xlu0 %2695 }
 0xab0   :  { %v5086_v47 = vpop.permute.xlu1 %2693 }
 0xab3   :  { %v5088_v43 = vpop.permute.xlu0 %2854 }
 0xab4   :  { %v5090_v33 = vpop.permute.xlu1 %2697 }
 0xab7   :  { %v5092_v60 = vpop.permute.xlu0 %2858 }
 0xab8   :  { %v5094_v45 = vpop.permute.xlu1 %2856 }
 0xabb   :  { %v2578_v41 = vpop.permute.xlu0 %2577 }
 0xabc   :  { %2602 = vst.msk [vmem:[#allocation3] sm:$0xff] %vm2601_vm14, %v2578_v41  ;;  %v2580_v0 = vpop.permute.xlu1 %2579 }
 0xabd   :  { %2603 = vst.msk [vmem:[#allocation3 + $0x8] sm:$0xff] %vm2601_vm14, %v2580_v0 }
 0xabf   :  { %v2582_v14 = vpop.permute.xlu0 %2581 }
 0xac0   :  { %2604 = vst.msk [vmem:[#allocation3 + $0x10] sm:$0xff] %vm2601_vm14, %v2582_v14  ;;  %v2584_v61 = vpop.permute.xlu1 %2583 }
 0xac1   :  { %2605 = vst.msk [vmem:[#allocation3 + $0x18] sm:$0xff] %vm2601_vm14, %v2584_v61 }
 0xac3   :  { %v2635_v44 = vpop.permute.xlu0 %2634 }
 0xac4   :  { %2659 = vst.msk [vmem:[#allocation3] sm:$0xff] %vm2658_vm15, %v2635_v44  ;;  %v2637_v26 = vpop.permute.xlu1 %2636 }
 0xac5   :  { %2660 = vst.msk [vmem:[#allocation3 + $0x8] sm:$0xff] %vm2658_vm15, %v2637_v26 }
 0xac6   :  { %2708 = vst.msk [vmem:[#allocation3] sm:$0xff] %vm2707_vm1, %v2684_v9  ;;  %2709 = vst.msk [vmem:[#allocation3 + $0x8] sm:$0xff] %vm2707_vm1, %v2686_v52 }
 0xac7   :  { %v2639_v49 = vpop.permute.xlu0 %2638 }
 0xac8   :  { %2661 = vst.msk [vmem:[#allocation3 + $0x10] sm:$0xff] %vm2658_vm15, %v2639_v49  ;;  %v2641_v24 = vpop.permute.xlu1 %2640 }
 0xac9   :  { %2662 = vst.msk [vmem:[#allocation3 + $0x18] sm:$0xff] %vm2658_vm15, %v2641_v24 }
 0xaca   :  { %2710 = vst.msk [vmem:[#allocation3 + $0x10] sm:$0xff] %vm2707_vm1, %v2688_v51  ;;  %2711 = vst.msk [vmem:[#allocation3 + $0x18] sm:$0xff] %vm2707_vm1, %v2690_v19 }
 0xacb   :  { %v2741_v28 = vpop.permute.xlu0 %2740 }
 0xacc   :  { %2765 = vst.msk [vmem:[#allocation3] sm:$0xff] %vm2764_vm2, %v2741_v28  ;;  %v2743_v11 = vpop.permute.xlu1 %2742 }
 0xacd   :  { %2766 = vst.msk [vmem:[#allocation3 + $0x8] sm:$0xff] %vm2764_vm2, %v2743_v11 }
 0xacf   :  { %v2745_v25 = vpop.permute.xlu0 %2744 }
 0xad0   :  { %2767 = vst.msk [vmem:[#allocation3 + $0x10] sm:$0xff] %vm2764_vm2, %v2745_v25  ;;  %v2747_v40 = vpop.permute.xlu1 %2746 }
 0xad1   :  { %2768 = vst.msk [vmem:[#allocation3 + $0x18] sm:$0xff] %vm2764_vm2, %v2747_v40 }
 0xad3   :  { %v2798_v42 = vpop.permute.xlu0 %2797 }
 0xad4   :  { %2822 = vst.msk [vmem:[#allocation3] sm:$0xff] %vm2821_vm3, %v2798_v42  ;;  %v2800_v48 = vpop.permute.xlu1 %2799 }
 0xad5   :  { %2823 = vst.msk [vmem:[#allocation3 + $0x8] sm:$0xff] %vm2821_vm3, %v2800_v48 }
 0xad6   :  { %2871 = vst.msk [vmem:[#allocation3] sm:$0xff] %vm2870_vm4, %v2847_v37  ;;  %2872 = vst.msk [vmem:[#allocation3 + $0x8] sm:$0xff] %vm2870_vm4, %v2849_v1 }
 0xad7   :  { %v2802_v22 = vpop.permute.xlu0 %2801 }
 0xad8   :  { %2824 = vst.msk [vmem:[#allocation3 + $0x10] sm:$0xff] %vm2821_vm3, %v2802_v22  ;;  %v2804_v59 = vpop.permute.xlu1 %2803 }
 0xad9   :  { %2825 = vst.msk [vmem:[#allocation3 + $0x18] sm:$0xff] %vm2821_vm3, %v2804_v59 }
 0xada   :  { %2873 = vst.msk [vmem:[#allocation3 + $0x10] sm:$0xff] %vm2870_vm4, %v5076_v6  ;;  %2874 = vst.msk [vmem:[#allocation3 + $0x18] sm:$0xff] %vm2870_vm4, %v2853_v2  ;;  %v3198_v2 = vld [vmem:[%s5318_s1] sm:$0x1] }
 0xadb   :  { %v2904_v27 = vpop.permute.xlu0 %2903  ;;  %v3199_v15 = vsub.f32 0.0, %v3198_v2 }
 0xadc   :  { %2928 = vst.msk [vmem:[#allocation3] sm:$0xff] %vm2927_vm5, %v2904_v27  ;;  %v2906_v31 = vpop.permute.xlu1 %2905 }
 0xadd   :  { %2929 = vst.msk [vmem:[#allocation3 + $0x8] sm:$0xff] %vm2927_vm5, %v2906_v31  ;;  %v3200_v21 = vmul.f32 1.442695, %v3199_v15 }
 0xadf   :  { %v2908_v62 = vpop.permute.xlu0 %2907  ;;  %3589 = vpow2.f32 %v3200_v21 }
 0xae0   :  { %2930 = vst.msk [vmem:[#allocation3 + $0x10] sm:$0xff] %vm2927_vm5, %v2908_v62  ;;  %v2910_v34 = vpop.permute.xlu1 %2909 }
 0xae1   :  { %2931 = vst.msk [vmem:[#allocation3 + $0x18] sm:$0xff] %vm2927_vm5, %v2910_v34 }
 0xae3   :  { %v2586_v35 = vpop.permute.xlu0 %2585  ;;  %v2936_v17 = vld [vmem:[#allocation3] sm:$0xff] }
 0xae4   :  { %2606 = vst.msk [vmem:[#allocation3 + $0x20] sm:$0xff] %vm2601_vm14, %v2586_v35  ;;  %v2588_v56 = vpop.permute.xlu1 %2587  ;;  %v2937_v8 = vld [vmem:[#allocation3 + $0x8] sm:$0xff] }
 0xae5   :  { %2607 = vst.msk [vmem:[#allocation3 + $0x28] sm:$0xff] %vm2601_vm14, %v2588_v56  ;;  %v2944_v30 = vpack.c.bf16 %v2937_v8, %v2936_v17 }
 0xae7   :  { %3482 = vmatprep.mubr.msk.bf16.mxu1 %vm2984_vm6, %v2944_v30  ;;  %v2590_v53 = vpop.permute.xlu0 %2589  ;;  %v2938_v29 = vld [vmem:[#allocation3 + $0x10] sm:$0xff] }
 0xae8   :  { %2608 = vst.msk [vmem:[#allocation3 + $0x30] sm:$0xff] %vm2601_vm14, %v2590_v53  ;;  %v2592_v13 = vpop.permute.xlu1 %2591  ;;  %v2939_v16 = vld [vmem:[#allocation3 + $0x18] sm:$0xff] }
 0xae9   :  { %2609 = vst.msk [vmem:[#allocation3 + $0x38] sm:$0xff] %vm2601_vm14, %v2592_v13  ;;  %v2945_v50 = vpack.c.bf16 %v2939_v16, %v2938_v29 }
 0xaeb   :  { %3483 = vmatmul.mubr.msk.bf16.vlgmr.msra.gmra.mxu1 %vm2984_vm6, %v2945_v50  ;;  %v2643_v32 = vpop.permute.xlu0 %2642 }
 0xaec   :  { %2663 = vst.msk [vmem:[#allocation3 + $0x20] sm:$0xff] %vm2658_vm15, %v2643_v32  ;;  %v2645_v38 = vpop.permute.xlu1 %2644 }
 0xaed   :  { %2712 = vst.msk [vmem:[#allocation3 + $0x20] sm:$0xff] %vm2707_vm1, %v5081_v39  ;;  %v3534_v39 = vld [vmem:[%s5319_s14] sm:$0xff]  }
 0xaee   :  { %2664 = vst.msk [vmem:[#allocation3 + $0x28] sm:$0xff] %vm2658_vm15, %v2645_v38  ;;  %3493 = vmatpush3.bf16.msra.mxu0 %v3534_v39 }
 0xaef   :  { %2713 = vst.msk [vmem:[#allocation3 + $0x28] sm:$0xff] %vm2707_vm1, %v5086_v47  ;;  %v2647_v20 = vpop.permute.xlu0 %2646 }
 0xaf0   :  { %2665 = vst.msk [vmem:[#allocation3 + $0x30] sm:$0xff] %vm2658_vm15, %v2647_v20  ;;  %v2649_v18 = vpop.permute.xlu1 %2648 }
 0xaf1   :  { %2714 = vst.msk [vmem:[#allocation3 + $0x30] sm:$0xff] %vm2707_vm1, %v5084_v5  ;;  %v3590_v5 = vpop.eup %3589 }
 0xaf2   :  { %2666 = vst.msk [vmem:[#allocation3 + $0x38] sm:$0xff] %vm2658_vm15, %v2649_v18  ;;  %v3202_v47 = vadd.f32 1.0, %v3590_v5 }
 0xaf3   :  { %2715 = vst.msk [vmem:[#allocation3 + $0x38] sm:$0xff] %vm2707_vm1, %v5090_v33  ;;  %v2749_v36 = vpop.permute.xlu0 %2748 }
 0xaf4   :  { %2769 = vst.msk [vmem:[#allocation3 + $0x20] sm:$0xff] %vm2764_vm2, %v2749_v36  ;;  %v2751_v23 = vpop.permute.xlu1 %2750  ;;  %3591 = vrcp.f32 %v3202_v47 }
 0xaf5   :  { %2770 = vst.msk [vmem:[#allocation3 + $0x28] sm:$0xff] %vm2764_vm2, %v2751_v23 }
 0xaf7   :  { %v2753_v55 = vpop.permute.xlu0 %2752 }
 0xaf8   :  { %2771 = vst.msk [vmem:[#allocation3 + $0x30] sm:$0xff] %vm2764_vm2, %v2753_v55  ;;  %v2755_v57 = vpop.permute.xlu1 %2754 }
 0xaf9   :  { %2772 = vst.msk [vmem:[#allocation3 + $0x38] sm:$0xff] %vm2764_vm2, %v2755_v57 }
 0xafb   :  { %v2806_v54 = vpop.permute.xlu0 %2805 }
 0xafc   :  { %2826 = vst.msk [vmem:[#allocation3 + $0x20] sm:$0xff] %vm2821_vm3, %v2806_v54  ;;  %v2808_v12 = vpop.permute.xlu1 %2807 }
 0xafd   :  { %2875 = vst.msk [vmem:[#allocation3 + $0x20] sm:$0xff] %vm2870_vm4, %v5088_v43 }
 0xafe   :  { %2827 = vst.msk [vmem:[#allocation3 + $0x28] sm:$0xff] %vm2821_vm3, %v2808_v12 }
 0xaff   :  { %2876 = vst.msk [vmem:[#allocation3 + $0x28] sm:$0xff] %vm2870_vm4, %v5094_v45  ;;  %v2810_v9 = vpop.permute.xlu0 %2809 }
 0xb00   :  { %2828 = vst.msk [vmem:[#allocation3 + $0x30] sm:$0xff] %vm2821_vm3, %v2810_v9  ;;  %v2812_v10 = vpop.permute.xlu1 %2811  ;;  %v3276_v9 = vlaneseq }
 0xb01   :  { %2877 = vst.msk [vmem:[#allocation3 + $0x30] sm:$0xff] %vm2870_vm4, %v5092_v60  ;;  %v3592_v43 = vpop.eup %3591 }
 0xb02   :  { %2829 = vst.msk [vmem:[#allocation3 + $0x38] sm:$0xff] %vm2821_vm3, %v2812_v10  ;;  %v3205_v33 = vmul.f32 %v3592_v43, %v3198_v2 }
 0xb03   :  { %2878 = vst.msk [vmem:[#allocation3 + $0x38] sm:$0xff] %vm2870_vm4, %v5059_v58  ;;  %v2912_v46 = vpop.permute.xlu0 %2911 }
 0xb04   :  { %2932 = vst.msk [vmem:[#allocation3 + $0x20] sm:$0xff] %vm2927_vm5, %v2912_v46  ;;  %v2914_v63 = vpop.permute.xlu1 %2913  ;;  %v3206_v60 = vpack.c.bf16 %v3205_v33, %v3205_v33 }
 0xb05   :  { %2933 = vst.msk [vmem:[#allocation3 + $0x28] sm:$0xff] %vm2927_vm5, %v2914_v63 }
 0xb06   :  { %3495 = vmatmul.mubr.msk.bf16.vlgmr.msra.gmra.mxu0 %vm3224_vm8, %v3206_v60 }
 0xb07   :  { %v2916_v51 = vpop.permute.xlu0 %2915 }
 0xb08   :  { %2934 = vst.msk [vmem:[#allocation3 + $0x30] sm:$0xff] %vm2927_vm5, %v2916_v51  ;;  %v2918_v52 = vpop.permute.xlu1 %2917 }
 0xb09   :  { %2935 = vst.msk [vmem:[#allocation3 + $0x38] sm:$0xff] %vm2927_vm5, %v2918_v52 }
 0xb0b   :  { %v2940_v37 = vld [vmem:[#allocation3 + $0x20] sm:$0xff] }
 0xb0c   :  { %v2941_v19 = vld [vmem:[#allocation3 + $0x28] sm:$0xff] }
 0xb0d   :  { %v2946_v6 = vpack.c.bf16 %v2941_v19, %v2940_v37  ;;  %v3277_v19 = vshrl.u32 %v3276_v9, 7 }
 0xb0f   :  { %3486 = vmatprep.mubr.msk.bf16.mxu1 %vm2984_vm6, %v2946_v6  ;;  %v2942_v1 = vld [vmem:[#allocation3 + $0x30] sm:$0xff]  ;;  %v3278_v21 = vsub.s32 0, %v3277_v19 }
 0xb10   :  { %v2943_v7 = vld [vmem:[#allocation3 + $0x38] sm:$0xff] }
 0xb11   :  { %v2947_v58 = vpack.c.bf16 %v2943_v7, %v2942_v1  ;;  %v3211_v7 = vld [vmem:[%s5320_s15] sm:$0x1] }
 0xb13   :  { %3487 = vmatmul.mubr.msk.bf16.gmra.mxu1 %vm2984_vm6, %v2947_v58 }
 0xbab   :  { %v3484_v45 = vpop.f32.mrf.mxu1 }
 0xbac   :  { %v3072_v44 = vsel %vm79_vm0, %v3484_v45, 0.0 }
 0xbad   :  { %v3035_v41 = vpop.f32.mrf.mxu1 }
 0xbae   :  { %v3066_v0 = vsel %vm79_vm0, %v3035_v41, 0.0 }
 0xbaf   :  { %3067 = vadd.xlane.f32.xlu0 %v3066_v0  ;;  %v3485_v14 = vpop.f32.mrf.mxu1  ;;  %v3269_v0 = vld [vmem:[%s5321_s16 + $0x8] sm:$0xff] }
 0xbb0   :  { %v3075_v26 = vsel %vm79_vm0, %v3485_v14, 0.0 }
 0xbb1   :  { %v3038_v61 = vpop.f32.mrf.mxu1 }
 0xbb2   :  { %v3069_v3 = vsel %vm79_vm0, %v3038_v61, 0.0 }
 0xbb3   :  { %3073 = vadd.xlane.f32.xlu0 %v3072_v44  ;;  %3070 = vadd.xlane.f32.xlu1 %v3069_v3 }
 0xbb7   :  { %3076 = vadd.xlane.f32.xlu0 %v3075_v26 }
 0xbc6   :  { %v3262_v22 = vpop.f32.mrf.mxu0 }
 0xbc7   :  { %v3263_v39 = vadd.f32 %v3262_v22, %v3211_v7 }
 0xbc8   :  { %v3496_v59 = vpop.f32.mrf.mxu0 }
 0xbca   :  { %v3265_v27 = vpop.f32.mrf.mxu0 }
 0xbcb   :  { %v3273_v27 = vld [vmem:[%s5321_s16 + $0x28] sm:$0xff] }
 0xbcc   :  { %v3497_v31 = vpop.f32.mrf.mxu0 }
 0xbcd   :  { %v3272_v31 = vld [vmem:[%s5321_s16 + $0x20] sm:$0xff] }
 0xbd3   :  { %v3488_v49 = vpop.f32.mrf.mxu1 }
 0xbd4   :  { %v3084_v42 = vsel %vm79_vm0, %v3488_v49, 0.0 }
 0xbd5   :  { %v3051_v24 = vpop.f32.mrf.mxu1 }
 0xbd6   :  { %v3078_v28 = vsel %vm79_vm0, %v3051_v24, 0.0 }
 0xbd7   :  { %3079 = vadd.xlane.f32.xlu1 %v3078_v28  ;;  %v3489_v11 = vpop.f32.mrf.mxu1  ;;  %v3271_v28 = vld [vmem:[%s5321_s16 + $0x18] sm:$0xff] }
 0xbd8   :  { %v3087_v48 = vsel %vm79_vm0, %v3489_v11, 0.0 }
 0xbd9   :  { %v3054_v25 = vpop.f32.mrf.mxu1 }
 0xbda   :  { %v3081_v40 = vsel %vm79_vm0, %v3054_v25, 0.0 }
 0xbdb   :  { %3085 = vadd.xlane.f32.xlu1 %v3084_v42  ;;  %3082 = vadd.xlane.f32.xlu0 %v3081_v40 }
 0xbdf   :  { %3088 = vadd.xlane.f32.xlu0 %v3087_v48 }
 0xc38   :  { %v3068_v62 = vpop.xlane.xlu0 %3067 }
 0xc3c   :  { %v3071_v34 = vpop.xlane.xlu1 %3070  ;;  %v3074_v35 = vpop.xlane.xlu0 %3073 }
 0xc3d   :  { %v3090_v17 = vadd.f32 %v3071_v34, %v3068_v62 }
 0xc3f   :  { %v3091_v56 = vadd.f32 %v3090_v17, %v3074_v35 }
 0xc40   :  { %v3077_v8 = vpop.xlane.xlu0 %3076 }
 0xc41   :  { %v3092_v53 = vadd.f32 %v3091_v56, %v3077_v8  ;;  %v3275_v56 = vld [vmem:[%s5321_s16 + $0x38] sm:$0xff]  ;;  %v3274_v8 = vld [vmem:[%s5321_s16 + $0x30] sm:$0xff] }
 0xc60   :  { %v3080_v30 = vpop.xlane.xlu1 %3079 }
 0xc61   :  { %v3093_v29 = vadd.f32 %v3092_v53, %v3080_v30 }
 0xc64   :  { %v3083_v13 = vpop.xlane.xlu0 %3082  ;;  %v3086_v50 = vpop.xlane.xlu1 %3085 }
 0xc65   :  { %v3094_v16 = vadd.f32 %v3093_v29, %v3083_v13 }
 0xc67   :  { %v3095_v32 = vadd.f32 %v3094_v16, %v3086_v50 }
 0xc68   :  { %v3089_v38 = vpop.xlane.xlu0 %3088 }
 0xc69   :  { %v3096_v20 = vadd.f32 %v3095_v32, %v3089_v38 }
 0xc6b   :  { %v3097_v18 = vrot.slane %v3096_v20, 4 }
 0xc6d   :  { %v3098_v36 = vadd.f32 %v3097_v18, %v3096_v20 }
 0xc6f   :  { %v3099_v23 = vrot.slane %v3098_v36, 2 }
 0xc71   :  { %v3100_v55 = vadd.f32 %v3099_v23, %v3098_v36 }
 0xc73   :  { %v3101_v57 = vrot.slane %v3100_v55, 1 }
 0xc75   :  { %v3102_v54 = vadd.f32 %v3101_v57, %v3100_v55 }
 0xc77   :  { %v3103_v12 = vmul.f32 0.001953125, %v3102_v54 }
 0xc79   :  { %v5184_v10 = vsub.f32 %v3038_v61, %v3103_v12  ;;  %v5186_v46 = vsub.f32 %v3035_v41, %v3103_v12  ;;  %v5188_v63 = vsub.f32 %v3485_v14, %v3103_v12  ;;  %v5190_v51 = vsub.f32 %v3484_v45, %v3103_v12  ;;  %v3268_v14 = vld [vmem:[%s5321_s16] sm:$0xff] }
 0xc7a   :  { %v5196_v6 = vsub.f32 %v3054_v25, %v3103_v12  ;;  %v5198_v1 = vsub.f32 %v3051_v24, %v3103_v12  ;;  %v5209_v5 = vsub.f32 %v3489_v11, %v3103_v12  ;;  %v5211_v47 = vsub.f32 %v3488_v49, %v3103_v12  ;;  %v3270_v11 = vld [vmem:[%s5321_s16 + $0x10] sm:$0xff] }
 0xc7b   :  { %v3113_v52 = vmul.f32 %v5184_v10, %v5184_v10  ;;  %v3112_v37 = vmul.f32 %v5186_v46, %v5186_v46  ;;  %v3115_v15 = vmul.f32 %v5188_v63, %v5188_v63  ;;  %v3114_v4 = vmul.f32 %v5190_v51, %v5190_v51 }
 0xc7c   :  { %v3117_v60 = vmul.f32 %v5196_v6, %v5196_v6  ;;  %v3116_v45 = vmul.f32 %v5198_v1, %v5198_v1  ;;  %v3279_v41 = vrot.slane %v3263_v39, %v3278_v21  ;;  %v3119_v3 = vmul.f32 %v5209_v5, %v5209_v5 }
 0xc7d   :  { %v3123_v58 = vsel %vm79_vm0, %v3113_v52, 0.0  ;;  %v3120_v2 = vsel %vm79_vm0, %v3112_v37, 0.0  ;;  %v3129_v43 = vsel %vm79_vm0, %v3115_v15, 0.0  ;;  %v3126_v33 = vsel %vm79_vm0, %v3114_v4, 0.0 }
 0xc7e   :  { %3124 = vadd.xlane.f32.xlu0 %v3123_v58  ;;  %3121 = vadd.xlane.f32.xlu1 %v3120_v2  ;;  %v3135_v61 = vsel %vm79_vm0, %v3117_v60, 0.0  ;;  %v3132_v44 = vsel %vm79_vm0, %v3116_v45, 0.0  ;;  %v3118_v26 = vmul.f32 %v5211_v47, %v5211_v47  ;;  %v3281_v49 = vmul.f32 %v3279_v41, %v3269_v0 }
 0xc7f   :  { %v3280_v24 = vmul.f32 %v3279_v41, %v3268_v14  ;;  %v3141_v25 = vsel %vm79_vm0, %v3119_v3, 0.0  ;;  %v3283_v22 = vmul.f32 %v3279_v41, %v3271_v28  ;;  %v3282_v59 = vmul.f32 %v3279_v41, %v3270_v11  ;;  %v3393_v11 = vld [vmem:[%s5323_s13] ss:$0 sm:$0xff] }
 0xc80   :  { %v3138_v40 = vsel %vm79_vm0, %v3118_v26, 0.0  ;;  %v3291_v42 = vsel %vm79_vm0, %v3281_v49, 0.0  ;;  %v3285_v35 = vmul.f32 %v3279_v41, %v3273_v27  ;;  %v3284_v17 = vmul.f32 %v3279_v41, %v3272_v31 }
 0xc81   :  { %v3288_v48 = vsel %vm79_vm0, %v3280_v24, 0.0  ;;  %v3297_v62 = vsel %vm79_vm0, %v3283_v22, 0.0  ;;  %v3294_v34 = vsel %vm79_vm0, %v3282_v59, 0.0  ;;  %v3287_v29 = vmul.f32 %v3279_v41, %v3275_v56 }
 0xc82   :  { %3130 = vadd.xlane.f32.xlu0 %v3129_v43  ;;  %3127 = vadd.xlane.f32.xlu1 %v3126_v33  ;;  %v3303_v30 = vsel %vm79_vm0, %v3285_v35, 0.0  ;;  %v3300_v53 = vsel %vm79_vm0, %v3284_v17, 0.0  ;;  %v3286_v13 = vmul.f32 %v3279_v41, %v3274_v8 }
 0xc83   :  { %v3309_v16 = vsel %vm79_vm0, %v3287_v29, 0.0 }
 0xc84   :  { %v3306_v50 = vsel %vm79_vm0, %v3286_v13, 0.0 }
 0xc86   :  { %3136 = vadd.xlane.f32.xlu0 %v3135_v61  ;;  %3133 = vadd.xlane.f32.xlu1 %v3132_v44  ;;  %v3392_v61 = vld [vmem:[%s5322_s12] ss:$0 sm:$0xff] }
 0xc8a   :  { %3142 = vadd.xlane.f32.xlu0 %v3141_v25  ;;  %3139 = vadd.xlane.f32.xlu1 %v3138_v40 }
 0xc8e   :  { %3292 = vadd.xlane.f32.xlu0 %v3291_v42  ;;  %3289 = vadd.xlane.f32.xlu1 %v3288_v48 }
 0xc92   :  { %3298 = vadd.xlane.f32.xlu0 %v3297_v62  ;;  %3295 = vadd.xlane.f32.xlu1 %v3294_v34 }
 0xc96   :  { %3304 = vadd.xlane.f32.xlu0 %v3303_v30  ;;  %3301 = vadd.xlane.f32.xlu1 %v3300_v53 }
 0xc9a   :  { %3310 = vadd.xlane.f32.xlu0 %v3309_v16  ;;  %3307 = vadd.xlane.f32.xlu1 %v3306_v50 }
 0xd07   :  { %v3125_v32 = vpop.xlane.xlu0 %3124  ;;  %v3122_v38 = vpop.xlane.xlu1 %3121 }
 0xd08   :  { %v3144_v20 = vadd.f32 %v3125_v32, %v3122_v38 }
 0xd0b   :  { %v3131_v18 = vpop.xlane.xlu0 %3130  ;;  %v3128_v36 = vpop.xlane.xlu1 %3127 }
 0xd0c   :  { %v3145_v23 = vadd.f32 %v3144_v20, %v3128_v36 }
 0xd0e   :  { %v3146_v55 = vadd.f32 %v3145_v23, %v3131_v18 }
 0xd0f   :  { %v3137_v57 = vpop.xlane.xlu0 %3136  ;;  %v3134_v54 = vpop.xlane.xlu1 %3133 }
 0xd10   :  { %v3147_v12 = vadd.f32 %v3146_v55, %v3134_v54 }
 0xd12   :  { %v3148_v9 = vadd.f32 %v3147_v12, %v3137_v57 }
 0xd13   :  { %v3140_v52 = vpop.xlane.xlu1 %3139  ;;  %v3143_v19 = vpop.xlane.xlu0 %3142 }
 0xd14   :  { %v3149_v37 = vadd.f32 %v3148_v9, %v3140_v52 }
 0xd16   :  { %v3150_v7 = vadd.f32 %v3149_v37, %v3143_v19 }
 0xd17   :  { %v3293_v60 = vpop.xlane.xlu0 %3292  ;;  %v3290_v45 = vpop.xlane.xlu1 %3289 }
 0xd18   :  { %v3151_v58 = vrot.slane %v3150_v7, 4 }
 0xd1a   :  { %v3152_v2 = vadd.f32 %v3151_v58, %v3150_v7 }
 0xd1b   :  { %v3299_v41 = vpop.xlane.xlu0 %3298  ;;  %v3296_v0 = vpop.xlane.xlu1 %3295 }
 0xd1c   :  { %v3153_v15 = vrot.slane %v3152_v2, 2 }
 0xd1e   :  { %v3154_v4 = vadd.f32 %v3153_v15, %v3152_v2 }
 0xd1f   :  { %v3305_v24 = vpop.xlane.xlu0 %3304  ;;  %v3302_v28 = vpop.xlane.xlu1 %3301 }
 0xd20   :  { %v3155_v39 = vrot.slane %v3154_v4, 1 }
 0xd22   :  { %v3156_v21 = vadd.f32 %v3155_v39, %v3154_v4 }
 0xd23   :  { %v3311_v29 = vpop.xlane.xlu0 %3310  ;;  %v3308_v13 = vpop.xlane.xlu1 %3307 }
 0xd24   :  { %v3157_v43 = vmul.f32 0.001953125, %v3156_v21 }
 0xd26   :  { %v3158_v33 = vadd.f32 1e-05, %v3157_v43 }
 0xd28   :  { %3593 = vrsqrt.f32 %v3158_v33 }
 0xd35   :  { %v3594_v14 = vpop.eup %3593 }
 0xd36   :  { %v3161_v44 = vmul.f32 %v3594_v14, %v5184_v10  ;;  %v3160_v3 = vmul.f32 %v3594_v14, %v5186_v46  ;;  %v3163_v26 = vmul.f32 %v3594_v14, %v5188_v63  ;;  %v3162_v49 = vmul.f32 %v3594_v14, %v5190_v51 }
 0xd37   :  { %v3165_v25 = vmul.f32 %v3594_v14, %v5196_v6  ;;  %v3164_v40 = vmul.f32 %v3594_v14, %v5198_v1  ;;  %v3167_v42 = vmul.f32 %v3594_v14, %v5209_v5  ;;  %v3166_v10 = vmul.f32 %v3594_v14, %v5211_v47 }
 0xd38   :  { %v3176_v48 = vmul.f32 %v3392_v61, %v3161_v44  ;;  %v3175_v46 = vmul.f32 %v3392_v61, %v3160_v3  ;;  %v3178_v22 = vmul.f32 %v3392_v61, %v3163_v26  ;;  %v3177_v63 = vmul.f32 %v3392_v61, %v3162_v49 }
 0xd39   :  { %v3180_v59 = vmul.f32 %v3392_v61, %v3165_v25  ;;  %v3179_v51 = vmul.f32 %v3392_v61, %v3164_v40  ;;  %v3182_v27 = vmul.f32 %v3392_v61, %v3167_v42  ;;  %v3181_v31 = vmul.f32 %v3392_v61, %v3166_v10 }
 0xd3a   :  { %v3191_v62 = vadd.f32 %v3393_v11, %v3176_v48  ;;  %v3190_v34 = vadd.f32 %v3393_v11, %v3175_v46  ;;  %v3193_v35 = vadd.f32 %v3393_v11, %v3178_v22  ;;  %v3192_v17 = vadd.f32 %v3393_v11, %v3177_v63 }
 0xd3b   :  { %v3195_v56 = vadd.f32 %v3393_v11, %v3180_v59  ;;  %v3194_v6 = vadd.f32 %v3393_v11, %v3179_v51  ;;  %v3197_v8 = vadd.f32 %v3393_v11, %v3182_v27  ;;  %v3196_v1 = vadd.f32 %v3393_v11, %v3181_v31 }
 0xd3c   :  { %v3313_v30 = vadd.f32 %v3293_v60, %v3191_v62  ;;  %v3312_v5 = vadd.f32 %v3290_v45, %v3190_v34  ;;  %v3315_v53 = vadd.f32 %v3299_v41, %v3193_v35  ;;  %v3314_v47 = vadd.f32 %v3296_v0, %v3192_v17 }
 0xd3d   :  { %v3317_v16 = vadd.f32 %v3305_v24, %v3195_v56  ;;  %v3316_v50 = vadd.f32 %v3302_v28, %v3194_v6  ;;  %v3319_v32 = vadd.f32 %v3311_v29, %v3197_v8  ;;  %v3318_v38 = vadd.f32 %v3308_v13, %v3196_v1 }
 0xd3e   :  { %3321 = vst.msk [vmem:[%s5324_s19 + $0x8] sm:$0xff] %vm79_vm0, %v3313_v30  ;;  %3320 = vst.msk [vmem:[%s5324_s19] sm:$0xff] %vm79_vm0, %v3312_v5 }
 0xd3f   :  { %3323 = vst.msk [vmem:[%s5324_s19 + $0x18] sm:$0xff] %vm79_vm0, %v3315_v53  ;;  %3322 = vst.msk [vmem:[%s5324_s19 + $0x10] sm:$0xff] %vm79_vm0, %v3314_v47 }
 0xd40   :  { %3325 = vst.msk [vmem:[%s5324_s19 + $0x28] sm:$0xff] %vm79_vm0, %v3317_v16  ;;  %3324 = vst.msk [vmem:[%s5324_s19 + $0x20] sm:$0xff] %vm79_vm0, %v3316_v50 }
 0xd41   :  { %3327 = vst.msk [vmem:[%s5324_s19 + $0x38] sm:$0xff] %vm79_vm0, %v3319_v32  ;;  %3326 = vst.msk [vmem:[%s5324_s19 + $0x30] sm:$0xff] %vm79_vm0, %v3318_v38 }

</bundles_post_ra>
